<compile_context>
chip_gen: v7x
topology: tpu7x:2x2x1
jax: 0.10.0
libtpu: 0.0.40
codegen_flags: <defaults>
</compile_context>

<pallas_src>
import functools
import math

import jax
import jax.numpy as jnp
from jax.experimental import pallas as pl
from jax.experimental.pallas import tpu as pltpu

# ---- TCNModel hyper-parameters (defaults, filters shrunk for a small test) ----
KERNEL_SIZE = 3
DILATIONS = (1, 2, 4, 8, 16, 32)
NB_STACKS = 2
NB_FILTERS = 32
OUTPUT_DIM = 7
BN_EPS = 1e-5
DIL_LIST = tuple(d for _ in range(NB_STACKS) for d in DILATIONS)
N_BLOCKS = len(DIL_LIST)


# --------------------------- fused Pallas kernel ---------------------------

def _tcn_fused_kernel(x_ref, pw_ref, pb_ref, w_ref, sc_ref, sh_ref, ow_ref, ob_ref,
                      out_ref, *, bt, t, cin, f, k, dils, out_dim):
    rows = bt * t

    # ---- input projection: pointwise conv + bias (no norm / relu) ----
    x = x_ref[...].reshape(rows, cin).astype(jnp.float32)
    h = jnp.dot(x, pw_ref[...], preferred_element_type=jnp.float32) + pb_ref[...]

    def shifted(a2d, shift):
        # Causal time shift of an in-register activation: row (b, ti) takes the
        # value of row (b, ti - shift), zeros for ti < shift.  Done entirely on
        # values (per-batch zero-prepend + static slice), so there is no scratch
        # store and no sublane-misaligned VMEM reload per tap.
        if shift == 0:
            return a2d
        a3 = a2d.reshape(bt, t, f)                      # free: t % 8 == 0
        z = jnp.zeros((bt, shift, f), jnp.float32)
        return jnp.concatenate([z, a3[:, :t - shift, :]], axis=1).reshape(rows, f)

    def conv_bn_relu(src, blk, ci, d):
        # Dilated causal conv as one (rows, F) @ (F, F) MXU dot per kept tap,
        # accumulated in f32 (avoids the lane-misaligned 96-wide concat).
        # Taps whose window lies entirely inside the causal zero pad are skipped
        # statically; the result is numerically identical.
        acc = None
        for j in range(k):
            shift = (k - 1 - j) * d
            if shift >= t:
                continue
            wj = w_ref[blk, ci, j * f:(j + 1) * f, :]    # (F, F), sublane-aligned slice
            yj = jnp.dot(shifted(src, shift), wj, preferred_element_type=jnp.float32)
            acc = yj if acc is None else acc + yj
        # folded conv-bias + eval-mode BatchNorm affine, then ReLU
        return jnp.maximum(acc * sc_ref[blk, ci] + sh_ref[blk, ci], 0.0)

    # ---- residual blocks (statically unrolled); accumulate only the last
    #      timestep of the skip path (that is all the head reads) ----
    skip_last = jnp.zeros((bt, f), jnp.float32)
    for blk, d in enumerate(dils):
        h1 = conv_bn_relu(h, blk, 0, d)
        y2 = conv_bn_relu(h1, blk, 1, d)
        skip = y2 + h                                    # pre-ReLU residual sum
        skip_last = skip_last + skip.reshape(bt, t, f)[:, t - 1, :]
        h = jnp.maximum(skip, 0.0)                       # input to next block

    # ---- head epilogue: Linear(F -> out_dim) on the summed last timestep ----
    out = jnp.dot(skip_last, ow_ref[...], preferred_element_type=jnp.float32) + ob_ref[...]
    out_ref[...] = out.reshape(bt, 1, out_dim).astype(out_ref.dtype)


# --------------------------- wrapper ---------------------------

def _num_tensorcores():
    # v4 / v5p (megacore) and v7x benefit from >=2 parallel grid steps per chip;
    # v5e / v6e have a single TensorCore, where extra grid steps are pure overhead.
    try:
        kind = jax.devices()[0].device_kind.lower()
    except Exception:
        return 1
    return 2 if any(tag in kind for tag in ("v4", "v5p", "v7")) else 1


def _pick_batch_tile(b, t, n_cores):
    # Single-TC chips: one grid step with the whole batch.
    # Multi-TC chips: step count a multiple of the core count, rows per step
    # capped at ~512 so the x-tile DMA stays double-buffered and vreg live
    # ranges across the 12-block unroll stay bounded.
    if b <= 1 or n_cores <= 1:
        return max(b, 1)
    max_rows = 512
    best = 1
    for bt in range(1, b + 1):
        if b % bt:
            continue
        if (b // bt) % n_cores:
            continue
        if bt * t > max_rows:
            continue
        best = max(best, bt)
    return best


@jax.jit
def tcn_forward(params, x):
    b, t, cin = x.shape
    f = NB_FILTERS
    k = KERNEL_SIZE
    # (bt, t, f) <-> (bt*t, f) reshapes are layout-free only when t % 8 == 0.
    assert t % 8 == 0, "sequence length must be a multiple of 8 sublanes"
    bt = _pick_batch_tile(b, t, _num_tensorcores())

    kernel = functools.partial(
        _tcn_fused_kernel, bt=bt, t=t, cin=cin, f=f, k=k, dils=DIL_LIST,
        out_dim=OUTPUT_DIM)

    out = pl.pallas_call(
        kernel,
        out_shape=jax.ShapeDtypeStruct((b, 1, OUTPUT_DIM), jnp.float32),
        grid=(b // bt,),
        in_specs=[
            pl.BlockSpec((bt, t, cin), lambda i: (i, 0, 0)),                 # x tile
            pl.BlockSpec((cin, f), lambda i: (0, 0)),                        # proj W
            pl.BlockSpec((1, f), lambda i: (0, 0)),                          # proj b
            pl.BlockSpec((N_BLOCKS, 2, k * f, f), lambda i: (0, 0, 0, 0)),   # stacked conv W
            pl.BlockSpec((N_BLOCKS, 2, 1, f), lambda i: (0, 0, 0, 0)),       # BN scale
            pl.BlockSpec((N_BLOCKS, 2, 1, f), lambda i: (0, 0, 0, 0)),       # BN shift
            pl.BlockSpec((f, OUTPUT_DIM), lambda i: (0, 0)),                 # head W
            pl.BlockSpec((1, OUTPUT_DIM), lambda i: (0, 0)),                 # head b
        ],
        out_specs=pl.BlockSpec((bt, 1, OUTPUT_DIM), lambda i: (i, 0, 0)),
        compiler_params=pltpu.CompilerParams(
            dimension_semantics=("parallel",)),
    )(x, params["proj_w"], params["proj_b"], params["W"], params["SCALE"],
      params["SHIFT"], params["out_w"], params["out_b"])
    return out[:, 0, :]


# --------------------------- parameters ---------------------------

def init_params(key, input_dim):
    f = NB_FILTERS
    k = KERNEL_SIZE
    nb = N_BLOCKS
    keys = jax.random.split(key, 5)

    proj_w = jax.random.normal(keys[0], (input_dim, f), jnp.float32) / math.sqrt(input_dim)
    proj_b = 0.1 * jax.random.normal(keys[1], (1, f), jnp.float32)

    kw, kb, kg, kbeta, km, kv = jax.random.split(keys[2], 6)
    w = jax.random.normal(kw, (nb, 2, k, f, f), jnp.float32) / math.sqrt(k * f)
    bias = 0.05 * jax.random.normal(kb, (nb, 2, f), jnp.float32)
    gamma = 1.0 + 0.1 * jax.random.normal(kg, (nb, 2, f), jnp.float32)
    beta = 0.1 * jax.random.normal(kbeta, (nb, 2, f), jnp.float32)
    mean = 0.1 * jax.random.normal(km, (nb, 2, f), jnp.float32)
    var = 1.0 + 0.1 * jnp.abs(jax.random.normal(kv, (nb, 2, f), jnp.float32))

    # fold conv bias + eval-mode BatchNorm into a per-channel affine
    scale = gamma / jnp.sqrt(var + BN_EPS)
    shift = (bias - mean) * scale + beta

    out_w = jax.random.normal(keys[3], (f, OUTPUT_DIM), jnp.float32) / math.sqrt(f)
    out_b = 0.1 * jax.random.normal(keys[4], (1, OUTPUT_DIM), jnp.float32)

    return {
        "proj_w": proj_w, "proj_b": proj_b,
        "W": w.reshape(nb, 2, k * f, f),          # taps flattened into the contraction dim
        "SCALE": scale.reshape(nb, 2, 1, f),
        "SHIFT": shift.reshape(nb, 2, 1, f),
        "out_w": out_w, "out_b": out_b,
    }


# --------------------------- pure-JAX reference ---------------------------

def tcn_forward_ref(params, x):
    b, t, _ = x.shape
    f = NB_FILTERS
    k = KERNEL_SIZE
    hp = jax.lax.Precision.HIGHEST

    h = jnp.einsum("btc,cf->btf", x, params["proj_w"], precision=hp) + params["proj_b"][0]

    def conv_bn_relu(hh, blk, ci, d):
        pad = (k - 1) * d
        hpad = jnp.pad(hh, ((0, 0), (pad, 0), (0, 0)))
        acc = jnp.zeros((b, t, f), jnp.float32)
        for j in range(k):
            wj = params["W"][blk, ci, j * f:(j + 1) * f, :]
            acc = acc + jnp.einsum("btc,cf->btf", hpad[:, j * d:j * d + t, :], wj,
                                   precision=hp)
        y = acc * params["SCALE"][blk, ci, 0] + params["SHIFT"][blk, ci, 0]
        return jnp.maximum(y, 0.0)

    skip_sum = jnp.zeros((b, t, f), jnp.float32)
    for blk, d in enumerate(DIL_LIST):
        h1 = conv_bn_relu(h, blk, 0, d)
        y2 = conv_bn_relu(h1, blk, 1, d)
        skip = y2 + h
        skip_sum = skip_sum + skip
        h = jnp.maximum(skip, 0.0)

    last = skip_sum[:, -1, :]
    return jnp.dot(last, params["out_w"], precision=hp) + params["out_b"][0]


# --------------------------- main ---------------------------

if __name__ == "__main__":
    B, T, INPUT_DIM = 2, 32, 8
    key = jax.random.PRNGKey(0)
    kp, kx = jax.random.split(key)
    params = init_params(kp, INPUT_DIM)
    x = jax.random.normal(kx, (B, T, INPUT_DIM), jnp.float32)

    out = tcn_forward(params, x)
    out = jax.block_until_ready(out)
    assert out.shape == (B, OUTPUT_DIM), out.shape

    ref = tcn_forward_ref(params, x)
    rel_err = jnp.max(jnp.abs(out - ref)) / (1.0 + jnp.max(jnp.abs(ref)))
    assert bool(rel_err < 2e-3), f"mismatch vs reference: {rel_err}"

    print("KERNEL_OK")
</pallas_src>

<mosaic_0001>
module attributes {stable_mosaic.version = 11 : i64} {
  func.func @_tcn_fused_kernel(%arg0: i32, %arg1: memref<2x32x8xf32, #tpu.memory_space<vmem>>, %arg2: memref<8x32xf32, #tpu.memory_space<vmem>>, %arg3: memref<1x32xf32, #tpu.memory_space<vmem>>, %arg4: memref<12x2x96x32xf32, #tpu.memory_space<vmem>>, %arg5: memref<12x2x1x32xf32, #tpu.memory_space<vmem>>, %arg6: memref<12x2x1x32xf32, #tpu.memory_space<vmem>>, %arg7: memref<32x7xf32, #tpu.memory_space<vmem>>, %arg8: memref<1x7xf32, #tpu.memory_space<vmem>>, %arg9: memref<2x1x7xf32, #tpu.memory_space<vmem>>) attributes {dimension_semantics = [#tpu.dimension_semantics<parallel>], iteration_bounds = array<i64: 1>, scalar_prefetch = 0 : i64, scratch_operands = 0 : i64, tpu.core_type = #tpu.core_type<tc>, window_params = [{transform_indices = @transform_0, window_bounds = array<i64: 2, 32, 8>}, {pipeline_mode = #tpu.pipeline_mode<synchronous>, transform_indices = @transform_1, window_bounds = array<i64: 8, 32>}, {pipeline_mode = #tpu.pipeline_mode<synchronous>, transform_indices = @transform_2, window_bounds = array<i64: 1, 32>}, {pipeline_mode = #tpu.pipeline_mode<synchronous>, transform_indices = @transform_3, window_bounds = array<i64: 12, 2, 96, 32>}, {pipeline_mode = #tpu.pipeline_mode<synchronous>, transform_indices = @transform_4, window_bounds = array<i64: 12, 2, 1, 32>}, {pipeline_mode = #tpu.pipeline_mode<synchronous>, transform_indices = @transform_5, window_bounds = array<i64: 12, 2, 1, 32>}, {pipeline_mode = #tpu.pipeline_mode<synchronous>, transform_indices = @transform_6, window_bounds = array<i64: 32, 7>}, {pipeline_mode = #tpu.pipeline_mode<synchronous>, transform_indices = @transform_7, window_bounds = array<i64: 1, 7>}, {transform_indices = @transform_8, window_bounds = array<i64: 2, 1, 7>}]} {
    %c0 = arith.constant 0 : index
    %c0_0 = arith.constant 0 : index
    %c0_1 = arith.constant 0 : index
    %0 = vector.load %arg1[%c0, %c0_0, %c0_1] : memref<2x32x8xf32, #tpu.memory_space<vmem>>, vector<2x32x8xf32>
    %1 = vector.shape_cast %0 : vector<2x32x8xf32> to vector<64x8xf32>
    %c0_2 = arith.constant 0 : index
    %c0_3 = arith.constant 0 : index
    %2 = vector.load %arg2[%c0_2, %c0_3] : memref<8x32xf32, #tpu.memory_space<vmem>>, vector<8x32xf32>
    %cst = arith.constant dense<0.000000e+00> : vector<64x32xf32>
    %3 = tpu.matmul %1, %2, %cst {dimension_numbers = #tpu.dot_dimension_numbers<[1], [0], [0], [1], [0, 0, 1, 1], [], []>} : vector<64x8xf32>, vector<8x32xf32>, vector<64x32xf32> -> vector<64x32xf32>
    %c0_4 = arith.constant 0 : index
    %c0_5 = arith.constant 0 : index
    %4 = vector.load %arg3[%c0_4, %c0_5] : memref<1x32xf32, #tpu.memory_space<vmem>>, vector<1x32xf32>
    %5 = vector.broadcast %4 : vector<1x32xf32> to vector<64x32xf32>
    %6 = arith.addf %3, %5 : vector<64x32xf32>
    %cst_6 = arith.constant 0.000000e+00 : f32
    %7 = vector.broadcast %cst_6 : f32 to vector<2x32xf32>
    %c0_7 = arith.constant 0 : index
    %c0_8 = arith.constant 0 : index
    %c0_9 = arith.constant 0 : index
    %c0_10 = arith.constant 0 : index
    %8 = vector.load %arg4[%c0_7, %c0_8, %c0_9, %c0_10] : memref<12x2x96x32xf32, #tpu.memory_space<vmem>>, vector<1x1x32x32xf32>
    %9 = vector.shape_cast %8 : vector<1x1x32x32xf32> to vector<32x32xf32>
    %10 = vector.shape_cast %6 : vector<64x32xf32> to vector<2x32x32xf32>
    %cst_11 = arith.constant 0.000000e+00 : f32
    %11 = vector.broadcast %cst_11 : f32 to vector<2x2x32xf32>
    %12 = vector.extract_strided_slice %10 {offsets = [0, 0, 0], sizes = [2, 30, 32], strides = [1, 1, 1]} : vector<2x32x32xf32> to vector<2x30x32xf32>
    %13 = tpu.concatenate %11, %12 in 1 : vector<2x2x32xf32>, vector<2x30x32xf32> -> vector<2x32x32xf32>
    %14 = vector.shape_cast %13 : vector<2x32x32xf32> to vector<64x32xf32>
    %cst_12 = arith.constant dense<0.000000e+00> : vector<64x32xf32>
    %15 = tpu.matmul %14, %9, %cst_12 {dimension_numbers = #tpu.dot_dimension_numbers<[1], [0], [0], [1], [0, 0, 1, 1], [], []>} : vector<64x32xf32>, vector<32x32xf32>, vector<64x32xf32> -> vector<64x32xf32>
    %c0_13 = arith.constant 0 : index
    %c0_14 = arith.constant 0 : index
    %c32 = arith.constant 32 : index
    %c0_15 = arith.constant 0 : index
    %16 = vector.load %arg4[%c0_13, %c0_14, %c32, %c0_15] : memref<12x2x96x32xf32, #tpu.memory_space<vmem>>, vector<1x1x32x32xf32>
    %17 = vector.shape_cast %16 : vector<1x1x32x32xf32> to vector<32x32xf32>
    %18 = vector.shape_cast %6 : vector<64x32xf32> to vector<2x32x32xf32>
    %cst_16 = arith.constant 0.000000e+00 : f32
    %19 = vector.broadcast %cst_16 : f32 to vector<2x1x32xf32>
    %20 = vector.extract_strided_slice %18 {offsets = [0, 0, 0], sizes = [2, 31, 32], strides = [1, 1, 1]} : vector<2x32x32xf32> to vector<2x31x32xf32>
    %21 = tpu.concatenate %19, %20 in 1 : vector<2x1x32xf32>, vector<2x31x32xf32> -> vector<2x32x32xf32>
    %22 = vector.shape_cast %21 : vector<2x32x32xf32> to vector<64x32xf32>
    %cst_17 = arith.constant dense<0.000000e+00> : vector<64x32xf32>
    %23 = tpu.matmul %22, %17, %cst_17 {dimension_numbers = #tpu.dot_dimension_numbers<[1], [0], [0], [1], [0, 0, 1, 1], [], []>} : vector<64x32xf32>, vector<32x32xf32>, vector<64x32xf32> -> vector<64x32xf32>
    %24 = arith.addf %15, %23 : vector<64x32xf32>
    %c0_18 = arith.constant 0 : index
    %c0_19 = arith.constant 0 : index
    %c64 = arith.constant 64 : index
    %c0_20 = arith.constant 0 : index
    %25 = vector.load %arg4[%c0_18, %c0_19, %c64, %c0_20] : memref<12x2x96x32xf32, #tpu.memory_space<vmem>>, vector<1x1x32x32xf32>
    %26 = vector.shape_cast %25 : vector<1x1x32x32xf32> to vector<32x32xf32>
    %cst_21 = arith.constant dense<0.000000e+00> : vector<64x32xf32>
    %27 = tpu.matmul %6, %26, %cst_21 {dimension_numbers = #tpu.dot_dimension_numbers<[1], [0], [0], [1], [0, 0, 1, 1], [], []>} : vector<64x32xf32>, vector<32x32xf32>, vector<64x32xf32> -> vector<64x32xf32>
    %28 = arith.addf %24, %27 : vector<64x32xf32>
    %c0_22 = arith.constant 0 : index
    %c0_23 = arith.constant 0 : index
    %c0_24 = arith.constant 0 : index
    %c0_25 = arith.constant 0 : index
    %29 = vector.load %arg5[%c0_22, %c0_23, %c0_24, %c0_25] : memref<12x2x1x32xf32, #tpu.memory_space<vmem>>, vector<1x1x1x32xf32>
    %30 = vector.shape_cast %29 : vector<1x1x1x32xf32> to vector<1x32xf32>
    %31 = vector.broadcast %30 : vector<1x32xf32> to vector<64x32xf32>
    %32 = arith.mulf %28, %31 : vector<64x32xf32>
    %c0_26 = arith.constant 0 : index
    %c0_27 = arith.constant 0 : index
    %c0_28 = arith.constant 0 : index
    %c0_29 = arith.constant 0 : index
    %33 = vector.load %arg6[%c0_26, %c0_27, %c0_28, %c0_29] : memref<12x2x1x32xf32, #tpu.memory_space<vmem>>, vector<1x1x1x32xf32>
    %34 = vector.shape_cast %33 : vector<1x1x1x32xf32> to vector<1x32xf32>
    %35 = vector.broadcast %34 : vector<1x32xf32> to vector<64x32xf32>
    %36 = arith.addf %32, %35 : vector<64x32xf32>
    %cst_30 = arith.constant 0.000000e+00 : f32
    %37 = vector.broadcast %cst_30 : f32 to vector<64x32xf32>
    %38 = arith.maximumf %36, %37 : vector<64x32xf32>
    %c0_31 = arith.constant 0 : index
    %c1 = arith.constant 1 : index
    %c0_32 = arith.constant 0 : index
    %c0_33 = arith.constant 0 : index
    %39 = vector.load %arg4[%c0_31, %c1, %c0_32, %c0_33] : memref<12x2x96x32xf32, #tpu.memory_space<vmem>>, vector<1x1x32x32xf32>
    %40 = vector.shape_cast %39 : vector<1x1x32x32xf32> to vector<32x32xf32>
    %41 = vector.shape_cast %38 : vector<64x32xf32> to vector<2x32x32xf32>
    %cst_34 = arith.constant 0.000000e+00 : f32
    %42 = vector.broadcast %cst_34 : f32 to vector<2x2x32xf32>
    %43 = vector.extract_strided_slice %41 {offsets = [0, 0, 0], sizes = [2, 30, 32], strides = [1, 1, 1]} : vector<2x32x32xf32> to vector<2x30x32xf32>
    %44 = tpu.concatenate %42, %43 in 1 : vector<2x2x32xf32>, vector<2x30x32xf32> -> vector<2x32x32xf32>
    %45 = vector.shape_cast %44 : vector<2x32x32xf32> to vector<64x32xf32>
    %cst_35 = arith.constant dense<0.000000e+00> : vector<64x32xf32>
    %46 = tpu.matmul %45, %40, %cst_35 {dimension_numbers = #tpu.dot_dimension_numbers<[1], [0], [0], [1], [0, 0, 1, 1], [], []>} : vector<64x32xf32>, vector<32x32xf32>, vector<64x32xf32> -> vector<64x32xf32>
    %c0_36 = arith.constant 0 : index
    %c1_37 = arith.constant 1 : index
    %c32_38 = arith.constant 32 : index
    %c0_39 = arith.constant 0 : index
    %47 = vector.load %arg4[%c0_36, %c1_37, %c32_38, %c0_39] : memref<12x2x96x32xf32, #tpu.memory_space<vmem>>, vector<1x1x32x32xf32>
    %48 = vector.shape_cast %47 : vector<1x1x32x32xf32> to vector<32x32xf32>
    %49 = vector.shape_cast %38 : vector<64x32xf32> to vector<2x32x32xf32>
    %cst_40 = arith.constant 0.000000e+00 : f32
    %50 = vector.broadcast %cst_40 : f32 to vector<2x1x32xf32>
    %51 = vector.extract_strided_slice %49 {offsets = [0, 0, 0], sizes = [2, 31, 32], strides = [1, 1, 1]} : vector<2x32x32xf32> to vector<2x31x32xf32>
    %52 = tpu.concatenate %50, %51 in 1 : vector<2x1x32xf32>, vector<2x31x32xf32> -> vector<2x32x32xf32>
    %53 = vector.shape_cast %52 : vector<2x32x32xf32> to vector<64x32xf32>
    %cst_41 = arith.constant dense<0.000000e+00> : vector<64x32xf32>
    %54 = tpu.matmul %53, %48, %cst_41 {dimension_numbers = #tpu.dot_dimension_numbers<[1], [0], [0], [1], [0, 0, 1, 1], [], []>} : vector<64x32xf32>, vector<32x32xf32>, vector<64x32xf32> -> vector<64x32xf32>
    %55 = arith.addf %46, %54 : vector<64x32xf32>
    %c0_42 = arith.constant 0 : index
    %c1_43 = arith.constant 1 : index
    %c64_44 = arith.constant 64 : index
    %c0_45 = arith.constant 0 : index
    %56 = vector.load %arg4[%c0_42, %c1_43, %c64_44, %c0_45] : memref<12x2x96x32xf32, #tpu.memory_space<vmem>>, vector<1x1x32x32xf32>
    %57 = vector.shape_cast %56 : vector<1x1x32x32xf32> to vector<32x32xf32>
    %cst_46 = arith.constant dense<0.000000e+00> : vector<64x32xf32>
    %58 = tpu.matmul %38, %57, %cst_46 {dimension_numbers = #tpu.dot_dimension_numbers<[1], [0], [0], [1], [0, 0, 1, 1], [], []>} : vector<64x32xf32>, vector<32x32xf32>, vector<64x32xf32> -> vector<64x32xf32>
    %59 = arith.addf %55, %58 : vector<64x32xf32>
    %c0_47 = arith.constant 0 : index
    %c1_48 = arith.constant 1 : index
    %c0_49 = arith.constant 0 : index
    %c0_50 = arith.constant 0 : index
    %60 = vector.load %arg5[%c0_47, %c1_48, %c0_49, %c0_50] : memref<12x2x1x32xf32, #tpu.memory_space<vmem>>, vector<1x1x1x32xf32>
    %61 = vector.shape_cast %60 : vector<1x1x1x32xf32> to vector<1x32xf32>
    %62 = vector.broadcast %61 : vector<1x32xf32> to vector<64x32xf32>
    %63 = arith.mulf %59, %62 : vector<64x32xf32>
    %c0_51 = arith.constant 0 : index
    %c1_52 = arith.constant 1 : index
    %c0_53 = arith.constant 0 : index
    %c0_54 = arith.constant 0 : index
    %64 = vector.load %arg6[%c0_51, %c1_52, %c0_53, %c0_54] : memref<12x2x1x32xf32, #tpu.memory_space<vmem>>, vector<1x1x1x32xf32>
    %65 = vector.shape_cast %64 : vector<1x1x1x32xf32> to vector<1x32xf32>
    %66 = vector.broadcast %65 : vector<1x32xf32> to vector<64x32xf32>
    %67 = arith.addf %63, %66 : vector<64x32xf32>
    %cst_55 = arith.constant 0.000000e+00 : f32
    %68 = vector.broadcast %cst_55 : f32 to vector<64x32xf32>
    %69 = arith.maximumf %67, %68 : vector<64x32xf32>
    %70 = arith.addf %69, %6 : vector<64x32xf32>
    %71 = vector.shape_cast %70 : vector<64x32xf32> to vector<2x32x32xf32>
    %72 = vector.extract_strided_slice %71 {offsets = [0, 31, 0], sizes = [2, 1, 32], strides = [1, 1, 1]} : vector<2x32x32xf32> to vector<2x1x32xf32>
    %73 = vector.shape_cast %72 : vector<2x1x32xf32> to vector<2x32xf32>
    %74 = arith.addf %7, %73 : vector<2x32xf32>
    %cst_56 = arith.constant 0.000000e+00 : f32
    %75 = vector.broadcast %cst_56 : f32 to vector<64x32xf32>
    %76 = arith.maximumf %70, %75 : vector<64x32xf32>
    %c1_57 = arith.constant 1 : index
    %c0_58 = arith.constant 0 : index
    %c0_59 = arith.constant 0 : index
    %c0_60 = arith.constant 0 : index
    %77 = vector.load %arg4[%c1_57, %c0_58, %c0_59, %c0_60] : memref<12x2x96x32xf32, #tpu.memory_space<vmem>>, vector<1x1x32x32xf32>
    %78 = vector.shape_cast %77 : vector<1x1x32x32xf32> to vector<32x32xf32>
    %79 = vector.shape_cast %76 : vector<64x32xf32> to vector<2x32x32xf32>
    %cst_61 = arith.constant 0.000000e+00 : f32
    %80 = vector.broadcast %cst_61 : f32 to vector<2x4x32xf32>
    %81 = vector.extract_strided_slice %79 {offsets = [0, 0, 0], sizes = [2, 28, 32], strides = [1, 1, 1]} : vector<2x32x32xf32> to vector<2x28x32xf32>
    %82 = tpu.concatenate %80, %81 in 1 : vector<2x4x32xf32>, vector<2x28x32xf32> -> vector<2x32x32xf32>
    %83 = vector.shape_cast %82 : vector<2x32x32xf32> to vector<64x32xf32>
    %cst_62 = arith.constant dense<0.000000e+00> : vector<64x32xf32>
    %84 = tpu.matmul %83, %78, %cst_62 {dimension_numbers = #tpu.dot_dimension_numbers<[1], [0], [0], [1], [0, 0, 1, 1], [], []>} : vector<64x32xf32>, vector<32x32xf32>, vector<64x32xf32> -> vector<64x32xf32>
    %c1_63 = arith.constant 1 : index
    %c0_64 = arith.constant 0 : index
    %c32_65 = arith.constant 32 : index
    %c0_66 = arith.constant 0 : index
    %85 = vector.load %arg4[%c1_63, %c0_64, %c32_65, %c0_66] : memref<12x2x96x32xf32, #tpu.memory_space<vmem>>, vector<1x1x32x32xf32>
    %86 = vector.shape_cast %85 : vector<1x1x32x32xf32> to vector<32x32xf32>
    %87 = vector.shape_cast %76 : vector<64x32xf32> to vector<2x32x32xf32>
    %cst_67 = arith.constant 0.000000e+00 : f32
    %88 = vector.broadcast %cst_67 : f32 to vector<2x2x32xf32>
    %89 = vector.extract_strided_slice %87 {offsets = [0, 0, 0], sizes = [2, 30, 32], strides = [1, 1, 1]} : vector<2x32x32xf32> to vector<2x30x32xf32>
    %90 = tpu.concatenate %88, %89 in 1 : vector<2x2x32xf32>, vector<2x30x32xf32> -> vector<2x32x32xf32>
    %91 = vector.shape_cast %90 : vector<2x32x32xf32> to vector<64x32xf32>
    %cst_68 = arith.constant dense<0.000000e+00> : vector<64x32xf32>
    %92 = tpu.matmul %91, %86, %cst_68 {dimension_numbers = #tpu.dot_dimension_numbers<[1], [0], [0], [1], [0, 0, 1, 1], [], []>} : vector<64x32xf32>, vector<32x32xf32>, vector<64x32xf32> -> vector<64x32xf32>
    %93 = arith.addf %84, %92 : vector<64x32xf32>
    %c1_69 = arith.constant 1 : index
    %c0_70 = arith.constant 0 : index
    %c64_71 = arith.constant 64 : index
    %c0_72 = arith.constant 0 : index
    %94 = vector.load %arg4[%c1_69, %c0_70, %c64_71, %c0_72] : memref<12x2x96x32xf32, #tpu.memory_space<vmem>>, vector<1x1x32x32xf32>
    %95 = vector.shape_cast %94 : vector<1x1x32x32xf32> to vector<32x32xf32>
    %cst_73 = arith.constant dense<0.000000e+00> : vector<64x32xf32>
    %96 = tpu.matmul %76, %95, %cst_73 {dimension_numbers = #tpu.dot_dimension_numbers<[1], [0], [0], [1], [0, 0, 1, 1], [], []>} : vector<64x32xf32>, vector<32x32xf32>, vector<64x32xf32> -> vector<64x32xf32>
    %97 = arith.addf %93, %96 : vector<64x32xf32>
    %c1_74 = arith.constant 1 : index
    %c0_75 = arith.constant 0 : index
    %c0_76 = arith.constant 0 : index
    %c0_77 = arith.constant 0 : index
    %98 = vector.load %arg5[%c1_74, %c0_75, %c0_76, %c0_77] : memref<12x2x1x32xf32, #tpu.memory_space<vmem>>, vector<1x1x1x32xf32>
    %99 = vector.shape_cast %98 : vector<1x1x1x32xf32> to vector<1x32xf32>
    %100 = vector.broadcast %99 : vector<1x32xf32> to vector<64x32xf32>
    %101 = arith.mulf %97, %100 : vector<64x32xf32>
    %c1_78 = arith.constant 1 : index
    %c0_79 = arith.constant 0 : index
    %c0_80 = arith.constant 0 : index
    %c0_81 = arith.constant 0 : index
    %102 = vector.load %arg6[%c1_78, %c0_79, %c0_80, %c0_81] : memref<12x2x1x32xf32, #tpu.memory_space<vmem>>, vector<1x1x1x32xf32>
    %103 = vector.shape_cast %102 : vector<1x1x1x32xf32> to vector<1x32xf32>
    %104 = vector.broadcast %103 : vector<1x32xf32> to vector<64x32xf32>
    %105 = arith.addf %101, %104 : vector<64x32xf32>
    %cst_82 = arith.constant 0.000000e+00 : f32
    %106 = vector.broadcast %cst_82 : f32 to vector<64x32xf32>
    %107 = arith.maximumf %105, %106 : vector<64x32xf32>
    %c1_83 = arith.constant 1 : index
    %c1_84 = arith.constant 1 : index
    %c0_85 = arith.constant 0 : index
    %c0_86 = arith.constant 0 : index
    %108 = vector.load %arg4[%c1_83, %c1_84, %c0_85, %c0_86] : memref<12x2x96x32xf32, #tpu.memory_space<vmem>>, vector<1x1x32x32xf32>
    %109 = vector.shape_cast %108 : vector<1x1x32x32xf32> to vector<32x32xf32>
    %110 = vector.shape_cast %107 : vector<64x32xf32> to vector<2x32x32xf32>
    %cst_87 = arith.constant 0.000000e+00 : f32
    %111 = vector.broadcast %cst_87 : f32 to vector<2x4x32xf32>
    %112 = vector.extract_strided_slice %110 {offsets = [0, 0, 0], sizes = [2, 28, 32], strides = [1, 1, 1]} : vector<2x32x32xf32> to vector<2x28x32xf32>
    %113 = tpu.concatenate %111, %112 in 1 : vector<2x4x32xf32>, vector<2x28x32xf32> -> vector<2x32x32xf32>
    %114 = vector.shape_cast %113 : vector<2x32x32xf32> to vector<64x32xf32>
    %cst_88 = arith.constant dense<0.000000e+00> : vector<64x32xf32>
    %115 = tpu.matmul %114, %109, %cst_88 {dimension_numbers = #tpu.dot_dimension_numbers<[1], [0], [0], [1], [0, 0, 1, 1], [], []>} : vector<64x32xf32>, vector<32x32xf32>, vector<64x32xf32> -> vector<64x32xf32>
    %c1_89 = arith.constant 1 : index
    %c1_90 = arith.constant 1 : index
    %c32_91 = arith.constant 32 : index
    %c0_92 = arith.constant 0 : index
    %116 = vector.load %arg4[%c1_89, %c1_90, %c32_91, %c0_92] : memref<12x2x96x32xf32, #tpu.memory_space<vmem>>, vector<1x1x32x32xf32>
    %117 = vector.shape_cast %116 : vector<1x1x32x32xf32> to vector<32x32xf32>
    %118 = vector.shape_cast %107 : vector<64x32xf32> to vector<2x32x32xf32>
    %cst_93 = arith.constant 0.000000e+00 : f32
    %119 = vector.broadcast %cst_93 : f32 to vector<2x2x32xf32>
    %120 = vector.extract_strided_slice %118 {offsets = [0, 0, 0], sizes = [2, 30, 32], strides = [1, 1, 1]} : vector<2x32x32xf32> to vector<2x30x32xf32>
    %121 = tpu.concatenate %119, %120 in 1 : vector<2x2x32xf32>, vector<2x30x32xf32> -> vector<2x32x32xf32>
    %122 = vector.shape_cast %121 : vector<2x32x32xf32> to vector<64x32xf32>
    %cst_94 = arith.constant dense<0.000000e+00> : vector<64x32xf32>
    %123 = tpu.matmul %122, %117, %cst_94 {dimension_numbers = #tpu.dot_dimension_numbers<[1], [0], [0], [1], [0, 0, 1, 1], [], []>} : vector<64x32xf32>, vector<32x32xf32>, vector<64x32xf32> -> vector<64x32xf32>
    %124 = arith.addf %115, %123 : vector<64x32xf32>
    %c1_95 = arith.constant 1 : index
    %c1_96 = arith.constant 1 : index
    %c64_97 = arith.constant 64 : index
    %c0_98 = arith.constant 0 : index
    %125 = vector.load %arg4[%c1_95, %c1_96, %c64_97, %c0_98] : memref<12x2x96x32xf32, #tpu.memory_space<vmem>>, vector<1x1x32x32xf32>
    %126 = vector.shape_cast %125 : vector<1x1x32x32xf32> to vector<32x32xf32>
    %cst_99 = arith.constant dense<0.000000e+00> : vector<64x32xf32>
    %127 = tpu.matmul %107, %126, %cst_99 {dimension_numbers = #tpu.dot_dimension_numbers<[1], [0], [0], [1], [0, 0, 1, 1], [], []>} : vector<64x32xf32>, vector<32x32xf32>, vector<64x32xf32> -> vector<64x32xf32>
    %128 = arith.addf %124, %127 : vector<64x32xf32>
    %c1_100 = arith.constant 1 : index
    %c1_101 = arith.constant 1 : index
    %c0_102 = arith.constant 0 : index
    %c0_103 = arith.constant 0 : index
    %129 = vector.load %arg5[%c1_100, %c1_101, %c0_102, %c0_103] : memref<12x2x1x32xf32, #tpu.memory_space<vmem>>, vector<1x1x1x32xf32>
    %130 = vector.shape_cast %129 : vector<1x1x1x32xf32> to vector<1x32xf32>
    %131 = vector.broadcast %130 : vector<1x32xf32> to vector<64x32xf32>
    %132 = arith.mulf %128, %131 : vector<64x32xf32>
    %c1_104 = arith.constant 1 : index
    %c1_105 = arith.constant 1 : index
    %c0_106 = arith.constant 0 : index
    %c0_107 = arith.constant 0 : index
    %133 = vector.load %arg6[%c1_104, %c1_105, %c0_106, %c0_107] : memref<12x2x1x32xf32, #tpu.memory_space<vmem>>, vector<1x1x1x32xf32>
    %134 = vector.shape_cast %133 : vector<1x1x1x32xf32> to vector<1x32xf32>
    %135 = vector.broadcast %134 : vector<1x32xf32> to vector<64x32xf32>
    %136 = arith.addf %132, %135 : vector<64x32xf32>
    %cst_108 = arith.constant 0.000000e+00 : f32
    %137 = vector.broadcast %cst_108 : f32 to vector<64x32xf32>
    %138 = arith.maximumf %136, %137 : vector<64x32xf32>
    %139 = arith.addf %138, %76 : vector<64x32xf32>
    %140 = vector.shape_cast %139 : vector<64x32xf32> to vector<2x32x32xf32>
    %141 = vector.extract_strided_slice %140 {offsets = [0, 31, 0], sizes = [2, 1, 32], strides = [1, 1, 1]} : vector<2x32x32xf32> to vector<2x1x32xf32>
    %142 = vector.shape_cast %141 : vector<2x1x32xf32> to vector<2x32xf32>
    %143 = arith.addf %74, %142 : vector<2x32xf32>
    %cst_109 = arith.constant 0.000000e+00 : f32
    %144 = vector.broadcast %cst_109 : f32 to vector<64x32xf32>
    %145 = arith.maximumf %139, %144 : vector<64x32xf32>
    %c2 = arith.constant 2 : index
    %c0_110 = arith.constant 0 : index
    %c0_111 = arith.constant 0 : index
    %c0_112 = arith.constant 0 : index
    %146 = vector.load %arg4[%c2, %c0_110, %c0_111, %c0_112] : memref<12x2x96x32xf32, #tpu.memory_space<vmem>>, vector<1x1x32x32xf32>
    %147 = vector.shape_cast %146 : vector<1x1x32x32xf32> to vector<32x32xf32>
    %148 = vector.shape_cast %145 : vector<64x32xf32> to vector<2x32x32xf32>
    %cst_113 = arith.constant 0.000000e+00 : f32
    %149 = vector.broadcast %cst_113 : f32 to vector<2x8x32xf32>
    %150 = vector.extract_strided_slice %148 {offsets = [0, 0, 0], sizes = [2, 24, 32], strides = [1, 1, 1]} : vector<2x32x32xf32> to vector<2x24x32xf32>
    %151 = tpu.concatenate %149, %150 in 1 : vector<2x8x32xf32>, vector<2x24x32xf32> -> vector<2x32x32xf32>
    %152 = vector.shape_cast %151 : vector<2x32x32xf32> to vector<64x32xf32>
    %cst_114 = arith.constant dense<0.000000e+00> : vector<64x32xf32>
    %153 = tpu.matmul %152, %147, %cst_114 {dimension_numbers = #tpu.dot_dimension_numbers<[1], [0], [0], [1], [0, 0, 1, 1], [], []>} : vector<64x32xf32>, vector<32x32xf32>, vector<64x32xf32> -> vector<64x32xf32>
    %c2_115 = arith.constant 2 : index
    %c0_116 = arith.constant 0 : index
    %c32_117 = arith.constant 32 : index
    %c0_118 = arith.constant 0 : index
    %154 = vector.load %arg4[%c2_115, %c0_116, %c32_117, %c0_118] : memref<12x2x96x32xf32, #tpu.memory_space<vmem>>, vector<1x1x32x32xf32>
    %155 = vector.shape_cast %154 : vector<1x1x32x32xf32> to vector<32x32xf32>
    %156 = vector.shape_cast %145 : vector<64x32xf32> to vector<2x32x32xf32>
    %cst_119 = arith.constant 0.000000e+00 : f32
    %157 = vector.broadcast %cst_119 : f32 to vector<2x4x32xf32>
    %158 = vector.extract_strided_slice %156 {offsets = [0, 0, 0], sizes = [2, 28, 32], strides = [1, 1, 1]} : vector<2x32x32xf32> to vector<2x28x32xf32>
    %159 = tpu.concatenate %157, %158 in 1 : vector<2x4x32xf32>, vector<2x28x32xf32> -> vector<2x32x32xf32>
    %160 = vector.shape_cast %159 : vector<2x32x32xf32> to vector<64x32xf32>
    %cst_120 = arith.constant dense<0.000000e+00> : vector<64x32xf32>
    %161 = tpu.matmul %160, %155, %cst_120 {dimension_numbers = #tpu.dot_dimension_numbers<[1], [0], [0], [1], [0, 0, 1, 1], [], []>} : vector<64x32xf32>, vector<32x32xf32>, vector<64x32xf32> -> vector<64x32xf32>
    %162 = arith.addf %153, %161 : vector<64x32xf32>
    %c2_121 = arith.constant 2 : index
    %c0_122 = arith.constant 0 : index
    %c64_123 = arith.constant 64 : index
    %c0_124 = arith.constant 0 : index
    %163 = vector.load %arg4[%c2_121, %c0_122, %c64_123, %c0_124] : memref<12x2x96x32xf32, #tpu.memory_space<vmem>>, vector<1x1x32x32xf32>
    %164 = vector.shape_cast %163 : vector<1x1x32x32xf32> to vector<32x32xf32>
    %cst_125 = arith.constant dense<0.000000e+00> : vector<64x32xf32>
    %165 = tpu.matmul %145, %164, %cst_125 {dimension_numbers = #tpu.dot_dimension_numbers<[1], [0], [0], [1], [0, 0, 1, 1], [], []>} : vector<64x32xf32>, vector<32x32xf32>, vector<64x32xf32> -> vector<64x32xf32>
    %166 = arith.addf %162, %165 : vector<64x32xf32>
    %c2_126 = arith.constant 2 : index
    %c0_127 = arith.constant 0 : index
    %c0_128 = arith.constant 0 : index
    %c0_129 = arith.constant 0 : index
    %167 = vector.load %arg5[%c2_126, %c0_127, %c0_128, %c0_129] : memref<12x2x1x32xf32, #tpu.memory_space<vmem>>, vector<1x1x1x32xf32>
    %168 = vector.shape_cast %167 : vector<1x1x1x32xf32> to vector<1x32xf32>
    %169 = vector.broadcast %168 : vector<1x32xf32> to vector<64x32xf32>
    %170 = arith.mulf %166, %169 : vector<64x32xf32>
    %c2_130 = arith.constant 2 : index
    %c0_131 = arith.constant 0 : index
    %c0_132 = arith.constant 0 : index
    %c0_133 = arith.constant 0 : index
    %171 = vector.load %arg6[%c2_130, %c0_131, %c0_132, %c0_133] : memref<12x2x1x32xf32, #tpu.memory_space<vmem>>, vector<1x1x1x32xf32>
    %172 = vector.shape_cast %171 : vector<1x1x1x32xf32> to vector<1x32xf32>
    %173 = vector.broadcast %172 : vector<1x32xf32> to vector<64x32xf32>
    %174 = arith.addf %170, %173 : vector<64x32xf32>
    %cst_134 = arith.constant 0.000000e+00 : f32
    %175 = vector.broadcast %cst_134 : f32 to vector<64x32xf32>
    %176 = arith.maximumf %174, %175 : vector<64x32xf32>
    %c2_135 = arith.constant 2 : index
    %c1_136 = arith.constant 1 : index
    %c0_137 = arith.constant 0 : index
    %c0_138 = arith.constant 0 : index
    %177 = vector.load %arg4[%c2_135, %c1_136, %c0_137, %c0_138] : memref<12x2x96x32xf32, #tpu.memory_space<vmem>>, vector<1x1x32x32xf32>
    %178 = vector.shape_cast %177 : vector<1x1x32x32xf32> to vector<32x32xf32>
    %179 = vector.shape_cast %176 : vector<64x32xf32> to vector<2x32x32xf32>
    %cst_139 = arith.constant 0.000000e+00 : f32
    %180 = vector.broadcast %cst_139 : f32 to vector<2x8x32xf32>
    %181 = vector.extract_strided_slice %179 {offsets = [0, 0, 0], sizes = [2, 24, 32], strides = [1, 1, 1]} : vector<2x32x32xf32> to vector<2x24x32xf32>
    %182 = tpu.concatenate %180, %181 in 1 : vector<2x8x32xf32>, vector<2x24x32xf32> -> vector<2x32x32xf32>
    %183 = vector.shape_cast %182 : vector<2x32x32xf32> to vector<64x32xf32>
    %cst_140 = arith.constant dense<0.000000e+00> : vector<64x32xf32>
    %184 = tpu.matmul %183, %178, %cst_140 {dimension_numbers = #tpu.dot_dimension_numbers<[1], [0], [0], [1], [0, 0, 1, 1], [], []>} : vector<64x32xf32>, vector<32x32xf32>, vector<64x32xf32> -> vector<64x32xf32>
    %c2_141 = arith.constant 2 : index
    %c1_142 = arith.constant 1 : index
    %c32_143 = arith.constant 32 : index
    %c0_144 = arith.constant 0 : index
    %185 = vector.load %arg4[%c2_141, %c1_142, %c32_143, %c0_144] : memref<12x2x96x32xf32, #tpu.memory_space<vmem>>, vector<1x1x32x32xf32>
    %186 = vector.shape_cast %185 : vector<1x1x32x32xf32> to vector<32x32xf32>
    %187 = vector.shape_cast %176 : vector<64x32xf32> to vector<2x32x32xf32>
    %cst_145 = arith.constant 0.000000e+00 : f32
    %188 = vector.broadcast %cst_145 : f32 to vector<2x4x32xf32>
    %189 = vector.extract_strided_slice %187 {offsets = [0, 0, 0], sizes = [2, 28, 32], strides = [1, 1, 1]} : vector<2x32x32xf32> to vector<2x28x32xf32>
    %190 = tpu.concatenate %188, %189 in 1 : vector<2x4x32xf32>, vector<2x28x32xf32> -> vector<2x32x32xf32>
    %191 = vector.shape_cast %190 : vector<2x32x32xf32> to vector<64x32xf32>
    %cst_146 = arith.constant dense<0.000000e+00> : vector<64x32xf32>
    %192 = tpu.matmul %191, %186, %cst_146 {dimension_numbers = #tpu.dot_dimension_numbers<[1], [0], [0], [1], [0, 0, 1, 1], [], []>} : vector<64x32xf32>, vector<32x32xf32>, vector<64x32xf32> -> vector<64x32xf32>
    %193 = arith.addf %184, %192 : vector<64x32xf32>
    %c2_147 = arith.constant 2 : index
    %c1_148 = arith.constant 1 : index
    %c64_149 = arith.constant 64 : index
    %c0_150 = arith.constant 0 : index
    %194 = vector.load %arg4[%c2_147, %c1_148, %c64_149, %c0_150] : memref<12x2x96x32xf32, #tpu.memory_space<vmem>>, vector<1x1x32x32xf32>
    %195 = vector.shape_cast %194 : vector<1x1x32x32xf32> to vector<32x32xf32>
    %cst_151 = arith.constant dense<0.000000e+00> : vector<64x32xf32>
    %196 = tpu.matmul %176, %195, %cst_151 {dimension_numbers = #tpu.dot_dimension_numbers<[1], [0], [0], [1], [0, 0, 1, 1], [], []>} : vector<64x32xf32>, vector<32x32xf32>, vector<64x32xf32> -> vector<64x32xf32>
    %197 = arith.addf %193, %196 : vector<64x32xf32>
    %c2_152 = arith.constant 2 : index
    %c1_153 = arith.constant 1 : index
    %c0_154 = arith.constant 0 : index
    %c0_155 = arith.constant 0 : index
    %198 = vector.load %arg5[%c2_152, %c1_153, %c0_154, %c0_155] : memref<12x2x1x32xf32, #tpu.memory_space<vmem>>, vector<1x1x1x32xf32>
    %199 = vector.shape_cast %198 : vector<1x1x1x32xf32> to vector<1x32xf32>
    %200 = vector.broadcast %199 : vector<1x32xf32> to vector<64x32xf32>
    %201 = arith.mulf %197, %200 : vector<64x32xf32>
    %c2_156 = arith.constant 2 : index
    %c1_157 = arith.constant 1 : index
    %c0_158 = arith.constant 0 : index
    %c0_159 = arith.constant 0 : index
    %202 = vector.load %arg6[%c2_156, %c1_157, %c0_158, %c0_159] : memref<12x2x1x32xf32, #tpu.memory_space<vmem>>, vector<1x1x1x32xf32>
    %203 = vector.shape_cast %202 : vector<1x1x1x32xf32> to vector<1x32xf32>
    %204 = vector.broadcast %203 : vector<1x32xf32> to vector<64x32xf32>
    %205 = arith.addf %201, %204 : vector<64x32xf32>
    %cst_160 = arith.constant 0.000000e+00 : f32
    %206 = vector.broadcast %cst_160 : f32 to vector<64x32xf32>
    %207 = arith.maximumf %205, %206 : vector<64x32xf32>
    %208 = arith.addf %207, %145 : vector<64x32xf32>
    %209 = vector.shape_cast %208 : vector<64x32xf32> to vector<2x32x32xf32>
    %210 = vector.extract_strided_slice %209 {offsets = [0, 31, 0], sizes = [2, 1, 32], strides = [1, 1, 1]} : vector<2x32x32xf32> to vector<2x1x32xf32>
    %211 = vector.shape_cast %210 : vector<2x1x32xf32> to vector<2x32xf32>
    %212 = arith.addf %143, %211 : vector<2x32xf32>
    %cst_161 = arith.constant 0.000000e+00 : f32
    %213 = vector.broadcast %cst_161 : f32 to vector<64x32xf32>
    %214 = arith.maximumf %208, %213 : vector<64x32xf32>
    %c3 = arith.constant 3 : index
    %c0_162 = arith.constant 0 : index
    %c0_163 = arith.constant 0 : index
    %c0_164 = arith.constant 0 : index
    %215 = vector.load %arg4[%c3, %c0_162, %c0_163, %c0_164] : memref<12x2x96x32xf32, #tpu.memory_space<vmem>>, vector<1x1x32x32xf32>
    %216 = vector.shape_cast %215 : vector<1x1x32x32xf32> to vector<32x32xf32>
    %217 = vector.shape_cast %214 : vector<64x32xf32> to vector<2x32x32xf32>
    %cst_165 = arith.constant 0.000000e+00 : f32
    %218 = vector.broadcast %cst_165 : f32 to vector<2x16x32xf32>
    %219 = vector.extract_strided_slice %217 {offsets = [0, 0, 0], sizes = [2, 16, 32], strides = [1, 1, 1]} : vector<2x32x32xf32> to vector<2x16x32xf32>
    %220 = tpu.concatenate %218, %219 in 1 : vector<2x16x32xf32>, vector<2x16x32xf32> -> vector<2x32x32xf32>
    %221 = vector.shape_cast %220 : vector<2x32x32xf32> to vector<64x32xf32>
    %cst_166 = arith.constant dense<0.000000e+00> : vector<64x32xf32>
    %222 = tpu.matmul %221, %216, %cst_166 {dimension_numbers = #tpu.dot_dimension_numbers<[1], [0], [0], [1], [0, 0, 1, 1], [], []>} : vector<64x32xf32>, vector<32x32xf32>, vector<64x32xf32> -> vector<64x32xf32>
    %c3_167 = arith.constant 3 : index
    %c0_168 = arith.constant 0 : index
    %c32_169 = arith.constant 32 : index
    %c0_170 = arith.constant 0 : index
    %223 = vector.load %arg4[%c3_167, %c0_168, %c32_169, %c0_170] : memref<12x2x96x32xf32, #tpu.memory_space<vmem>>, vector<1x1x32x32xf32>
    %224 = vector.shape_cast %223 : vector<1x1x32x32xf32> to vector<32x32xf32>
    %225 = vector.shape_cast %214 : vector<64x32xf32> to vector<2x32x32xf32>
    %cst_171 = arith.constant 0.000000e+00 : f32
    %226 = vector.broadcast %cst_171 : f32 to vector<2x8x32xf32>
    %227 = vector.extract_strided_slice %225 {offsets = [0, 0, 0], sizes = [2, 24, 32], strides = [1, 1, 1]} : vector<2x32x32xf32> to vector<2x24x32xf32>
    %228 = tpu.concatenate %226, %227 in 1 : vector<2x8x32xf32>, vector<2x24x32xf32> -> vector<2x32x32xf32>
    %229 = vector.shape_cast %228 : vector<2x32x32xf32> to vector<64x32xf32>
    %cst_172 = arith.constant dense<0.000000e+00> : vector<64x32xf32>
    %230 = tpu.matmul %229, %224, %cst_172 {dimension_numbers = #tpu.dot_dimension_numbers<[1], [0], [0], [1], [0, 0, 1, 1], [], []>} : vector<64x32xf32>, vector<32x32xf32>, vector<64x32xf32> -> vector<64x32xf32>
    %231 = arith.addf %222, %230 : vector<64x32xf32>
    %c3_173 = arith.constant 3 : index
    %c0_174 = arith.constant 0 : index
    %c64_175 = arith.constant 64 : index
    %c0_176 = arith.constant 0 : index
    %232 = vector.load %arg4[%c3_173, %c0_174, %c64_175, %c0_176] : memref<12x2x96x32xf32, #tpu.memory_space<vmem>>, vector<1x1x32x32xf32>
    %233 = vector.shape_cast %232 : vector<1x1x32x32xf32> to vector<32x32xf32>
    %cst_177 = arith.constant dense<0.000000e+00> : vector<64x32xf32>
    %234 = tpu.matmul %214, %233, %cst_177 {dimension_numbers = #tpu.dot_dimension_numbers<[1], [0], [0], [1], [0, 0, 1, 1], [], []>} : vector<64x32xf32>, vector<32x32xf32>, vector<64x32xf32> -> vector<64x32xf32>
    %235 = arith.addf %231, %234 : vector<64x32xf32>
    %c3_178 = arith.constant 3 : index
    %c0_179 = arith.constant 0 : index
    %c0_180 = arith.constant 0 : index
    %c0_181 = arith.constant 0 : index
    %236 = vector.load %arg5[%c3_178, %c0_179, %c0_180, %c0_181] : memref<12x2x1x32xf32, #tpu.memory_space<vmem>>, vector<1x1x1x32xf32>
    %237 = vector.shape_cast %236 : vector<1x1x1x32xf32> to vector<1x32xf32>
    %238 = vector.broadcast %237 : vector<1x32xf32> to vector<64x32xf32>
    %239 = arith.mulf %235, %238 : vector<64x32xf32>
    %c3_182 = arith.constant 3 : index
    %c0_183 = arith.constant 0 : index
    %c0_184 = arith.constant 0 : index
    %c0_185 = arith.constant 0 : index
    %240 = vector.load %arg6[%c3_182, %c0_183, %c0_184, %c0_185] : memref<12x2x1x32xf32, #tpu.memory_space<vmem>>, vector<1x1x1x32xf32>
    %241 = vector.shape_cast %240 : vector<1x1x1x32xf32> to vector<1x32xf32>
    %242 = vector.broadcast %241 : vector<1x32xf32> to vector<64x32xf32>
    %243 = arith.addf %239, %242 : vector<64x32xf32>
    %cst_186 = arith.constant 0.000000e+00 : f32
    %244 = vector.broadcast %cst_186 : f32 to vector<64x32xf32>
    %245 = arith.maximumf %243, %244 : vector<64x32xf32>
    %c3_187 = arith.constant 3 : index
    %c1_188 = arith.constant 1 : index
    %c0_189 = arith.constant 0 : index
    %c0_190 = arith.constant 0 : index
    %246 = vector.load %arg4[%c3_187, %c1_188, %c0_189, %c0_190] : memref<12x2x96x32xf32, #tpu.memory_space<vmem>>, vector<1x1x32x32xf32>
    %247 = vector.shape_cast %246 : vector<1x1x32x32xf32> to vector<32x32xf32>
    %248 = vector.shape_cast %245 : vector<64x32xf32> to vector<2x32x32xf32>
    %cst_191 = arith.constant 0.000000e+00 : f32
    %249 = vector.broadcast %cst_191 : f32 to vector<2x16x32xf32>
    %250 = vector.extract_strided_slice %248 {offsets = [0, 0, 0], sizes = [2, 16, 32], strides = [1, 1, 1]} : vector<2x32x32xf32> to vector<2x16x32xf32>
    %251 = tpu.concatenate %249, %250 in 1 : vector<2x16x32xf32>, vector<2x16x32xf32> -> vector<2x32x32xf32>
    %252 = vector.shape_cast %251 : vector<2x32x32xf32> to vector<64x32xf32>
    %cst_192 = arith.constant dense<0.000000e+00> : vector<64x32xf32>
    %253 = tpu.matmul %252, %247, %cst_192 {dimension_numbers = #tpu.dot_dimension_numbers<[1], [0], [0], [1], [0, 0, 1, 1], [], []>} : vector<64x32xf32>, vector<32x32xf32>, vector<64x32xf32> -> vector<64x32xf32>
    %c3_193 = arith.constant 3 : index
    %c1_194 = arith.constant 1 : index
    %c32_195 = arith.constant 32 : index
    %c0_196 = arith.constant 0 : index
    %254 = vector.load %arg4[%c3_193, %c1_194, %c32_195, %c0_196] : memref<12x2x96x32xf32, #tpu.memory_space<vmem>>, vector<1x1x32x32xf32>
    %255 = vector.shape_cast %254 : vector<1x1x32x32xf32> to vector<32x32xf32>
    %256 = vector.shape_cast %245 : vector<64x32xf32> to vector<2x32x32xf32>
    %cst_197 = arith.constant 0.000000e+00 : f32
    %257 = vector.broadcast %cst_197 : f32 to vector<2x8x32xf32>
    %258 = vector.extract_strided_slice %256 {offsets = [0, 0, 0], sizes = [2, 24, 32], strides = [1, 1, 1]} : vector<2x32x32xf32> to vector<2x24x32xf32>
    %259 = tpu.concatenate %257, %258 in 1 : vector<2x8x32xf32>, vector<2x24x32xf32> -> vector<2x32x32xf32>
    %260 = vector.shape_cast %259 : vector<2x32x32xf32> to vector<64x32xf32>
    %cst_198 = arith.constant dense<0.000000e+00> : vector<64x32xf32>
    %261 = tpu.matmul %260, %255, %cst_198 {dimension_numbers = #tpu.dot_dimension_numbers<[1], [0], [0], [1], [0, 0, 1, 1], [], []>} : vector<64x32xf32>, vector<32x32xf32>, vector<64x32xf32> -> vector<64x32xf32>
    %262 = arith.addf %253, %261 : vector<64x32xf32>
    %c3_199 = arith.constant 3 : index
    %c1_200 = arith.constant 1 : index
    %c64_201 = arith.constant 64 : index
    %c0_202 = arith.constant 0 : index
    %263 = vector.load %arg4[%c3_199, %c1_200, %c64_201, %c0_202] : memref<12x2x96x32xf32, #tpu.memory_space<vmem>>, vector<1x1x32x32xf32>
    %264 = vector.shape_cast %263 : vector<1x1x32x32xf32> to vector<32x32xf32>
    %cst_203 = arith.constant dense<0.000000e+00> : vector<64x32xf32>
    %265 = tpu.matmul %245, %264, %cst_203 {dimension_numbers = #tpu.dot_dimension_numbers<[1], [0], [0], [1], [0, 0, 1, 1], [], []>} : vector<64x32xf32>, vector<32x32xf32>, vector<64x32xf32> -> vector<64x32xf32>
    %266 = arith.addf %262, %265 : vector<64x32xf32>
    %c3_204 = arith.constant 3 : index
    %c1_205 = arith.constant 1 : index
    %c0_206 = arith.constant 0 : index
    %c0_207 = arith.constant 0 : index
    %267 = vector.load %arg5[%c3_204, %c1_205, %c0_206, %c0_207] : memref<12x2x1x32xf32, #tpu.memory_space<vmem>>, vector<1x1x1x32xf32>
    %268 = vector.shape_cast %267 : vector<1x1x1x32xf32> to vector<1x32xf32>
    %269 = vector.broadcast %268 : vector<1x32xf32> to vector<64x32xf32>
    %270 = arith.mulf %266, %269 : vector<64x32xf32>
    %c3_208 = arith.constant 3 : index
    %c1_209 = arith.constant 1 : index
    %c0_210 = arith.constant 0 : index
    %c0_211 = arith.constant 0 : index
    %271 = vector.load %arg6[%c3_208, %c1_209, %c0_210, %c0_211] : memref<12x2x1x32xf32, #tpu.memory_space<vmem>>, vector<1x1x1x32xf32>
    %272 = vector.shape_cast %271 : vector<1x1x1x32xf32> to vector<1x32xf32>
    %273 = vector.broadcast %272 : vector<1x32xf32> to vector<64x32xf32>
    %274 = arith.addf %270, %273 : vector<64x32xf32>
    %cst_212 = arith.constant 0.000000e+00 : f32
    %275 = vector.broadcast %cst_212 : f32 to vector<64x32xf32>
    %276 = arith.maximumf %274, %275 : vector<64x32xf32>
    %277 = arith.addf %276, %214 : vector<64x32xf32>
    %278 = vector.shape_cast %277 : vector<64x32xf32> to vector<2x32x32xf32>
    %279 = vector.extract_strided_slice %278 {offsets = [0, 31, 0], sizes = [2, 1, 32], strides = [1, 1, 1]} : vector<2x32x32xf32> to vector<2x1x32xf32>
    %280 = vector.shape_cast %279 : vector<2x1x32xf32> to vector<2x32xf32>
    %281 = arith.addf %212, %280 : vector<2x32xf32>
    %cst_213 = arith.constant 0.000000e+00 : f32
    %282 = vector.broadcast %cst_213 : f32 to vector<64x32xf32>
    %283 = arith.maximumf %277, %282 : vector<64x32xf32>
    %c4 = arith.constant 4 : index
    %c0_214 = arith.constant 0 : index
    %c32_215 = arith.constant 32 : index
    %c0_216 = arith.constant 0 : index
    %284 = vector.load %arg4[%c4, %c0_214, %c32_215, %c0_216] : memref<12x2x96x32xf32, #tpu.memory_space<vmem>>, vector<1x1x32x32xf32>
    %285 = vector.shape_cast %284 : vector<1x1x32x32xf32> to vector<32x32xf32>
    %286 = vector.shape_cast %283 : vector<64x32xf32> to vector<2x32x32xf32>
    %cst_217 = arith.constant 0.000000e+00 : f32
    %287 = vector.broadcast %cst_217 : f32 to vector<2x16x32xf32>
    %288 = vector.extract_strided_slice %286 {offsets = [0, 0, 0], sizes = [2, 16, 32], strides = [1, 1, 1]} : vector<2x32x32xf32> to vector<2x16x32xf32>
    %289 = tpu.concatenate %287, %288 in 1 : vector<2x16x32xf32>, vector<2x16x32xf32> -> vector<2x32x32xf32>
    %290 = vector.shape_cast %289 : vector<2x32x32xf32> to vector<64x32xf32>
    %cst_218 = arith.constant dense<0.000000e+00> : vector<64x32xf32>
    %291 = tpu.matmul %290, %285, %cst_218 {dimension_numbers = #tpu.dot_dimension_numbers<[1], [0], [0], [1], [0, 0, 1, 1], [], []>} : vector<64x32xf32>, vector<32x32xf32>, vector<64x32xf32> -> vector<64x32xf32>
    %c4_219 = arith.constant 4 : index
    %c0_220 = arith.constant 0 : index
    %c64_221 = arith.constant 64 : index
    %c0_222 = arith.constant 0 : index
    %292 = vector.load %arg4[%c4_219, %c0_220, %c64_221, %c0_222] : memref<12x2x96x32xf32, #tpu.memory_space<vmem>>, vector<1x1x32x32xf32>
    %293 = vector.shape_cast %292 : vector<1x1x32x32xf32> to vector<32x32xf32>
    %cst_223 = arith.constant dense<0.000000e+00> : vector<64x32xf32>
    %294 = tpu.matmul %283, %293, %cst_223 {dimension_numbers = #tpu.dot_dimension_numbers<[1], [0], [0], [1], [0, 0, 1, 1], [], []>} : vector<64x32xf32>, vector<32x32xf32>, vector<64x32xf32> -> vector<64x32xf32>
    %295 = arith.addf %291, %294 : vector<64x32xf32>
    %c4_224 = arith.constant 4 : index
    %c0_225 = arith.constant 0 : index
    %c0_226 = arith.constant 0 : index
    %c0_227 = arith.constant 0 : index
    %296 = vector.load %arg5[%c4_224, %c0_225, %c0_226, %c0_227] : memref<12x2x1x32xf32, #tpu.memory_space<vmem>>, vector<1x1x1x32xf32>
    %297 = vector.shape_cast %296 : vector<1x1x1x32xf32> to vector<1x32xf32>
    %298 = vector.broadcast %297 : vector<1x32xf32> to vector<64x32xf32>
    %299 = arith.mulf %295, %298 : vector<64x32xf32>
    %c4_228 = arith.constant 4 : index
    %c0_229 = arith.constant 0 : index
    %c0_230 = arith.constant 0 : index
    %c0_231 = arith.constant 0 : index
    %300 = vector.load %arg6[%c4_228, %c0_229, %c0_230, %c0_231] : memref<12x2x1x32xf32, #tpu.memory_space<vmem>>, vector<1x1x1x32xf32>
    %301 = vector.shape_cast %300 : vector<1x1x1x32xf32> to vector<1x32xf32>
    %302 = vector.broadcast %301 : vector<1x32xf32> to vector<64x32xf32>
    %303 = arith.addf %299, %302 : vector<64x32xf32>
    %cst_232 = arith.constant 0.000000e+00 : f32
    %304 = vector.broadcast %cst_232 : f32 to vector<64x32xf32>
    %305 = arith.maximumf %303, %304 : vector<64x32xf32>
    %c4_233 = arith.constant 4 : index
    %c1_234 = arith.constant 1 : index
    %c32_235 = arith.constant 32 : index
    %c0_236 = arith.constant 0 : index
    %306 = vector.load %arg4[%c4_233, %c1_234, %c32_235, %c0_236] : memref<12x2x96x32xf32, #tpu.memory_space<vmem>>, vector<1x1x32x32xf32>
    %307 = vector.shape_cast %306 : vector<1x1x32x32xf32> to vector<32x32xf32>
    %308 = vector.shape_cast %305 : vector<64x32xf32> to vector<2x32x32xf32>
    %cst_237 = arith.constant 0.000000e+00 : f32
    %309 = vector.broadcast %cst_237 : f32 to vector<2x16x32xf32>
    %310 = vector.extract_strided_slice %308 {offsets = [0, 0, 0], sizes = [2, 16, 32], strides = [1, 1, 1]} : vector<2x32x32xf32> to vector<2x16x32xf32>
    %311 = tpu.concatenate %309, %310 in 1 : vector<2x16x32xf32>, vector<2x16x32xf32> -> vector<2x32x32xf32>
    %312 = vector.shape_cast %311 : vector<2x32x32xf32> to vector<64x32xf32>
    %cst_238 = arith.constant dense<0.000000e+00> : vector<64x32xf32>
    %313 = tpu.matmul %312, %307, %cst_238 {dimension_numbers = #tpu.dot_dimension_numbers<[1], [0], [0], [1], [0, 0, 1, 1], [], []>} : vector<64x32xf32>, vector<32x32xf32>, vector<64x32xf32> -> vector<64x32xf32>
    %c4_239 = arith.constant 4 : index
    %c1_240 = arith.constant 1 : index
    %c64_241 = arith.constant 64 : index
    %c0_242 = arith.constant 0 : index
    %314 = vector.load %arg4[%c4_239, %c1_240, %c64_241, %c0_242] : memref<12x2x96x32xf32, #tpu.memory_space<vmem>>, vector<1x1x32x32xf32>
    %315 = vector.shape_cast %314 : vector<1x1x32x32xf32> to vector<32x32xf32>
    %cst_243 = arith.constant dense<0.000000e+00> : vector<64x32xf32>
    %316 = tpu.matmul %305, %315, %cst_243 {dimension_numbers = #tpu.dot_dimension_numbers<[1], [0], [0], [1], [0, 0, 1, 1], [], []>} : vector<64x32xf32>, vector<32x32xf32>, vector<64x32xf32> -> vector<64x32xf32>
    %317 = arith.addf %313, %316 : vector<64x32xf32>
    %c4_244 = arith.constant 4 : index
    %c1_245 = arith.constant 1 : index
    %c0_246 = arith.constant 0 : index
    %c0_247 = arith.constant 0 : index
    %318 = vector.load %arg5[%c4_244, %c1_245, %c0_246, %c0_247] : memref<12x2x1x32xf32, #tpu.memory_space<vmem>>, vector<1x1x1x32xf32>
    %319 = vector.shape_cast %318 : vector<1x1x1x32xf32> to vector<1x32xf32>
    %320 = vector.broadcast %319 : vector<1x32xf32> to vector<64x32xf32>
    %321 = arith.mulf %317, %320 : vector<64x32xf32>
    %c4_248 = arith.constant 4 : index
    %c1_249 = arith.constant 1 : index
    %c0_250 = arith.constant 0 : index
    %c0_251 = arith.constant 0 : index
    %322 = vector.load %arg6[%c4_248, %c1_249, %c0_250, %c0_251] : memref<12x2x1x32xf32, #tpu.memory_space<vmem>>, vector<1x1x1x32xf32>
    %323 = vector.shape_cast %322 : vector<1x1x1x32xf32> to vector<1x32xf32>
    %324 = vector.broadcast %323 : vector<1x32xf32> to vector<64x32xf32>
    %325 = arith.addf %321, %324 : vector<64x32xf32>
    %cst_252 = arith.constant 0.000000e+00 : f32
    %326 = vector.broadcast %cst_252 : f32 to vector<64x32xf32>
    %327 = arith.maximumf %325, %326 : vector<64x32xf32>
    %328 = arith.addf %327, %283 : vector<64x32xf32>
    %329 = vector.shape_cast %328 : vector<64x32xf32> to vector<2x32x32xf32>
    %330 = vector.extract_strided_slice %329 {offsets = [0, 31, 0], sizes = [2, 1, 32], strides = [1, 1, 1]} : vector<2x32x32xf32> to vector<2x1x32xf32>
    %331 = vector.shape_cast %330 : vector<2x1x32xf32> to vector<2x32xf32>
    %332 = arith.addf %281, %331 : vector<2x32xf32>
    %cst_253 = arith.constant 0.000000e+00 : f32
    %333 = vector.broadcast %cst_253 : f32 to vector<64x32xf32>
    %334 = arith.maximumf %328, %333 : vector<64x32xf32>
    %c5 = arith.constant 5 : index
    %c0_254 = arith.constant 0 : index
    %c64_255 = arith.constant 64 : index
    %c0_256 = arith.constant 0 : index
    %335 = vector.load %arg4[%c5, %c0_254, %c64_255, %c0_256] : memref<12x2x96x32xf32, #tpu.memory_space<vmem>>, vector<1x1x32x32xf32>
    %336 = vector.shape_cast %335 : vector<1x1x32x32xf32> to vector<32x32xf32>
    %cst_257 = arith.constant dense<0.000000e+00> : vector<64x32xf32>
    %337 = tpu.matmul %334, %336, %cst_257 {dimension_numbers = #tpu.dot_dimension_numbers<[1], [0], [0], [1], [0, 0, 1, 1], [], []>} : vector<64x32xf32>, vector<32x32xf32>, vector<64x32xf32> -> vector<64x32xf32>
    %c5_258 = arith.constant 5 : index
    %c0_259 = arith.constant 0 : index
    %c0_260 = arith.constant 0 : index
    %c0_261 = arith.constant 0 : index
    %338 = vector.load %arg5[%c5_258, %c0_259, %c0_260, %c0_261] : memref<12x2x1x32xf32, #tpu.memory_space<vmem>>, vector<1x1x1x32xf32>
    %339 = vector.shape_cast %338 : vector<1x1x1x32xf32> to vector<1x32xf32>
    %340 = vector.broadcast %339 : vector<1x32xf32> to vector<64x32xf32>
    %341 = arith.mulf %337, %340 : vector<64x32xf32>
    %c5_262 = arith.constant 5 : index
    %c0_263 = arith.constant 0 : index
    %c0_264 = arith.constant 0 : index
    %c0_265 = arith.constant 0 : index
    %342 = vector.load %arg6[%c5_262, %c0_263, %c0_264, %c0_265] : memref<12x2x1x32xf32, #tpu.memory_space<vmem>>, vector<1x1x1x32xf32>
    %343 = vector.shape_cast %342 : vector<1x1x1x32xf32> to vector<1x32xf32>
    %344 = vector.broadcast %343 : vector<1x32xf32> to vector<64x32xf32>
    %345 = arith.addf %341, %344 : vector<64x32xf32>
    %cst_266 = arith.constant 0.000000e+00 : f32
    %346 = vector.broadcast %cst_266 : f32 to vector<64x32xf32>
    %347 = arith.maximumf %345, %346 : vector<64x32xf32>
    %c5_267 = arith.constant 5 : index
    %c1_268 = arith.constant 1 : index
    %c64_269 = arith.constant 64 : index
    %c0_270 = arith.constant 0 : index
    %348 = vector.load %arg4[%c5_267, %c1_268, %c64_269, %c0_270] : memref<12x2x96x32xf32, #tpu.memory_space<vmem>>, vector<1x1x32x32xf32>
    %349 = vector.shape_cast %348 : vector<1x1x32x32xf32> to vector<32x32xf32>
    %cst_271 = arith.constant dense<0.000000e+00> : vector<64x32xf32>
    %350 = tpu.matmul %347, %349, %cst_271 {dimension_numbers = #tpu.dot_dimension_numbers<[1], [0], [0], [1], [0, 0, 1, 1], [], []>} : vector<64x32xf32>, vector<32x32xf32>, vector<64x32xf32> -> vector<64x32xf32>
    %c5_272 = arith.constant 5 : index
    %c1_273 = arith.constant 1 : index
    %c0_274 = arith.constant 0 : index
    %c0_275 = arith.constant 0 : index
    %351 = vector.load %arg5[%c5_272, %c1_273, %c0_274, %c0_275] : memref<12x2x1x32xf32, #tpu.memory_space<vmem>>, vector<1x1x1x32xf32>
    %352 = vector.shape_cast %351 : vector<1x1x1x32xf32> to vector<1x32xf32>
    %353 = vector.broadcast %352 : vector<1x32xf32> to vector<64x32xf32>
    %354 = arith.mulf %350, %353 : vector<64x32xf32>
    %c5_276 = arith.constant 5 : index
    %c1_277 = arith.constant 1 : index
    %c0_278 = arith.constant 0 : index
    %c0_279 = arith.constant 0 : index
    %355 = vector.load %arg6[%c5_276, %c1_277, %c0_278, %c0_279] : memref<12x2x1x32xf32, #tpu.memory_space<vmem>>, vector<1x1x1x32xf32>
    %356 = vector.shape_cast %355 : vector<1x1x1x32xf32> to vector<1x32xf32>
    %357 = vector.broadcast %356 : vector<1x32xf32> to vector<64x32xf32>
    %358 = arith.addf %354, %357 : vector<64x32xf32>
    %cst_280 = arith.constant 0.000000e+00 : f32
    %359 = vector.broadcast %cst_280 : f32 to vector<64x32xf32>
    %360 = arith.maximumf %358, %359 : vector<64x32xf32>
    %361 = arith.addf %360, %334 : vector<64x32xf32>
    %362 = vector.shape_cast %361 : vector<64x32xf32> to vector<2x32x32xf32>
    %363 = vector.extract_strided_slice %362 {offsets = [0, 31, 0], sizes = [2, 1, 32], strides = [1, 1, 1]} : vector<2x32x32xf32> to vector<2x1x32xf32>
    %364 = vector.shape_cast %363 : vector<2x1x32xf32> to vector<2x32xf32>
    %365 = arith.addf %332, %364 : vector<2x32xf32>
    %cst_281 = arith.constant 0.000000e+00 : f32
    %366 = vector.broadcast %cst_281 : f32 to vector<64x32xf32>
    %367 = arith.maximumf %361, %366 : vector<64x32xf32>
    %c6 = arith.constant 6 : index
    %c0_282 = arith.constant 0 : index
    %c0_283 = arith.constant 0 : index
    %c0_284 = arith.constant 0 : index
    %368 = vector.load %arg4[%c6, %c0_282, %c0_283, %c0_284] : memref<12x2x96x32xf32, #tpu.memory_space<vmem>>, vector<1x1x32x32xf32>
    %369 = vector.shape_cast %368 : vector<1x1x32x32xf32> to vector<32x32xf32>
    %370 = vector.shape_cast %367 : vector<64x32xf32> to vector<2x32x32xf32>
    %cst_285 = arith.constant 0.000000e+00 : f32
    %371 = vector.broadcast %cst_285 : f32 to vector<2x2x32xf32>
    %372 = vector.extract_strided_slice %370 {offsets = [0, 0, 0], sizes = [2, 30, 32], strides = [1, 1, 1]} : vector<2x32x32xf32> to vector<2x30x32xf32>
    %373 = tpu.concatenate %371, %372 in 1 : vector<2x2x32xf32>, vector<2x30x32xf32> -> vector<2x32x32xf32>
    %374 = vector.shape_cast %373 : vector<2x32x32xf32> to vector<64x32xf32>
    %cst_286 = arith.constant dense<0.000000e+00> : vector<64x32xf32>
    %375 = tpu.matmul %374, %369, %cst_286 {dimension_numbers = #tpu.dot_dimension_numbers<[1], [0], [0], [1], [0, 0, 1, 1], [], []>} : vector<64x32xf32>, vector<32x32xf32>, vector<64x32xf32> -> vector<64x32xf32>
    %c6_287 = arith.constant 6 : index
    %c0_288 = arith.constant 0 : index
    %c32_289 = arith.constant 32 : index
    %c0_290 = arith.constant 0 : index
    %376 = vector.load %arg4[%c6_287, %c0_288, %c32_289, %c0_290] : memref<12x2x96x32xf32, #tpu.memory_space<vmem>>, vector<1x1x32x32xf32>
    %377 = vector.shape_cast %376 : vector<1x1x32x32xf32> to vector<32x32xf32>
    %378 = vector.shape_cast %367 : vector<64x32xf32> to vector<2x32x32xf32>
    %cst_291 = arith.constant 0.000000e+00 : f32
    %379 = vector.broadcast %cst_291 : f32 to vector<2x1x32xf32>
    %380 = vector.extract_strided_slice %378 {offsets = [0, 0, 0], sizes = [2, 31, 32], strides = [1, 1, 1]} : vector<2x32x32xf32> to vector<2x31x32xf32>
    %381 = tpu.concatenate %379, %380 in 1 : vector<2x1x32xf32>, vector<2x31x32xf32> -> vector<2x32x32xf32>
    %382 = vector.shape_cast %381 : vector<2x32x32xf32> to vector<64x32xf32>
    %cst_292 = arith.constant dense<0.000000e+00> : vector<64x32xf32>
    %383 = tpu.matmul %382, %377, %cst_292 {dimension_numbers = #tpu.dot_dimension_numbers<[1], [0], [0], [1], [0, 0, 1, 1], [], []>} : vector<64x32xf32>, vector<32x32xf32>, vector<64x32xf32> -> vector<64x32xf32>
    %384 = arith.addf %375, %383 : vector<64x32xf32>
    %c6_293 = arith.constant 6 : index
    %c0_294 = arith.constant 0 : index
    %c64_295 = arith.constant 64 : index
    %c0_296 = arith.constant 0 : index
    %385 = vector.load %arg4[%c6_293, %c0_294, %c64_295, %c0_296] : memref<12x2x96x32xf32, #tpu.memory_space<vmem>>, vector<1x1x32x32xf32>
    %386 = vector.shape_cast %385 : vector<1x1x32x32xf32> to vector<32x32xf32>
    %cst_297 = arith.constant dense<0.000000e+00> : vector<64x32xf32>
    %387 = tpu.matmul %367, %386, %cst_297 {dimension_numbers = #tpu.dot_dimension_numbers<[1], [0], [0], [1], [0, 0, 1, 1], [], []>} : vector<64x32xf32>, vector<32x32xf32>, vector<64x32xf32> -> vector<64x32xf32>
    %388 = arith.addf %384, %387 : vector<64x32xf32>
    %c6_298 = arith.constant 6 : index
    %c0_299 = arith.constant 0 : index
    %c0_300 = arith.constant 0 : index
    %c0_301 = arith.constant 0 : index
    %389 = vector.load %arg5[%c6_298, %c0_299, %c0_300, %c0_301] : memref<12x2x1x32xf32, #tpu.memory_space<vmem>>, vector<1x1x1x32xf32>
    %390 = vector.shape_cast %389 : vector<1x1x1x32xf32> to vector<1x32xf32>
    %391 = vector.broadcast %390 : vector<1x32xf32> to vector<64x32xf32>
    %392 = arith.mulf %388, %391 : vector<64x32xf32>
    %c6_302 = arith.constant 6 : index
    %c0_303 = arith.constant 0 : index
    %c0_304 = arith.constant 0 : index
    %c0_305 = arith.constant 0 : index
    %393 = vector.load %arg6[%c6_302, %c0_303, %c0_304, %c0_305] : memref<12x2x1x32xf32, #tpu.memory_space<vmem>>, vector<1x1x1x32xf32>
    %394 = vector.shape_cast %393 : vector<1x1x1x32xf32> to vector<1x32xf32>
    %395 = vector.broadcast %394 : vector<1x32xf32> to vector<64x32xf32>
    %396 = arith.addf %392, %395 : vector<64x32xf32>
    %cst_306 = arith.constant 0.000000e+00 : f32
    %397 = vector.broadcast %cst_306 : f32 to vector<64x32xf32>
    %398 = arith.maximumf %396, %397 : vector<64x32xf32>
    %c6_307 = arith.constant 6 : index
    %c1_308 = arith.constant 1 : index
    %c0_309 = arith.constant 0 : index
    %c0_310 = arith.constant 0 : index
    %399 = vector.load %arg4[%c6_307, %c1_308, %c0_309, %c0_310] : memref<12x2x96x32xf32, #tpu.memory_space<vmem>>, vector<1x1x32x32xf32>
    %400 = vector.shape_cast %399 : vector<1x1x32x32xf32> to vector<32x32xf32>
    %401 = vector.shape_cast %398 : vector<64x32xf32> to vector<2x32x32xf32>
    %cst_311 = arith.constant 0.000000e+00 : f32
    %402 = vector.broadcast %cst_311 : f32 to vector<2x2x32xf32>
    %403 = vector.extract_strided_slice %401 {offsets = [0, 0, 0], sizes = [2, 30, 32], strides = [1, 1, 1]} : vector<2x32x32xf32> to vector<2x30x32xf32>
    %404 = tpu.concatenate %402, %403 in 1 : vector<2x2x32xf32>, vector<2x30x32xf32> -> vector<2x32x32xf32>
    %405 = vector.shape_cast %404 : vector<2x32x32xf32> to vector<64x32xf32>
    %cst_312 = arith.constant dense<0.000000e+00> : vector<64x32xf32>
    %406 = tpu.matmul %405, %400, %cst_312 {dimension_numbers = #tpu.dot_dimension_numbers<[1], [0], [0], [1], [0, 0, 1, 1], [], []>} : vector<64x32xf32>, vector<32x32xf32>, vector<64x32xf32> -> vector<64x32xf32>
    %c6_313 = arith.constant 6 : index
    %c1_314 = arith.constant 1 : index
    %c32_315 = arith.constant 32 : index
    %c0_316 = arith.constant 0 : index
    %407 = vector.load %arg4[%c6_313, %c1_314, %c32_315, %c0_316] : memref<12x2x96x32xf32, #tpu.memory_space<vmem>>, vector<1x1x32x32xf32>
    %408 = vector.shape_cast %407 : vector<1x1x32x32xf32> to vector<32x32xf32>
    %409 = vector.shape_cast %398 : vector<64x32xf32> to vector<2x32x32xf32>
    %cst_317 = arith.constant 0.000000e+00 : f32
    %410 = vector.broadcast %cst_317 : f32 to vector<2x1x32xf32>
    %411 = vector.extract_strided_slice %409 {offsets = [0, 0, 0], sizes = [2, 31, 32], strides = [1, 1, 1]} : vector<2x32x32xf32> to vector<2x31x32xf32>
    %412 = tpu.concatenate %410, %411 in 1 : vector<2x1x32xf32>, vector<2x31x32xf32> -> vector<2x32x32xf32>
    %413 = vector.shape_cast %412 : vector<2x32x32xf32> to vector<64x32xf32>
    %cst_318 = arith.constant dense<0.000000e+00> : vector<64x32xf32>
    %414 = tpu.matmul %413, %408, %cst_318 {dimension_numbers = #tpu.dot_dimension_numbers<[1], [0], [0], [1], [0, 0, 1, 1], [], []>} : vector<64x32xf32>, vector<32x32xf32>, vector<64x32xf32> -> vector<64x32xf32>
    %415 = arith.addf %406, %414 : vector<64x32xf32>
    %c6_319 = arith.constant 6 : index
    %c1_320 = arith.constant 1 : index
    %c64_321 = arith.constant 64 : index
    %c0_322 = arith.constant 0 : index
    %416 = vector.load %arg4[%c6_319, %c1_320, %c64_321, %c0_322] : memref<12x2x96x32xf32, #tpu.memory_space<vmem>>, vector<1x1x32x32xf32>
    %417 = vector.shape_cast %416 : vector<1x1x32x32xf32> to vector<32x32xf32>
    %cst_323 = arith.constant dense<0.000000e+00> : vector<64x32xf32>
    %418 = tpu.matmul %398, %417, %cst_323 {dimension_numbers = #tpu.dot_dimension_numbers<[1], [0], [0], [1], [0, 0, 1, 1], [], []>} : vector<64x32xf32>, vector<32x32xf32>, vector<64x32xf32> -> vector<64x32xf32>
    %419 = arith.addf %415, %418 : vector<64x32xf32>
    %c6_324 = arith.constant 6 : index
    %c1_325 = arith.constant 1 : index
    %c0_326 = arith.constant 0 : index
    %c0_327 = arith.constant 0 : index
    %420 = vector.load %arg5[%c6_324, %c1_325, %c0_326, %c0_327] : memref<12x2x1x32xf32, #tpu.memory_space<vmem>>, vector<1x1x1x32xf32>
    %421 = vector.shape_cast %420 : vector<1x1x1x32xf32> to vector<1x32xf32>
    %422 = vector.broadcast %421 : vector<1x32xf32> to vector<64x32xf32>
    %423 = arith.mulf %419, %422 : vector<64x32xf32>
    %c6_328 = arith.constant 6 : index
    %c1_329 = arith.constant 1 : index
    %c0_330 = arith.constant 0 : index
    %c0_331 = arith.constant 0 : index
    %424 = vector.load %arg6[%c6_328, %c1_329, %c0_330, %c0_331] : memref<12x2x1x32xf32, #tpu.memory_space<vmem>>, vector<1x1x1x32xf32>
    %425 = vector.shape_cast %424 : vector<1x1x1x32xf32> to vector<1x32xf32>
    %426 = vector.broadcast %425 : vector<1x32xf32> to vector<64x32xf32>
    %427 = arith.addf %423, %426 : vector<64x32xf32>
    %cst_332 = arith.constant 0.000000e+00 : f32
    %428 = vector.broadcast %cst_332 : f32 to vector<64x32xf32>
    %429 = arith.maximumf %427, %428 : vector<64x32xf32>
    %430 = arith.addf %429, %367 : vector<64x32xf32>
    %431 = vector.shape_cast %430 : vector<64x32xf32> to vector<2x32x32xf32>
    %432 = vector.extract_strided_slice %431 {offsets = [0, 31, 0], sizes = [2, 1, 32], strides = [1, 1, 1]} : vector<2x32x32xf32> to vector<2x1x32xf32>
    %433 = vector.shape_cast %432 : vector<2x1x32xf32> to vector<2x32xf32>
    %434 = arith.addf %365, %433 : vector<2x32xf32>
    %cst_333 = arith.constant 0.000000e+00 : f32
    %435 = vector.broadcast %cst_333 : f32 to vector<64x32xf32>
    %436 = arith.maximumf %430, %435 : vector<64x32xf32>
    %c7 = arith.constant 7 : index
    %c0_334 = arith.constant 0 : index
    %c0_335 = arith.constant 0 : index
    %c0_336 = arith.constant 0 : index
    %437 = vector.load %arg4[%c7, %c0_334, %c0_335, %c0_336] : memref<12x2x96x32xf32, #tpu.memory_space<vmem>>, vector<1x1x32x32xf32>
    %438 = vector.shape_cast %437 : vector<1x1x32x32xf32> to vector<32x32xf32>
    %439 = vector.shape_cast %436 : vector<64x32xf32> to vector<2x32x32xf32>
    %cst_337 = arith.constant 0.000000e+00 : f32
    %440 = vector.broadcast %cst_337 : f32 to vector<2x4x32xf32>
    %441 = vector.extract_strided_slice %439 {offsets = [0, 0, 0], sizes = [2, 28, 32], strides = [1, 1, 1]} : vector<2x32x32xf32> to vector<2x28x32xf32>
    %442 = tpu.concatenate %440, %441 in 1 : vector<2x4x32xf32>, vector<2x28x32xf32> -> vector<2x32x32xf32>
    %443 = vector.shape_cast %442 : vector<2x32x32xf32> to vector<64x32xf32>
    %cst_338 = arith.constant dense<0.000000e+00> : vector<64x32xf32>
    %444 = tpu.matmul %443, %438, %cst_338 {dimension_numbers = #tpu.dot_dimension_numbers<[1], [0], [0], [1], [0, 0, 1, 1], [], []>} : vector<64x32xf32>, vector<32x32xf32>, vector<64x32xf32> -> vector<64x32xf32>
    %c7_339 = arith.constant 7 : index
    %c0_340 = arith.constant 0 : index
    %c32_341 = arith.constant 32 : index
    %c0_342 = arith.constant 0 : index
    %445 = vector.load %arg4[%c7_339, %c0_340, %c32_341, %c0_342] : memref<12x2x96x32xf32, #tpu.memory_space<vmem>>, vector<1x1x32x32xf32>
    %446 = vector.shape_cast %445 : vector<1x1x32x32xf32> to vector<32x32xf32>
    %447 = vector.shape_cast %436 : vector<64x32xf32> to vector<2x32x32xf32>
    %cst_343 = arith.constant 0.000000e+00 : f32
    %448 = vector.broadcast %cst_343 : f32 to vector<2x2x32xf32>
    %449 = vector.extract_strided_slice %447 {offsets = [0, 0, 0], sizes = [2, 30, 32], strides = [1, 1, 1]} : vector<2x32x32xf32> to vector<2x30x32xf32>
    %450 = tpu.concatenate %448, %449 in 1 : vector<2x2x32xf32>, vector<2x30x32xf32> -> vector<2x32x32xf32>
    %451 = vector.shape_cast %450 : vector<2x32x32xf32> to vector<64x32xf32>
    %cst_344 = arith.constant dense<0.000000e+00> : vector<64x32xf32>
    %452 = tpu.matmul %451, %446, %cst_344 {dimension_numbers = #tpu.dot_dimension_numbers<[1], [0], [0], [1], [0, 0, 1, 1], [], []>} : vector<64x32xf32>, vector<32x32xf32>, vector<64x32xf32> -> vector<64x32xf32>
    %453 = arith.addf %444, %452 : vector<64x32xf32>
    %c7_345 = arith.constant 7 : index
    %c0_346 = arith.constant 0 : index
    %c64_347 = arith.constant 64 : index
    %c0_348 = arith.constant 0 : index
    %454 = vector.load %arg4[%c7_345, %c0_346, %c64_347, %c0_348] : memref<12x2x96x32xf32, #tpu.memory_space<vmem>>, vector<1x1x32x32xf32>
    %455 = vector.shape_cast %454 : vector<1x1x32x32xf32> to vector<32x32xf32>
    %cst_349 = arith.constant dense<0.000000e+00> : vector<64x32xf32>
    %456 = tpu.matmul %436, %455, %cst_349 {dimension_numbers = #tpu.dot_dimension_numbers<[1], [0], [0], [1], [0, 0, 1, 1], [], []>} : vector<64x32xf32>, vector<32x32xf32>, vector<64x32xf32> -> vector<64x32xf32>
    %457 = arith.addf %453, %456 : vector<64x32xf32>
    %c7_350 = arith.constant 7 : index
    %c0_351 = arith.constant 0 : index
    %c0_352 = arith.constant 0 : index
    %c0_353 = arith.constant 0 : index
    %458 = vector.load %arg5[%c7_350, %c0_351, %c0_352, %c0_353] : memref<12x2x1x32xf32, #tpu.memory_space<vmem>>, vector<1x1x1x32xf32>
    %459 = vector.shape_cast %458 : vector<1x1x1x32xf32> to vector<1x32xf32>
    %460 = vector.broadcast %459 : vector<1x32xf32> to vector<64x32xf32>
    %461 = arith.mulf %457, %460 : vector<64x32xf32>
    %c7_354 = arith.constant 7 : index
    %c0_355 = arith.constant 0 : index
    %c0_356 = arith.constant 0 : index
    %c0_357 = arith.constant 0 : index
    %462 = vector.load %arg6[%c7_354, %c0_355, %c0_356, %c0_357] : memref<12x2x1x32xf32, #tpu.memory_space<vmem>>, vector<1x1x1x32xf32>
    %463 = vector.shape_cast %462 : vector<1x1x1x32xf32> to vector<1x32xf32>
    %464 = vector.broadcast %463 : vector<1x32xf32> to vector<64x32xf32>
    %465 = arith.addf %461, %464 : vector<64x32xf32>
    %cst_358 = arith.constant 0.000000e+00 : f32
    %466 = vector.broadcast %cst_358 : f32 to vector<64x32xf32>
    %467 = arith.maximumf %465, %466 : vector<64x32xf32>
    %c7_359 = arith.constant 7 : index
    %c1_360 = arith.constant 1 : index
    %c0_361 = arith.constant 0 : index
    %c0_362 = arith.constant 0 : index
    %468 = vector.load %arg4[%c7_359, %c1_360, %c0_361, %c0_362] : memref<12x2x96x32xf32, #tpu.memory_space<vmem>>, vector<1x1x32x32xf32>
    %469 = vector.shape_cast %468 : vector<1x1x32x32xf32> to vector<32x32xf32>
    %470 = vector.shape_cast %467 : vector<64x32xf32> to vector<2x32x32xf32>
    %cst_363 = arith.constant 0.000000e+00 : f32
    %471 = vector.broadcast %cst_363 : f32 to vector<2x4x32xf32>
    %472 = vector.extract_strided_slice %470 {offsets = [0, 0, 0], sizes = [2, 28, 32], strides = [1, 1, 1]} : vector<2x32x32xf32> to vector<2x28x32xf32>
    %473 = tpu.concatenate %471, %472 in 1 : vector<2x4x32xf32>, vector<2x28x32xf32> -> vector<2x32x32xf32>
    %474 = vector.shape_cast %473 : vector<2x32x32xf32> to vector<64x32xf32>
    %cst_364 = arith.constant dense<0.000000e+00> : vector<64x32xf32>
    %475 = tpu.matmul %474, %469, %cst_364 {dimension_numbers = #tpu.dot_dimension_numbers<[1], [0], [0], [1], [0, 0, 1, 1], [], []>} : vector<64x32xf32>, vector<32x32xf32>, vector<64x32xf32> -> vector<64x32xf32>
    %c7_365 = arith.constant 7 : index
    %c1_366 = arith.constant 1 : index
    %c32_367 = arith.constant 32 : index
    %c0_368 = arith.constant 0 : index
    %476 = vector.load %arg4[%c7_365, %c1_366, %c32_367, %c0_368] : memref<12x2x96x32xf32, #tpu.memory_space<vmem>>, vector<1x1x32x32xf32>
    %477 = vector.shape_cast %476 : vector<1x1x32x32xf32> to vector<32x32xf32>
    %478 = vector.shape_cast %467 : vector<64x32xf32> to vector<2x32x32xf32>
    %cst_369 = arith.constant 0.000000e+00 : f32
    %479 = vector.broadcast %cst_369 : f32 to vector<2x2x32xf32>
    %480 = vector.extract_strided_slice %478 {offsets = [0, 0, 0], sizes = [2, 30, 32], strides = [1, 1, 1]} : vector<2x32x32xf32> to vector<2x30x32xf32>
    %481 = tpu.concatenate %479, %480 in 1 : vector<2x2x32xf32>, vector<2x30x32xf32> -> vector<2x32x32xf32>
    %482 = vector.shape_cast %481 : vector<2x32x32xf32> to vector<64x32xf32>
    %cst_370 = arith.constant dense<0.000000e+00> : vector<64x32xf32>
    %483 = tpu.matmul %482, %477, %cst_370 {dimension_numbers = #tpu.dot_dimension_numbers<[1], [0], [0], [1], [0, 0, 1, 1], [], []>} : vector<64x32xf32>, vector<32x32xf32>, vector<64x32xf32> -> vector<64x32xf32>
    %484 = arith.addf %475, %483 : vector<64x32xf32>
    %c7_371 = arith.constant 7 : index
    %c1_372 = arith.constant 1 : index
    %c64_373 = arith.constant 64 : index
    %c0_374 = arith.constant 0 : index
    %485 = vector.load %arg4[%c7_371, %c1_372, %c64_373, %c0_374] : memref<12x2x96x32xf32, #tpu.memory_space<vmem>>, vector<1x1x32x32xf32>
    %486 = vector.shape_cast %485 : vector<1x1x32x32xf32> to vector<32x32xf32>
    %cst_375 = arith.constant dense<0.000000e+00> : vector<64x32xf32>
    %487 = tpu.matmul %467, %486, %cst_375 {dimension_numbers = #tpu.dot_dimension_numbers<[1], [0], [0], [1], [0, 0, 1, 1], [], []>} : vector<64x32xf32>, vector<32x32xf32>, vector<64x32xf32> -> vector<64x32xf32>
    %488 = arith.addf %484, %487 : vector<64x32xf32>
    %c7_376 = arith.constant 7 : index
    %c1_377 = arith.constant 1 : index
    %c0_378 = arith.constant 0 : index
    %c0_379 = arith.constant 0 : index
    %489 = vector.load %arg5[%c7_376, %c1_377, %c0_378, %c0_379] : memref<12x2x1x32xf32, #tpu.memory_space<vmem>>, vector<1x1x1x32xf32>
    %490 = vector.shape_cast %489 : vector<1x1x1x32xf32> to vector<1x32xf32>
    %491 = vector.broadcast %490 : vector<1x32xf32> to vector<64x32xf32>
    %492 = arith.mulf %488, %491 : vector<64x32xf32>
    %c7_380 = arith.constant 7 : index
    %c1_381 = arith.constant 1 : index
    %c0_382 = arith.constant 0 : index
    %c0_383 = arith.constant 0 : index
    %493 = vector.load %arg6[%c7_380, %c1_381, %c0_382, %c0_383] : memref<12x2x1x32xf32, #tpu.memory_space<vmem>>, vector<1x1x1x32xf32>
    %494 = vector.shape_cast %493 : vector<1x1x1x32xf32> to vector<1x32xf32>
    %495 = vector.broadcast %494 : vector<1x32xf32> to vector<64x32xf32>
    %496 = arith.addf %492, %495 : vector<64x32xf32>
    %cst_384 = arith.constant 0.000000e+00 : f32
    %497 = vector.broadcast %cst_384 : f32 to vector<64x32xf32>
    %498 = arith.maximumf %496, %497 : vector<64x32xf32>
    %499 = arith.addf %498, %436 : vector<64x32xf32>
    %500 = vector.shape_cast %499 : vector<64x32xf32> to vector<2x32x32xf32>
    %501 = vector.extract_strided_slice %500 {offsets = [0, 31, 0], sizes = [2, 1, 32], strides = [1, 1, 1]} : vector<2x32x32xf32> to vector<2x1x32xf32>
    %502 = vector.shape_cast %501 : vector<2x1x32xf32> to vector<2x32xf32>
    %503 = arith.addf %434, %502 : vector<2x32xf32>
    %cst_385 = arith.constant 0.000000e+00 : f32
    %504 = vector.broadcast %cst_385 : f32 to vector<64x32xf32>
    %505 = arith.maximumf %499, %504 : vector<64x32xf32>
    %c8 = arith.constant 8 : index
    %c0_386 = arith.constant 0 : index
    %c0_387 = arith.constant 0 : index
    %c0_388 = arith.constant 0 : index
    %506 = vector.load %arg4[%c8, %c0_386, %c0_387, %c0_388] : memref<12x2x96x32xf32, #tpu.memory_space<vmem>>, vector<1x1x32x32xf32>
    %507 = vector.shape_cast %506 : vector<1x1x32x32xf32> to vector<32x32xf32>
    %508 = vector.shape_cast %505 : vector<64x32xf32> to vector<2x32x32xf32>
    %cst_389 = arith.constant 0.000000e+00 : f32
    %509 = vector.broadcast %cst_389 : f32 to vector<2x8x32xf32>
    %510 = vector.extract_strided_slice %508 {offsets = [0, 0, 0], sizes = [2, 24, 32], strides = [1, 1, 1]} : vector<2x32x32xf32> to vector<2x24x32xf32>
    %511 = tpu.concatenate %509, %510 in 1 : vector<2x8x32xf32>, vector<2x24x32xf32> -> vector<2x32x32xf32>
    %512 = vector.shape_cast %511 : vector<2x32x32xf32> to vector<64x32xf32>
    %cst_390 = arith.constant dense<0.000000e+00> : vector<64x32xf32>
    %513 = tpu.matmul %512, %507, %cst_390 {dimension_numbers = #tpu.dot_dimension_numbers<[1], [0], [0], [1], [0, 0, 1, 1], [], []>} : vector<64x32xf32>, vector<32x32xf32>, vector<64x32xf32> -> vector<64x32xf32>
    %c8_391 = arith.constant 8 : index
    %c0_392 = arith.constant 0 : index
    %c32_393 = arith.constant 32 : index
    %c0_394 = arith.constant 0 : index
    %514 = vector.load %arg4[%c8_391, %c0_392, %c32_393, %c0_394] : memref<12x2x96x32xf32, #tpu.memory_space<vmem>>, vector<1x1x32x32xf32>
    %515 = vector.shape_cast %514 : vector<1x1x32x32xf32> to vector<32x32xf32>
    %516 = vector.shape_cast %505 : vector<64x32xf32> to vector<2x32x32xf32>
    %cst_395 = arith.constant 0.000000e+00 : f32
    %517 = vector.broadcast %cst_395 : f32 to vector<2x4x32xf32>
    %518 = vector.extract_strided_slice %516 {offsets = [0, 0, 0], sizes = [2, 28, 32], strides = [1, 1, 1]} : vector<2x32x32xf32> to vector<2x28x32xf32>
    %519 = tpu.concatenate %517, %518 in 1 : vector<2x4x32xf32>, vector<2x28x32xf32> -> vector<2x32x32xf32>
    %520 = vector.shape_cast %519 : vector<2x32x32xf32> to vector<64x32xf32>
    %cst_396 = arith.constant dense<0.000000e+00> : vector<64x32xf32>
    %521 = tpu.matmul %520, %515, %cst_396 {dimension_numbers = #tpu.dot_dimension_numbers<[1], [0], [0], [1], [0, 0, 1, 1], [], []>} : vector<64x32xf32>, vector<32x32xf32>, vector<64x32xf32> -> vector<64x32xf32>
    %522 = arith.addf %513, %521 : vector<64x32xf32>
    %c8_397 = arith.constant 8 : index
    %c0_398 = arith.constant 0 : index
    %c64_399 = arith.constant 64 : index
    %c0_400 = arith.constant 0 : index
    %523 = vector.load %arg4[%c8_397, %c0_398, %c64_399, %c0_400] : memref<12x2x96x32xf32, #tpu.memory_space<vmem>>, vector<1x1x32x32xf32>
    %524 = vector.shape_cast %523 : vector<1x1x32x32xf32> to vector<32x32xf32>
    %cst_401 = arith.constant dense<0.000000e+00> : vector<64x32xf32>
    %525 = tpu.matmul %505, %524, %cst_401 {dimension_numbers = #tpu.dot_dimension_numbers<[1], [0], [0], [1], [0, 0, 1, 1], [], []>} : vector<64x32xf32>, vector<32x32xf32>, vector<64x32xf32> -> vector<64x32xf32>
    %526 = arith.addf %522, %525 : vector<64x32xf32>
    %c8_402 = arith.constant 8 : index
    %c0_403 = arith.constant 0 : index
    %c0_404 = arith.constant 0 : index
    %c0_405 = arith.constant 0 : index
    %527 = vector.load %arg5[%c8_402, %c0_403, %c0_404, %c0_405] : memref<12x2x1x32xf32, #tpu.memory_space<vmem>>, vector<1x1x1x32xf32>
    %528 = vector.shape_cast %527 : vector<1x1x1x32xf32> to vector<1x32xf32>
    %529 = vector.broadcast %528 : vector<1x32xf32> to vector<64x32xf32>
    %530 = arith.mulf %526, %529 : vector<64x32xf32>
    %c8_406 = arith.constant 8 : index
    %c0_407 = arith.constant 0 : index
    %c0_408 = arith.constant 0 : index
    %c0_409 = arith.constant 0 : index
    %531 = vector.load %arg6[%c8_406, %c0_407, %c0_408, %c0_409] : memref<12x2x1x32xf32, #tpu.memory_space<vmem>>, vector<1x1x1x32xf32>
    %532 = vector.shape_cast %531 : vector<1x1x1x32xf32> to vector<1x32xf32>
    %533 = vector.broadcast %532 : vector<1x32xf32> to vector<64x32xf32>
    %534 = arith.addf %530, %533 : vector<64x32xf32>
    %cst_410 = arith.constant 0.000000e+00 : f32
    %535 = vector.broadcast %cst_410 : f32 to vector<64x32xf32>
    %536 = arith.maximumf %534, %535 : vector<64x32xf32>
    %c8_411 = arith.constant 8 : index
    %c1_412 = arith.constant 1 : index
    %c0_413 = arith.constant 0 : index
    %c0_414 = arith.constant 0 : index
    %537 = vector.load %arg4[%c8_411, %c1_412, %c0_413, %c0_414] : memref<12x2x96x32xf32, #tpu.memory_space<vmem>>, vector<1x1x32x32xf32>
    %538 = vector.shape_cast %537 : vector<1x1x32x32xf32> to vector<32x32xf32>
    %539 = vector.shape_cast %536 : vector<64x32xf32> to vector<2x32x32xf32>
    %cst_415 = arith.constant 0.000000e+00 : f32
    %540 = vector.broadcast %cst_415 : f32 to vector<2x8x32xf32>
    %541 = vector.extract_strided_slice %539 {offsets = [0, 0, 0], sizes = [2, 24, 32], strides = [1, 1, 1]} : vector<2x32x32xf32> to vector<2x24x32xf32>
    %542 = tpu.concatenate %540, %541 in 1 : vector<2x8x32xf32>, vector<2x24x32xf32> -> vector<2x32x32xf32>
    %543 = vector.shape_cast %542 : vector<2x32x32xf32> to vector<64x32xf32>
    %cst_416 = arith.constant dense<0.000000e+00> : vector<64x32xf32>
    %544 = tpu.matmul %543, %538, %cst_416 {dimension_numbers = #tpu.dot_dimension_numbers<[1], [0], [0], [1], [0, 0, 1, 1], [], []>} : vector<64x32xf32>, vector<32x32xf32>, vector<64x32xf32> -> vector<64x32xf32>
    %c8_417 = arith.constant 8 : index
    %c1_418 = arith.constant 1 : index
    %c32_419 = arith.constant 32 : index
    %c0_420 = arith.constant 0 : index
    %545 = vector.load %arg4[%c8_417, %c1_418, %c32_419, %c0_420] : memref<12x2x96x32xf32, #tpu.memory_space<vmem>>, vector<1x1x32x32xf32>
    %546 = vector.shape_cast %545 : vector<1x1x32x32xf32> to vector<32x32xf32>
    %547 = vector.shape_cast %536 : vector<64x32xf32> to vector<2x32x32xf32>
    %cst_421 = arith.constant 0.000000e+00 : f32
    %548 = vector.broadcast %cst_421 : f32 to vector<2x4x32xf32>
    %549 = vector.extract_strided_slice %547 {offsets = [0, 0, 0], sizes = [2, 28, 32], strides = [1, 1, 1]} : vector<2x32x32xf32> to vector<2x28x32xf32>
    %550 = tpu.concatenate %548, %549 in 1 : vector<2x4x32xf32>, vector<2x28x32xf32> -> vector<2x32x32xf32>
    %551 = vector.shape_cast %550 : vector<2x32x32xf32> to vector<64x32xf32>
    %cst_422 = arith.constant dense<0.000000e+00> : vector<64x32xf32>
    %552 = tpu.matmul %551, %546, %cst_422 {dimension_numbers = #tpu.dot_dimension_numbers<[1], [0], [0], [1], [0, 0, 1, 1], [], []>} : vector<64x32xf32>, vector<32x32xf32>, vector<64x32xf32> -> vector<64x32xf32>
    %553 = arith.addf %544, %552 : vector<64x32xf32>
    %c8_423 = arith.constant 8 : index
    %c1_424 = arith.constant 1 : index
    %c64_425 = arith.constant 64 : index
    %c0_426 = arith.constant 0 : index
    %554 = vector.load %arg4[%c8_423, %c1_424, %c64_425, %c0_426] : memref<12x2x96x32xf32, #tpu.memory_space<vmem>>, vector<1x1x32x32xf32>
    %555 = vector.shape_cast %554 : vector<1x1x32x32xf32> to vector<32x32xf32>
    %cst_427 = arith.constant dense<0.000000e+00> : vector<64x32xf32>
    %556 = tpu.matmul %536, %555, %cst_427 {dimension_numbers = #tpu.dot_dimension_numbers<[1], [0], [0], [1], [0, 0, 1, 1], [], []>} : vector<64x32xf32>, vector<32x32xf32>, vector<64x32xf32> -> vector<64x32xf32>
    %557 = arith.addf %553, %556 : vector<64x32xf32>
    %c8_428 = arith.constant 8 : index
    %c1_429 = arith.constant 1 : index
    %c0_430 = arith.constant 0 : index
    %c0_431 = arith.constant 0 : index
    %558 = vector.load %arg5[%c8_428, %c1_429, %c0_430, %c0_431] : memref<12x2x1x32xf32, #tpu.memory_space<vmem>>, vector<1x1x1x32xf32>
    %559 = vector.shape_cast %558 : vector<1x1x1x32xf32> to vector<1x32xf32>
    %560 = vector.broadcast %559 : vector<1x32xf32> to vector<64x32xf32>
    %561 = arith.mulf %557, %560 : vector<64x32xf32>
    %c8_432 = arith.constant 8 : index
    %c1_433 = arith.constant 1 : index
    %c0_434 = arith.constant 0 : index
    %c0_435 = arith.constant 0 : index
    %562 = vector.load %arg6[%c8_432, %c1_433, %c0_434, %c0_435] : memref<12x2x1x32xf32, #tpu.memory_space<vmem>>, vector<1x1x1x32xf32>
    %563 = vector.shape_cast %562 : vector<1x1x1x32xf32> to vector<1x32xf32>
    %564 = vector.broadcast %563 : vector<1x32xf32> to vector<64x32xf32>
    %565 = arith.addf %561, %564 : vector<64x32xf32>
    %cst_436 = arith.constant 0.000000e+00 : f32
    %566 = vector.broadcast %cst_436 : f32 to vector<64x32xf32>
    %567 = arith.maximumf %565, %566 : vector<64x32xf32>
    %568 = arith.addf %567, %505 : vector<64x32xf32>
    %569 = vector.shape_cast %568 : vector<64x32xf32> to vector<2x32x32xf32>
    %570 = vector.extract_strided_slice %569 {offsets = [0, 31, 0], sizes = [2, 1, 32], strides = [1, 1, 1]} : vector<2x32x32xf32> to vector<2x1x32xf32>
    %571 = vector.shape_cast %570 : vector<2x1x32xf32> to vector<2x32xf32>
    %572 = arith.addf %503, %571 : vector<2x32xf32>
    %cst_437 = arith.constant 0.000000e+00 : f32
    %573 = vector.broadcast %cst_437 : f32 to vector<64x32xf32>
    %574 = arith.maximumf %568, %573 : vector<64x32xf32>
    %c9 = arith.constant 9 : index
    %c0_438 = arith.constant 0 : index
    %c0_439 = arith.constant 0 : index
    %c0_440 = arith.constant 0 : index
    %575 = vector.load %arg4[%c9, %c0_438, %c0_439, %c0_440] : memref<12x2x96x32xf32, #tpu.memory_space<vmem>>, vector<1x1x32x32xf32>
    %576 = vector.shape_cast %575 : vector<1x1x32x32xf32> to vector<32x32xf32>
    %577 = vector.shape_cast %574 : vector<64x32xf32> to vector<2x32x32xf32>
    %cst_441 = arith.constant 0.000000e+00 : f32
    %578 = vector.broadcast %cst_441 : f32 to vector<2x16x32xf32>
    %579 = vector.extract_strided_slice %577 {offsets = [0, 0, 0], sizes = [2, 16, 32], strides = [1, 1, 1]} : vector<2x32x32xf32> to vector<2x16x32xf32>
    %580 = tpu.concatenate %578, %579 in 1 : vector<2x16x32xf32>, vector<2x16x32xf32> -> vector<2x32x32xf32>
    %581 = vector.shape_cast %580 : vector<2x32x32xf32> to vector<64x32xf32>
    %cst_442 = arith.constant dense<0.000000e+00> : vector<64x32xf32>
    %582 = tpu.matmul %581, %576, %cst_442 {dimension_numbers = #tpu.dot_dimension_numbers<[1], [0], [0], [1], [0, 0, 1, 1], [], []>} : vector<64x32xf32>, vector<32x32xf32>, vector<64x32xf32> -> vector<64x32xf32>
    %c9_443 = arith.constant 9 : index
    %c0_444 = arith.constant 0 : index
    %c32_445 = arith.constant 32 : index
    %c0_446 = arith.constant 0 : index
    %583 = vector.load %arg4[%c9_443, %c0_444, %c32_445, %c0_446] : memref<12x2x96x32xf32, #tpu.memory_space<vmem>>, vector<1x1x32x32xf32>
    %584 = vector.shape_cast %583 : vector<1x1x32x32xf32> to vector<32x32xf32>
    %585 = vector.shape_cast %574 : vector<64x32xf32> to vector<2x32x32xf32>
    %cst_447 = arith.constant 0.000000e+00 : f32
    %586 = vector.broadcast %cst_447 : f32 to vector<2x8x32xf32>
    %587 = vector.extract_strided_slice %585 {offsets = [0, 0, 0], sizes = [2, 24, 32], strides = [1, 1, 1]} : vector<2x32x32xf32> to vector<2x24x32xf32>
    %588 = tpu.concatenate %586, %587 in 1 : vector<2x8x32xf32>, vector<2x24x32xf32> -> vector<2x32x32xf32>
    %589 = vector.shape_cast %588 : vector<2x32x32xf32> to vector<64x32xf32>
    %cst_448 = arith.constant dense<0.000000e+00> : vector<64x32xf32>
    %590 = tpu.matmul %589, %584, %cst_448 {dimension_numbers = #tpu.dot_dimension_numbers<[1], [0], [0], [1], [0, 0, 1, 1], [], []>} : vector<64x32xf32>, vector<32x32xf32>, vector<64x32xf32> -> vector<64x32xf32>
    %591 = arith.addf %582, %590 : vector<64x32xf32>
    %c9_449 = arith.constant 9 : index
    %c0_450 = arith.constant 0 : index
    %c64_451 = arith.constant 64 : index
    %c0_452 = arith.constant 0 : index
    %592 = vector.load %arg4[%c9_449, %c0_450, %c64_451, %c0_452] : memref<12x2x96x32xf32, #tpu.memory_space<vmem>>, vector<1x1x32x32xf32>
    %593 = vector.shape_cast %592 : vector<1x1x32x32xf32> to vector<32x32xf32>
    %cst_453 = arith.constant dense<0.000000e+00> : vector<64x32xf32>
    %594 = tpu.matmul %574, %593, %cst_453 {dimension_numbers = #tpu.dot_dimension_numbers<[1], [0], [0], [1], [0, 0, 1, 1], [], []>} : vector<64x32xf32>, vector<32x32xf32>, vector<64x32xf32> -> vector<64x32xf32>
    %595 = arith.addf %591, %594 : vector<64x32xf32>
    %c9_454 = arith.constant 9 : index
    %c0_455 = arith.constant 0 : index
    %c0_456 = arith.constant 0 : index
    %c0_457 = arith.constant 0 : index
    %596 = vector.load %arg5[%c9_454, %c0_455, %c0_456, %c0_457] : memref<12x2x1x32xf32, #tpu.memory_space<vmem>>, vector<1x1x1x32xf32>
    %597 = vector.shape_cast %596 : vector<1x1x1x32xf32> to vector<1x32xf32>
    %598 = vector.broadcast %597 : vector<1x32xf32> to vector<64x32xf32>
    %599 = arith.mulf %595, %598 : vector<64x32xf32>
    %c9_458 = arith.constant 9 : index
    %c0_459 = arith.constant 0 : index
    %c0_460 = arith.constant 0 : index
    %c0_461 = arith.constant 0 : index
    %600 = vector.load %arg6[%c9_458, %c0_459, %c0_460, %c0_461] : memref<12x2x1x32xf32, #tpu.memory_space<vmem>>, vector<1x1x1x32xf32>
    %601 = vector.shape_cast %600 : vector<1x1x1x32xf32> to vector<1x32xf32>
    %602 = vector.broadcast %601 : vector<1x32xf32> to vector<64x32xf32>
    %603 = arith.addf %599, %602 : vector<64x32xf32>
    %cst_462 = arith.constant 0.000000e+00 : f32
    %604 = vector.broadcast %cst_462 : f32 to vector<64x32xf32>
    %605 = arith.maximumf %603, %604 : vector<64x32xf32>
    %c9_463 = arith.constant 9 : index
    %c1_464 = arith.constant 1 : index
    %c0_465 = arith.constant 0 : index
    %c0_466 = arith.constant 0 : index
    %606 = vector.load %arg4[%c9_463, %c1_464, %c0_465, %c0_466] : memref<12x2x96x32xf32, #tpu.memory_space<vmem>>, vector<1x1x32x32xf32>
    %607 = vector.shape_cast %606 : vector<1x1x32x32xf32> to vector<32x32xf32>
    %608 = vector.shape_cast %605 : vector<64x32xf32> to vector<2x32x32xf32>
    %cst_467 = arith.constant 0.000000e+00 : f32
    %609 = vector.broadcast %cst_467 : f32 to vector<2x16x32xf32>
    %610 = vector.extract_strided_slice %608 {offsets = [0, 0, 0], sizes = [2, 16, 32], strides = [1, 1, 1]} : vector<2x32x32xf32> to vector<2x16x32xf32>
    %611 = tpu.concatenate %609, %610 in 1 : vector<2x16x32xf32>, vector<2x16x32xf32> -> vector<2x32x32xf32>
    %612 = vector.shape_cast %611 : vector<2x32x32xf32> to vector<64x32xf32>
    %cst_468 = arith.constant dense<0.000000e+00> : vector<64x32xf32>
    %613 = tpu.matmul %612, %607, %cst_468 {dimension_numbers = #tpu.dot_dimension_numbers<[1], [0], [0], [1], [0, 0, 1, 1], [], []>} : vector<64x32xf32>, vector<32x32xf32>, vector<64x32xf32> -> vector<64x32xf32>
    %c9_469 = arith.constant 9 : index
    %c1_470 = arith.constant 1 : index
    %c32_471 = arith.constant 32 : index
    %c0_472 = arith.constant 0 : index
    %614 = vector.load %arg4[%c9_469, %c1_470, %c32_471, %c0_472] : memref<12x2x96x32xf32, #tpu.memory_space<vmem>>, vector<1x1x32x32xf32>
    %615 = vector.shape_cast %614 : vector<1x1x32x32xf32> to vector<32x32xf32>
    %616 = vector.shape_cast %605 : vector<64x32xf32> to vector<2x32x32xf32>
    %cst_473 = arith.constant 0.000000e+00 : f32
    %617 = vector.broadcast %cst_473 : f32 to vector<2x8x32xf32>
    %618 = vector.extract_strided_slice %616 {offsets = [0, 0, 0], sizes = [2, 24, 32], strides = [1, 1, 1]} : vector<2x32x32xf32> to vector<2x24x32xf32>
    %619 = tpu.concatenate %617, %618 in 1 : vector<2x8x32xf32>, vector<2x24x32xf32> -> vector<2x32x32xf32>
    %620 = vector.shape_cast %619 : vector<2x32x32xf32> to vector<64x32xf32>
    %cst_474 = arith.constant dense<0.000000e+00> : vector<64x32xf32>
    %621 = tpu.matmul %620, %615, %cst_474 {dimension_numbers = #tpu.dot_dimension_numbers<[1], [0], [0], [1], [0, 0, 1, 1], [], []>} : vector<64x32xf32>, vector<32x32xf32>, vector<64x32xf32> -> vector<64x32xf32>
    %622 = arith.addf %613, %621 : vector<64x32xf32>
    %c9_475 = arith.constant 9 : index
    %c1_476 = arith.constant 1 : index
    %c64_477 = arith.constant 64 : index
    %c0_478 = arith.constant 0 : index
    %623 = vector.load %arg4[%c9_475, %c1_476, %c64_477, %c0_478] : memref<12x2x96x32xf32, #tpu.memory_space<vmem>>, vector<1x1x32x32xf32>
    %624 = vector.shape_cast %623 : vector<1x1x32x32xf32> to vector<32x32xf32>
    %cst_479 = arith.constant dense<0.000000e+00> : vector<64x32xf32>
    %625 = tpu.matmul %605, %624, %cst_479 {dimension_numbers = #tpu.dot_dimension_numbers<[1], [0], [0], [1], [0, 0, 1, 1], [], []>} : vector<64x32xf32>, vector<32x32xf32>, vector<64x32xf32> -> vector<64x32xf32>
    %626 = arith.addf %622, %625 : vector<64x32xf32>
    %c9_480 = arith.constant 9 : index
    %c1_481 = arith.constant 1 : index
    %c0_482 = arith.constant 0 : index
    %c0_483 = arith.constant 0 : index
    %627 = vector.load %arg5[%c9_480, %c1_481, %c0_482, %c0_483] : memref<12x2x1x32xf32, #tpu.memory_space<vmem>>, vector<1x1x1x32xf32>
    %628 = vector.shape_cast %627 : vector<1x1x1x32xf32> to vector<1x32xf32>
    %629 = vector.broadcast %628 : vector<1x32xf32> to vector<64x32xf32>
    %630 = arith.mulf %626, %629 : vector<64x32xf32>
    %c9_484 = arith.constant 9 : index
    %c1_485 = arith.constant 1 : index
    %c0_486 = arith.constant 0 : index
    %c0_487 = arith.constant 0 : index
    %631 = vector.load %arg6[%c9_484, %c1_485, %c0_486, %c0_487] : memref<12x2x1x32xf32, #tpu.memory_space<vmem>>, vector<1x1x1x32xf32>
    %632 = vector.shape_cast %631 : vector<1x1x1x32xf32> to vector<1x32xf32>
    %633 = vector.broadcast %632 : vector<1x32xf32> to vector<64x32xf32>
    %634 = arith.addf %630, %633 : vector<64x32xf32>
    %cst_488 = arith.constant 0.000000e+00 : f32
    %635 = vector.broadcast %cst_488 : f32 to vector<64x32xf32>
    %636 = arith.maximumf %634, %635 : vector<64x32xf32>
    %637 = arith.addf %636, %574 : vector<64x32xf32>
    %638 = vector.shape_cast %637 : vector<64x32xf32> to vector<2x32x32xf32>
    %639 = vector.extract_strided_slice %638 {offsets = [0, 31, 0], sizes = [2, 1, 32], strides = [1, 1, 1]} : vector<2x32x32xf32> to vector<2x1x32xf32>
    %640 = vector.shape_cast %639 : vector<2x1x32xf32> to vector<2x32xf32>
    %641 = arith.addf %572, %640 : vector<2x32xf32>
    %cst_489 = arith.constant 0.000000e+00 : f32
    %642 = vector.broadcast %cst_489 : f32 to vector<64x32xf32>
    %643 = arith.maximumf %637, %642 : vector<64x32xf32>
    %c10 = arith.constant 10 : index
    %c0_490 = arith.constant 0 : index
    %c32_491 = arith.constant 32 : index
    %c0_492 = arith.constant 0 : index
    %644 = vector.load %arg4[%c10, %c0_490, %c32_491, %c0_492] : memref<12x2x96x32xf32, #tpu.memory_space<vmem>>, vector<1x1x32x32xf32>
    %645 = vector.shape_cast %644 : vector<1x1x32x32xf32> to vector<32x32xf32>
    %646 = vector.shape_cast %643 : vector<64x32xf32> to vector<2x32x32xf32>
    %cst_493 = arith.constant 0.000000e+00 : f32
    %647 = vector.broadcast %cst_493 : f32 to vector<2x16x32xf32>
    %648 = vector.extract_strided_slice %646 {offsets = [0, 0, 0], sizes = [2, 16, 32], strides = [1, 1, 1]} : vector<2x32x32xf32> to vector<2x16x32xf32>
    %649 = tpu.concatenate %647, %648 in 1 : vector<2x16x32xf32>, vector<2x16x32xf32> -> vector<2x32x32xf32>
    %650 = vector.shape_cast %649 : vector<2x32x32xf32> to vector<64x32xf32>
    %cst_494 = arith.constant dense<0.000000e+00> : vector<64x32xf32>
    %651 = tpu.matmul %650, %645, %cst_494 {dimension_numbers = #tpu.dot_dimension_numbers<[1], [0], [0], [1], [0, 0, 1, 1], [], []>} : vector<64x32xf32>, vector<32x32xf32>, vector<64x32xf32> -> vector<64x32xf32>
    %c10_495 = arith.constant 10 : index
    %c0_496 = arith.constant 0 : index
    %c64_497 = arith.constant 64 : index
    %c0_498 = arith.constant 0 : index
    %652 = vector.load %arg4[%c10_495, %c0_496, %c64_497, %c0_498] : memref<12x2x96x32xf32, #tpu.memory_space<vmem>>, vector<1x1x32x32xf32>
    %653 = vector.shape_cast %652 : vector<1x1x32x32xf32> to vector<32x32xf32>
    %cst_499 = arith.constant dense<0.000000e+00> : vector<64x32xf32>
    %654 = tpu.matmul %643, %653, %cst_499 {dimension_numbers = #tpu.dot_dimension_numbers<[1], [0], [0], [1], [0, 0, 1, 1], [], []>} : vector<64x32xf32>, vector<32x32xf32>, vector<64x32xf32> -> vector<64x32xf32>
    %655 = arith.addf %651, %654 : vector<64x32xf32>
    %c10_500 = arith.constant 10 : index
    %c0_501 = arith.constant 0 : index
    %c0_502 = arith.constant 0 : index
    %c0_503 = arith.constant 0 : index
    %656 = vector.load %arg5[%c10_500, %c0_501, %c0_502, %c0_503] : memref<12x2x1x32xf32, #tpu.memory_space<vmem>>, vector<1x1x1x32xf32>
    %657 = vector.shape_cast %656 : vector<1x1x1x32xf32> to vector<1x32xf32>
    %658 = vector.broadcast %657 : vector<1x32xf32> to vector<64x32xf32>
    %659 = arith.mulf %655, %658 : vector<64x32xf32>
    %c10_504 = arith.constant 10 : index
    %c0_505 = arith.constant 0 : index
    %c0_506 = arith.constant 0 : index
    %c0_507 = arith.constant 0 : index
    %660 = vector.load %arg6[%c10_504, %c0_505, %c0_506, %c0_507] : memref<12x2x1x32xf32, #tpu.memory_space<vmem>>, vector<1x1x1x32xf32>
    %661 = vector.shape_cast %660 : vector<1x1x1x32xf32> to vector<1x32xf32>
    %662 = vector.broadcast %661 : vector<1x32xf32> to vector<64x32xf32>
    %663 = arith.addf %659, %662 : vector<64x32xf32>
    %cst_508 = arith.constant 0.000000e+00 : f32
    %664 = vector.broadcast %cst_508 : f32 to vector<64x32xf32>
    %665 = arith.maximumf %663, %664 : vector<64x32xf32>
    %c10_509 = arith.constant 10 : index
    %c1_510 = arith.constant 1 : index
    %c32_511 = arith.constant 32 : index
    %c0_512 = arith.constant 0 : index
    %666 = vector.load %arg4[%c10_509, %c1_510, %c32_511, %c0_512] : memref<12x2x96x32xf32, #tpu.memory_space<vmem>>, vector<1x1x32x32xf32>
    %667 = vector.shape_cast %666 : vector<1x1x32x32xf32> to vector<32x32xf32>
    %668 = vector.shape_cast %665 : vector<64x32xf32> to vector<2x32x32xf32>
    %cst_513 = arith.constant 0.000000e+00 : f32
    %669 = vector.broadcast %cst_513 : f32 to vector<2x16x32xf32>
    %670 = vector.extract_strided_slice %668 {offsets = [0, 0, 0], sizes = [2, 16, 32], strides = [1, 1, 1]} : vector<2x32x32xf32> to vector<2x16x32xf32>
    %671 = tpu.concatenate %669, %670 in 1 : vector<2x16x32xf32>, vector<2x16x32xf32> -> vector<2x32x32xf32>
    %672 = vector.shape_cast %671 : vector<2x32x32xf32> to vector<64x32xf32>
    %cst_514 = arith.constant dense<0.000000e+00> : vector<64x32xf32>
    %673 = tpu.matmul %672, %667, %cst_514 {dimension_numbers = #tpu.dot_dimension_numbers<[1], [0], [0], [1], [0, 0, 1, 1], [], []>} : vector<64x32xf32>, vector<32x32xf32>, vector<64x32xf32> -> vector<64x32xf32>
    %c10_515 = arith.constant 10 : index
    %c1_516 = arith.constant 1 : index
    %c64_517 = arith.constant 64 : index
    %c0_518 = arith.constant 0 : index
    %674 = vector.load %arg4[%c10_515, %c1_516, %c64_517, %c0_518] : memref<12x2x96x32xf32, #tpu.memory_space<vmem>>, vector<1x1x32x32xf32>
    %675 = vector.shape_cast %674 : vector<1x1x32x32xf32> to vector<32x32xf32>
    %cst_519 = arith.constant dense<0.000000e+00> : vector<64x32xf32>
    %676 = tpu.matmul %665, %675, %cst_519 {dimension_numbers = #tpu.dot_dimension_numbers<[1], [0], [0], [1], [0, 0, 1, 1], [], []>} : vector<64x32xf32>, vector<32x32xf32>, vector<64x32xf32> -> vector<64x32xf32>
    %677 = arith.addf %673, %676 : vector<64x32xf32>
    %c10_520 = arith.constant 10 : index
    %c1_521 = arith.constant 1 : index
    %c0_522 = arith.constant 0 : index
    %c0_523 = arith.constant 0 : index
    %678 = vector.load %arg5[%c10_520, %c1_521, %c0_522, %c0_523] : memref<12x2x1x32xf32, #tpu.memory_space<vmem>>, vector<1x1x1x32xf32>
    %679 = vector.shape_cast %678 : vector<1x1x1x32xf32> to vector<1x32xf32>
    %680 = vector.broadcast %679 : vector<1x32xf32> to vector<64x32xf32>
    %681 = arith.mulf %677, %680 : vector<64x32xf32>
    %c10_524 = arith.constant 10 : index
    %c1_525 = arith.constant 1 : index
    %c0_526 = arith.constant 0 : index
    %c0_527 = arith.constant 0 : index
    %682 = vector.load %arg6[%c10_524, %c1_525, %c0_526, %c0_527] : memref<12x2x1x32xf32, #tpu.memory_space<vmem>>, vector<1x1x1x32xf32>
    %683 = vector.shape_cast %682 : vector<1x1x1x32xf32> to vector<1x32xf32>
    %684 = vector.broadcast %683 : vector<1x32xf32> to vector<64x32xf32>
    %685 = arith.addf %681, %684 : vector<64x32xf32>
    %cst_528 = arith.constant 0.000000e+00 : f32
    %686 = vector.broadcast %cst_528 : f32 to vector<64x32xf32>
    %687 = arith.maximumf %685, %686 : vector<64x32xf32>
    %688 = arith.addf %687, %643 : vector<64x32xf32>
    %689 = vector.shape_cast %688 : vector<64x32xf32> to vector<2x32x32xf32>
    %690 = vector.extract_strided_slice %689 {offsets = [0, 31, 0], sizes = [2, 1, 32], strides = [1, 1, 1]} : vector<2x32x32xf32> to vector<2x1x32xf32>
    %691 = vector.shape_cast %690 : vector<2x1x32xf32> to vector<2x32xf32>
    %692 = arith.addf %641, %691 : vector<2x32xf32>
    %cst_529 = arith.constant 0.000000e+00 : f32
    %693 = vector.broadcast %cst_529 : f32 to vector<64x32xf32>
    %694 = arith.maximumf %688, %693 : vector<64x32xf32>
    %c11 = arith.constant 11 : index
    %c0_530 = arith.constant 0 : index
    %c64_531 = arith.constant 64 : index
    %c0_532 = arith.constant 0 : index
    %695 = vector.load %arg4[%c11, %c0_530, %c64_531, %c0_532] : memref<12x2x96x32xf32, #tpu.memory_space<vmem>>, vector<1x1x32x32xf32>
    %696 = vector.shape_cast %695 : vector<1x1x32x32xf32> to vector<32x32xf32>
    %cst_533 = arith.constant dense<0.000000e+00> : vector<64x32xf32>
    %697 = tpu.matmul %694, %696, %cst_533 {dimension_numbers = #tpu.dot_dimension_numbers<[1], [0], [0], [1], [0, 0, 1, 1], [], []>} : vector<64x32xf32>, vector<32x32xf32>, vector<64x32xf32> -> vector<64x32xf32>
    %c11_534 = arith.constant 11 : index
    %c0_535 = arith.constant 0 : index
    %c0_536 = arith.constant 0 : index
    %c0_537 = arith.constant 0 : index
    %698 = vector.load %arg5[%c11_534, %c0_535, %c0_536, %c0_537] : memref<12x2x1x32xf32, #tpu.memory_space<vmem>>, vector<1x1x1x32xf32>
    %699 = vector.shape_cast %698 : vector<1x1x1x32xf32> to vector<1x32xf32>
    %700 = vector.broadcast %699 : vector<1x32xf32> to vector<64x32xf32>
    %701 = arith.mulf %697, %700 : vector<64x32xf32>
    %c11_538 = arith.constant 11 : index
    %c0_539 = arith.constant 0 : index
    %c0_540 = arith.constant 0 : index
    %c0_541 = arith.constant 0 : index
    %702 = vector.load %arg6[%c11_538, %c0_539, %c0_540, %c0_541] : memref<12x2x1x32xf32, #tpu.memory_space<vmem>>, vector<1x1x1x32xf32>
    %703 = vector.shape_cast %702 : vector<1x1x1x32xf32> to vector<1x32xf32>
    %704 = vector.broadcast %703 : vector<1x32xf32> to vector<64x32xf32>
    %705 = arith.addf %701, %704 : vector<64x32xf32>
    %cst_542 = arith.constant 0.000000e+00 : f32
    %706 = vector.broadcast %cst_542 : f32 to vector<64x32xf32>
    %707 = arith.maximumf %705, %706 : vector<64x32xf32>
    %c11_543 = arith.constant 11 : index
    %c1_544 = arith.constant 1 : index
    %c64_545 = arith.constant 64 : index
    %c0_546 = arith.constant 0 : index
    %708 = vector.load %arg4[%c11_543, %c1_544, %c64_545, %c0_546] : memref<12x2x96x32xf32, #tpu.memory_space<vmem>>, vector<1x1x32x32xf32>
    %709 = vector.shape_cast %708 : vector<1x1x32x32xf32> to vector<32x32xf32>
    %cst_547 = arith.constant dense<0.000000e+00> : vector<64x32xf32>
    %710 = tpu.matmul %707, %709, %cst_547 {dimension_numbers = #tpu.dot_dimension_numbers<[1], [0], [0], [1], [0, 0, 1, 1], [], []>} : vector<64x32xf32>, vector<32x32xf32>, vector<64x32xf32> -> vector<64x32xf32>
    %c11_548 = arith.constant 11 : index
    %c1_549 = arith.constant 1 : index
    %c0_550 = arith.constant 0 : index
    %c0_551 = arith.constant 0 : index
    %711 = vector.load %arg5[%c11_548, %c1_549, %c0_550, %c0_551] : memref<12x2x1x32xf32, #tpu.memory_space<vmem>>, vector<1x1x1x32xf32>
    %712 = vector.shape_cast %711 : vector<1x1x1x32xf32> to vector<1x32xf32>
    %713 = vector.broadcast %712 : vector<1x32xf32> to vector<64x32xf32>
    %714 = arith.mulf %710, %713 : vector<64x32xf32>
    %c11_552 = arith.constant 11 : index
    %c1_553 = arith.constant 1 : index
    %c0_554 = arith.constant 0 : index
    %c0_555 = arith.constant 0 : index
    %715 = vector.load %arg6[%c11_552, %c1_553, %c0_554, %c0_555] : memref<12x2x1x32xf32, #tpu.memory_space<vmem>>, vector<1x1x1x32xf32>
    %716 = vector.shape_cast %715 : vector<1x1x1x32xf32> to vector<1x32xf32>
    %717 = vector.broadcast %716 : vector<1x32xf32> to vector<64x32xf32>
    %718 = arith.addf %714, %717 : vector<64x32xf32>
    %cst_556 = arith.constant 0.000000e+00 : f32
    %719 = vector.broadcast %cst_556 : f32 to vector<64x32xf32>
    %720 = arith.maximumf %718, %719 : vector<64x32xf32>
    %721 = arith.addf %720, %694 : vector<64x32xf32>
    %722 = vector.shape_cast %721 : vector<64x32xf32> to vector<2x32x32xf32>
    %723 = vector.extract_strided_slice %722 {offsets = [0, 31, 0], sizes = [2, 1, 32], strides = [1, 1, 1]} : vector<2x32x32xf32> to vector<2x1x32xf32>
    %724 = vector.shape_cast %723 : vector<2x1x32xf32> to vector<2x32xf32>
    %725 = arith.addf %692, %724 : vector<2x32xf32>
    %c0_557 = arith.constant 0 : index
    %c0_558 = arith.constant 0 : index
    %726 = vector.load %arg7[%c0_557, %c0_558] : memref<32x7xf32, #tpu.memory_space<vmem>>, vector<32x7xf32>
    %cst_559 = arith.constant dense<0.000000e+00> : vector<2x7xf32>
    %727 = tpu.matmul %725, %726, %cst_559 {dimension_numbers = #tpu.dot_dimension_numbers<[1], [0], [0], [1], [0, 0, 1, 1], [], []>} : vector<2x32xf32>, vector<32x7xf32>, vector<2x7xf32> -> vector<2x7xf32>
    %c0_560 = arith.constant 0 : index
    %c0_561 = arith.constant 0 : index
    %728 = vector.load %arg8[%c0_560, %c0_561] : memref<1x7xf32, #tpu.memory_space<vmem>>, vector<1x7xf32>
    %729 = vector.broadcast %728 : vector<1x7xf32> to vector<2x7xf32>
    %730 = arith.addf %727, %729 : vector<2x7xf32>
    %731 = vector.shape_cast %730 : vector<2x7xf32> to vector<2x1x7xf32>
    %c0_562 = arith.constant 0 : index
    %c0_563 = arith.constant 0 : index
    %c0_564 = arith.constant 0 : index
    %732 = vector.load %arg9[%c0_562, %c0_563, %c0_564] : memref<2x1x7xf32, #tpu.memory_space<vmem>>, vector<2x1x7xf32>
    tpu.vector_store %arg9[%c0_562, %c0_563, %c0_564], %731 {strides = array<i32>} : memref<2x1x7xf32, #tpu.memory_space<vmem>>, vector<2x1x7xf32>,
    return
  }
  func.func @transform_0(%arg0: i32) -> (i32, i32, i32) {
    %c0_i32 = arith.constant 0 : i32
    %c0_i32_0 = arith.constant 0 : i32
    %c0_i32_1 = arith.constant 0 : i32
    return %arg0, %c0_i32, %c0_i32_0 : i32, i32, i32
  }
  func.func @transform_1(%arg0: i32) -> (i32, i32) {
    %c0_i32 = arith.constant 0 : i32
    %c0_i32_0 = arith.constant 0 : i32
    %c0_i32_1 = arith.constant 0 : i32
    return %c0_i32, %c0_i32_0 : i32, i32
  }
  func.func @transform_2(%arg0: i32) -> (i32, i32) {
    %c0_i32 = arith.constant 0 : i32
    %c0_i32_0 = arith.constant 0 : i32
    %c0_i32_1 = arith.constant 0 : i32
    return %c0_i32, %c0_i32_0 : i32, i32
  }
  func.func @transform_3(%arg0: i32) -> (i32, i32, i32, i32) {
    %c0_i32 = arith.constant 0 : i32
    %c0_i32_0 = arith.constant 0 : i32
    %c0_i32_1 = arith.constant 0 : i32
    %c0_i32_2 = arith.constant 0 : i32
    %c0_i32_3 = arith.constant 0 : i32
    return %c0_i32, %c0_i32_0, %c0_i32_1, %c0_i32_2 : i32, i32, i32, i32
  }
  func.func @transform_4(%arg0: i32) -> (i32, i32, i32, i32) {
    %c0_i32 = arith.constant 0 : i32
    %c0_i32_0 = arith.constant 0 : i32
    %c0_i32_1 = arith.constant 0 : i32
    %c0_i32_2 = arith.constant 0 : i32
    %c0_i32_3 = arith.constant 0 : i32
    return %c0_i32, %c0_i32_0, %c0_i32_1, %c0_i32_2 : i32, i32, i32, i32
  }
  func.func @transform_5(%arg0: i32) -> (i32, i32, i32, i32) {
    %c0_i32 = arith.constant 0 : i32
    %c0_i32_0 = arith.constant 0 : i32
    %c0_i32_1 = arith.constant 0 : i32
    %c0_i32_2 = arith.constant 0 : i32
    %c0_i32_3 = arith.constant 0 : i32
    return %c0_i32, %c0_i32_0, %c0_i32_1, %c0_i32_2 : i32, i32, i32, i32
  }
  func.func @transform_6(%arg0: i32) -> (i32, i32) {
    %c0_i32 = arith.constant 0 : i32
    %c0_i32_0 = arith.constant 0 : i32
    %c0_i32_1 = arith.constant 0 : i32
    return %c0_i32, %c0_i32_0 : i32, i32
  }
  func.func @transform_7(%arg0: i32) -> (i32, i32) {
    %c0_i32 = arith.constant 0 : i32
    %c0_i32_0 = arith.constant 0 : i32
    %c0_i32_1 = arith.constant 0 : i32
    return %c0_i32, %c0_i32_0 : i32, i32
  }
  func.func @transform_8(%arg0: i32) -> (i32, i32, i32) {
    %c0_i32 = arith.constant 0 : i32
    %c0_i32_0 = arith.constant 0 : i32
    %c0_i32_1 = arith.constant 0 : i32
    return %arg0, %c0_i32, %c0_i32_0 : i32, i32, i32
  }
}

</mosaic_0001>

<bundles_post_ra>
// kernel: tcn_forward.1
= control target key start
LH: loop header
LB: loop body
LE: loop exit
PB: predicated region body
PF: predicated region fallthrough
CT: control target
= control target key end

     0   :  { %vm46_vm0 = vcmask 64512   ;;  %s15395_s0 = inlined_call_operand.vmem [shape: f32[2,32,8], index: 0, kind: input, shape index: {}]   ;;  %s15396_s1 = inlined_call_operand.vmem [shape: f32[8,32], index: 1, kind: input, shape index: {}]   ;;  %s15397_s2 = inlined_call_operand.vmem [shape: f32[1,32], index: 2, kind: input, shape index: {}]   ;;  %s15398_s3 = inlined_call_operand.vmem [shape: f32[12,2,96,32], index: 3, kind: input, shape index: {}]   ;;  %s15399_s4 = inlined_call_operand.vmem [shape: f32[12,2,1,32], index: 4, kind: input, shape index: {}]   ;;  %s15400_s5 = inlined_call_operand.vmem [shape: f32[12,2,1,32], index: 5, kind: input, shape index: {}]   ;;  %s15401_s6 = inlined_call_operand.vmem [shape: f32[32,7], index: 6, kind: input, shape index: {}]   ;;  %s15402_s7 = inlined_call_operand.vmem [shape: f32[1,7], index: 7, kind: input, shape index: {}]   ;;  %s15403_s8 = inlined_call_operand.hbm [shape: f32[2,1,7], index: 8, kind: output, shape index: {}]  }
   0x1   :  { %v38_v0 = vld [vmem:[%s15396_s1] sm:$0xff]  ;;  %v31_v2 = vld [vmem:[%s15395_s0 + $0x8] sm:$0xff]  ;;  %v32_v4 = vld [vmem:[%s15395_s0 + $0x10] sm:$0xff] }
   0x2   :  { %v30_v1 = vld [vmem:[%s15395_s0] sm:$0xff]  ;;  %10938 = vmatprep.subr.mxu0 %v38_v0  ;;  %12649 = vmatprep.subr.mxu1 %v38_v0  ;;  %v35_v5 = vld [vmem:[%s15395_s0 + $0x28] sm:$0xff]  ;;  %v36_v6 = vld [vmem:[%s15395_s0 + $0x30] sm:$0xff] }
   0x3   :  { %10940 = vmatprep.mubr.msk.f32.mxu0 %vm46_vm0, %v30_v1  ;;  %v34_v3 = vld [vmem:[%s15395_s0 + $0x20] sm:$0xff]  ;;  %10939 = vmatpush3.msra.mxu0 %v38_v0  ;;  %v208_v8 = vld [vmem:[%s15398_s3 + $0x28] sm:$0xff] }
   0x4   :  { %10941 = vmatmul.mubr.msk.f32.vlgmr.msra.gmra.mrb[0].mxu0 %vm46_vm0, %v31_v2  ;;  %12650 = vmatpush3.msra.mxu1 %v38_v0  ;;  %v207_v7 = vld [vmem:[%s15398_s3 + $0x20] sm:$0xff] }
   0x5   :  { %13 = vsyncpa [#allocation3], 0  ;;  %10946 = vmatprep.mubr.msk.f32.mxu1 %vm46_vm0, %v34_v3  ;;  %10943 = vmatprep.mubr.msk.f32.mxu0 %vm46_vm0, %v32_v4  ;;  %v33_v9 = vld [vmem:[%s15395_s0 + $0x18] sm:$0xff]  ;;  %v12163_v10 = vpack.c.bf16 %v208_v8, %v207_v7  ;;  %v209_v12 = vld [vmem:[%s15398_s3 + $0x30] sm:$0xff]  ;;  %vm211_vm1 = vcmask 1040384   ;;  %vm230_vm2 = vcmask 261120  }
   0x6   :  { %10947 = vmatmul.mubr.msk.f32.vlgmr.msra.gmra.mrb[0].mxu1 %vm46_vm0, %v35_v5  ;;  %v37_v11 = vld [vmem:[%s15395_s0 + $0x38] sm:$0xff]  ;;  %v176_v15 = vld [vmem:[%s15398_s3] sm:$0xff]  ;;  %v177_v16 = vld [vmem:[%s15398_s3 + $0x8] sm:$0xff]  ;;  %vm188_vm3 = vcmask 1041408   ;;  %vm1151_vm4 = vcmask 1043456   ;;  %vm12972_vm5 = vmmov 0  }
   0x7   :  { %10949 = vmatprep.mubr.msk.f32.mxu1 %vm46_vm0, %v36_v6  ;;  %12164 = vmatprep.subr.bf16.mxu1 %v12163_v10  ;;  %v210_v13 = vld [vmem:[%s15398_s3 + $0x38] sm:$0xff]  ;;  %v12171_v17 = vpack.c.bf16 %v177_v16, %v176_v15  ;;  %v9439_v18 = vld [vmem:[%s15397_s2] ss:$0 sm:$0xff]  ;;  %v178_v24 = vld [vmem:[%s15398_s3 + $0x10] sm:$0xff]  ;;  %vm9321_vm6 = vcmask 1041409   ;;  %vm9420_vm7 = vcmask 49152  }
   0x8   :  { %10944 = vmatmul.mubr.msk.f32.gmra.mrb[2].mxu0 %vm46_vm0, %v33_v9  ;;  %12166 = vmatpush3.bf16.msra.mxu1 %v12163_v10  ;;  %v12167_v14 = vpack.c.bf16 %v210_v13, %v209_v12  ;;  %v179_v25 = vld [vmem:[%s15398_s3 + $0x18] sm:$0xff]  ;;  %v477_v42 = vld [vmem:[%s15398_s3 + $0x40] sm:$0xff]  ;;  %v478_v43 = vld [vmem:[%s15398_s3 + $0x48] sm:$0xff] }
   0x9   :  { %v12175_v33 = vpack.c.bf16 %v179_v25, %v178_v24  ;;  %v12179_v49 = vpack.c.bf16 %v478_v43, %v477_v42  ;;  %v479_v59 = vld [vmem:[%s15398_s3 + $0x50] sm:$0xff]  ;;  %v480_v60 = vld [vmem:[%s15398_s3 + $0x58] sm:$0xff]  ;;  %v9478_v12 = vld [vmem:[%s15398_s3 + $0x80] sm:$0xff] }
   0xa   :  { %10950 = vmatmul.mubr.msk.f32.gmra.mrb[2].mxu1 %vm46_vm0, %v37_v11  ;;  %12168 = vmatprep.subr.bf16.mxu1 %v12167_v14  ;;  %v12183_v63 = vpack.c.bf16 %v480_v60, %v479_v59  ;;  %v9479_v13 = vld [vmem:[%s15398_s3 + $0x88] sm:$0xff]  ;;  %v9480_v15 = vld [vmem:[%s15398_s3 + $0x90] sm:$0xff]  ;;  %v9481_v16 = vld [vmem:[%s15398_s3 + $0x98] sm:$0xff] }
   0xb   :  { %v9519_v24 = vld [vmem:[%s15398_s3 + $0xe8] sm:$0xff] }
   0xc   :  { %12170 = vmatpush3.bf16.msra.mxu1 %v12167_v14  ;;  %v12187_v14 = vpack.c.bf16 %v9479_v13, %v9478_v12 }
   0xd   :  { %12172 = vmatprep.subr.bf16.mxu1 %v12171_v17 }
   0xe   :  { %12188 = vmatprep.subr.bf16.mxu0 %v12187_v14 }
   0xf   :  { %12190 = vmatpush3.bf16.msra.mxu0 %v12187_v14 }
  0xd7   :  { %v10942_v19 = vpop.f32.mrb[0].mxu0 }
  0xd8   :  { %v13078_v20 = vadd.f32 %v10942_v19, %v9439_v18  ;;  %v137_v21 = vpop.f32.mrb[1].mxu0  ;;  %v9475_v19 = vld [vmem:[%s15398_s3 + $0x68] sm:$0xff] }
  0xd9   :  { %v13080_v22 = vadd.f32 %v9439_v18, %v137_v21  ;;  %v10948_v23 = vpop.f32.mrb[0].mxu1 }
  0xda   :  { %v213_v26 = vrot.slane %v13078_v20, 7  ;;  %v157_v27 = vpop.f32.mrb[1].mxu1  ;;  %v13099_v39 = vadd.f32 %v10948_v23, %v9439_v18  ;;  %v190_v57 = vrot.slane %v13078_v20, 6  ;;  %v9518_v23 = vld [vmem:[%s15398_s3 + $0xe0] sm:$0xff] }
  0xdb   :  { %v10945_v28 = vpop.f32.mrb[2].mxu0  ;;  %v13089_v29 = vadd.f32 %v9439_v18, %v157_v27  ;;  %v212_v30 = vrot.slane %v13080_v22, 7  ;;  %v189_v56 = vrot.slane %v13080_v22, 6  ;;  %v12211_v25 = vpack.c.bf16 %v9519_v24, %v9518_v23 }
  0xdc   :  { %v13092_v31 = vadd.f32 %v10945_v28, %v9439_v18  ;;  %v147_v32 = vpop.f32.mrb[3].mxu0  ;;  %v220_v51 = vrot.slane %v13099_v39, 7  ;;  %v197_v5 = vrot.slane %v13099_v39, 6  ;;  %v9473_v28 = vld [vmem:[%s15400_s5] ss:$0 sm:$0xff] }
  0xdd   :  { %v13094_v34 = vadd.f32 %v9439_v18, %v147_v32  ;;  %v10951_v35 = vpop.f32.mrb[2].mxu1  ;;  %v228_v36 = vsel %vm211_vm1, 0.0, %v212_v30  ;;  %v214_v37 = vsel %vm211_vm1, %v212_v30, %v213_v26  ;;  %v219_v38 = vrot.slane %v13089_v29, 7 }
  0xde   :  { %10960 = vmatprep.mubr.msk.f32.mxu1 %vm230_vm2, %v228_v36  ;;  %v167_v40 = vpop.f32.mrb[3].mxu1  ;;  %v217_v41 = vrot.slane %v13092_v31, 7  ;;  %v13116_v50 = vadd.f32 %v10951_v35, %v9439_v18  ;;  %v205_v61 = vsel %vm188_vm3, 0.0, %v189_v56  ;;  %v191_v0 = vsel %vm188_vm3, %v189_v56, %v190_v57 }
  0xdf   :  { %v13109_v44 = vadd.f32 %v9439_v18, %v167_v40  ;;  %10961 = vmatmul.mubr.msk.f32.vlgmr.msra.gmra.mrb[4].mxu1 %vm230_vm2, %v214_v37  ;;  %v215_v45 = vrot.slane %v13094_v34, 7  ;;  %v229_v48 = vsel %vm211_vm1, 0.0, %v219_v38  ;;  %v221_v53 = vsel %vm211_vm1, %v219_v38, %v220_v51  ;;  %v9474_v18 = vld [vmem:[%s15398_s3 + $0x60] sm:$0xff] }
  0xe0   :  { %12174 = vmatpush3.bf16.msra.mxu1 %v12171_v17  ;;  %v224_v54 = vrot.slane %v13116_v50, 7  ;;  %v192_v62 = vrot.slane %v13094_v34, 6  ;;  %v194_v1 = vrot.slane %v13092_v31, 6  ;;  %v196_v3 = vrot.slane %v13089_v29, 6 }
  0xe1   :  { %v216_v46 = vsel %vm211_vm1, %v213_v26, %v215_v45  ;;  %v218_v47 = vsel %vm211_vm1, %v215_v45, %v217_v41  ;;  %12176 = vmatprep.subr.bf16.mxu1 %v12175_v33  ;;  %v222_v52 = vrot.slane %v13109_v44, 7  ;;  %v199_v7 = vrot.slane %v13109_v44, 6  ;;  %v9472_v26 = vld [vmem:[%s15399_s4] ss:$0 sm:$0xff]  ;;  %v9476_v45 = vld [vmem:[%s15398_s3 + $0x70] sm:$0xff] }
  0xe2   :  { %10963 = vmatprep.mubr.msk.f32.mxu1 %vm230_vm2, %v216_v46  ;;  %v193_v2 = vsel %vm188_vm3, %v190_v57, %v192_v62  ;;  %v195_v4 = vsel %vm188_vm3, %v192_v62, %v194_v1  ;;  %v206_v6 = vsel %vm188_vm3, 0.0, %v196_v3  ;;  %v198_v8 = vsel %vm188_vm3, %v196_v3, %v197_v5  ;;  %v9477_v46 = vld [vmem:[%s15398_s3 + $0x78] sm:$0xff] }
  0xe3   :  { %10964 = vmatmul.mubr.msk.f32.gmra.mrb[6].mxu1 %vm230_vm2, %v218_v47  ;;  %v223_v55 = vsel %vm211_vm1, %v220_v51, %v222_v52  ;;  %v225_v58 = vsel %vm211_vm1, %v222_v52, %v224_v54  ;;  %v201_v9 = vrot.slane %v13116_v50, 6  ;;  %v200_v10 = vsel %vm188_vm3, %v197_v5, %v199_v7 }
  0xe4   :  { %10966 = vmatprep.mubr.msk.f32.mxu1 %vm230_vm2, %v229_v48  ;;  %12178 = vmatpush3.bf16.msra.mxu1 %v12175_v33  ;;  %v12191_v17 = vpack.c.bf16 %v9481_v16, %v9480_v15  ;;  %v12195_v21 = vpack.c.bf16 %v9475_v19, %v9474_v18 }
  0xe5   :  { %12180 = vmatprep.subr.bf16.mxu1 %v12179_v49  ;;  %v202_v11 = vsel %vm188_vm3, %v199_v7, %v201_v9 }
  0xe6   :  { %12192 = vmatprep.subr.bf16.mxu0 %v12191_v17 }
  0xe7   :  { %10967 = vmatmul.mubr.msk.f32.gmra.mrb[8].mxu1 %vm230_vm2, %v221_v53  ;;  %12194 = vmatpush3.bf16.msra.mxu0 %v12191_v17 }
  0xe8   :  { %10969 = vmatprep.mubr.msk.f32.mxu1 %vm230_vm2, %v223_v55  ;;  %12196 = vmatprep.subr.bf16.mxu0 %v12195_v21 }
  0xeb   :  { %10970 = vmatmul.mubr.msk.f32.gmra.mrb[10].mxu1 %vm230_vm2, %v225_v58  ;;  %v12199_v58 = vpack.c.bf16 %v9477_v46, %v9476_v45 }
  0xec   :  { %10980 = vmatprep.mubr.msk.f32.mxu1 %vm230_vm2, %v205_v61 }
  0xef   :  { %10981 = vmatmul.mubr.msk.f32.vlgmr.msra.gmra.mrb[4].mxu1 %vm230_vm2, %v191_v0  ;;  %v9499_v0 = vld [vmem:[%s15398_s3 + $0xa8] sm:$0xff] }
  0xf0   :  { %12182 = vmatpush3.bf16.msra.mxu1 %v12179_v49  ;;  %10983 = vmatprep.mubr.msk.f32.mxu1 %vm230_vm2, %v193_v2 }
  0xf1   :  { %12184 = vmatprep.subr.bf16.mxu1 %v12183_v63 }
  0xf3   :  { %10984 = vmatmul.mubr.msk.f32.gmra.mrb[6].mxu1 %vm230_vm2, %v195_v4 }
  0xf4   :  { %10986 = vmatprep.mubr.msk.f32.mxu1 %vm230_vm2, %v206_v6  ;;  %12186 = vmatpush3.bf16.msra.mxu1 %v12183_v63  ;;  %v9498_v63 = vld [vmem:[%s15398_s3 + $0xa0] sm:$0xff] }
  0xf5   :  { %12212 = vmatprep.subr.bf16.mxu1 %v12211_v25  ;;  %v12203_v12 = vpack.c.bf16 %v9499_v0, %v9498_v63 }
  0xf7   :  { %10987 = vmatmul.mubr.msk.f32.gmra.mrb[8].mxu1 %vm230_vm2, %v198_v8 }
  0xf8   :  { %10989 = vmatprep.mubr.msk.f32.mxu1 %vm230_vm2, %v200_v10 }
  0xfb   :  { %10990 = vmatmul.mubr.msk.f32.gmra.mrb[10].mxu1 %vm230_vm2, %v202_v11 }
  0xfc   :  { %11000 = vmatprep.mubr.msk.f32.mxu1 %vm230_vm2, %v13080_v22 }
  0xff   :  { %11001 = vmatmul.mubr.msk.f32.vlgmr.msra.gmra.mrb[4].mxu1 %vm230_vm2, %v13078_v20 }
 0x100   :  { %11003 = vmatprep.mubr.msk.f32.mxu1 %vm230_vm2, %v13094_v34  ;;  %12214 = vmatpush3.bf16.msra.mxu1 %v12211_v25 }
 0x103   :  { %11004 = vmatmul.mubr.msk.f32.gmra.mrb[6].mxu1 %vm230_vm2, %v13092_v31 }
 0x104   :  { %11006 = vmatprep.mubr.msk.f32.mxu1 %vm230_vm2, %v13089_v29 }
 0x107   :  { %11007 = vmatmul.mubr.msk.f32.gmra.mrb[8].mxu1 %vm230_vm2, %v13099_v39 }
 0x108   :  { %11009 = vmatprep.mubr.msk.f32.mxu1 %vm230_vm2, %v13109_v44 }
 0x10b   :  { %11010 = vmatmul.mubr.msk.f32.gmra.mrb[10].mxu1 %vm230_vm2, %v13116_v50 }
 0x1d2   :  { %v11002_v27 = vpop.f32.mrb[4].mxu1 }
 0x1d3   :  { %v618_v30 = vmul.f32 %v11002_v27, %v9472_v26  ;;  %v563_v32 = vpop.f32.mrb[5].mxu1 }
 0x1d4   :  { %v617_v33 = vmul.f32 %v9472_v26, %v563_v32 }
 0x1d5   :  { %v633_v35 = vadd.f32 %v9473_v28, %v618_v30 }
 0x1d6   :  { %v632_v36 = vadd.f32 %v9473_v28, %v617_v33  ;;  %v11005_v37 = vpop.f32.mrb[6].mxu1 }
 0x1d7   :  { %v13206_v38 = vmax.f32 %v633_v35, 0.0  ;;  %v620_v40 = vmul.f32 %v11005_v37, %v9472_v26  ;;  %v573_v41 = vpop.f32.mrb[7].mxu1 }
 0x1d8   :  { %v13208_v42 = vmax.f32 %v632_v36, 0.0  ;;  %v619_v43 = vmul.f32 %v9472_v26, %v573_v41 }
 0x1d9   :  { %v684_v47 = vrot.slane %v13206_v38, 7  ;;  %v635_v48 = vadd.f32 %v9473_v28, %v620_v40  ;;  %v662_v49 = vrot.slane %v13206_v38, 6 }
 0x1da   :  { %v634_v51 = vadd.f32 %v9473_v28, %v619_v43  ;;  %v11008_v52 = vpop.f32.mrb[8].mxu1  ;;  %v683_v53 = vrot.slane %v13208_v42, 7  ;;  %v661_v54 = vrot.slane %v13208_v42, 6 }
 0x1db   :  { %v13220_v55 = vmax.f32 %v635_v48, 0.0  ;;  %v622_v56 = vmul.f32 %v11008_v52, %v9472_v26  ;;  %v583_v57 = vpop.f32.mrb[9].mxu1  ;;  %v9501_v48 = vld [vmem:[%s15398_s3 + $0xb8] sm:$0xff] }
 0x1dc   :  { %v13222_v59 = vmax.f32 %v634_v51, 0.0  ;;  %v621_v60 = vmul.f32 %v9472_v26, %v583_v57  ;;  %v699_v61 = vsel %vm211_vm1, 0.0, %v683_v53  ;;  %v685_v62 = vsel %vm211_vm1, %v683_v53, %v684_v47  ;;  %v9558_v57 = vld [vmem:[%s15398_s3 + $0x140] sm:$0xff] }
 0x1dd   :  { %v666_v1 = vrot.slane %v13220_v55, 6  ;;  %v688_v2 = vrot.slane %v13220_v55, 7  ;;  %v637_v3 = vadd.f32 %v9473_v28, %v622_v56  ;;  %11020 = vmatprep.mubr.msk.f32.mxu0 %vm230_vm2, %v699_v61  ;;  %v663_v8 = vsel %vm188_vm3, %v661_v54, %v662_v49 }
 0x1de   :  { %v664_v4 = vrot.slane %v13222_v59, 6  ;;  %v686_v5 = vrot.slane %v13222_v59, 7  ;;  %v636_v6 = vadd.f32 %v9473_v28, %v621_v60  ;;  %v11011_v7 = vpop.f32.mrb[10].mxu1  ;;  %11021 = vmatmul.mubr.msk.f32.vlgmr.msra.gmra.mrb[4].mxu0 %vm230_vm2, %v685_v62  ;;  %v9511_v60 = vld [vmem:[%s15399_s4 + $0x1] ss:$0 sm:$0xff] }
 0x1df   :  { %v645_v9 = vmax.f32 %v637_v3, 0.0  ;;  %v624_v10 = vmul.f32 %v11011_v7, %v9472_v26  ;;  %12198 = vmatpush3.bf16.msra.mxu0 %v12195_v21  ;;  %v593_v11 = vpop.f32.mrb[11].mxu1  ;;  %v9513_v62 = vld [vmem:[%s15400_s5 + $0x1] ss:$0 sm:$0xff] }
 0x1e0   :  { %v644_v13 = vmax.f32 %v636_v6, 0.0  ;;  %v623_v14 = vmul.f32 %v9472_v26, %v593_v11  ;;  %v687_v15 = vsel %vm211_vm1, %v684_v47, %v686_v5  ;;  %v689_v16 = vsel %vm211_vm1, %v686_v5, %v688_v2  ;;  %12200 = vmatprep.subr.bf16.mxu0 %v12199_v58  ;;  %v9500_v47 = vld [vmem:[%s15398_s3 + $0xb0] sm:$0xff] }
 0x1e1   :  { %v669_v17 = vrot.slane %v645_v9, 6  ;;  %v691_v18 = vrot.slane %v645_v9, 7  ;;  %v639_v19 = vadd.f32 %v9473_v28, %v624_v10  ;;  %11023 = vmatprep.mubr.msk.f32.mxu0 %vm230_vm2, %v687_v15  ;;  %v665_v23 = vsel %vm188_vm3, %v662_v49, %v664_v4 }
 0x1e2   :  { %v638_v24 = vadd.f32 %v9473_v28, %v623_v14  ;;  %11024 = vmatmul.mubr.msk.f32.gmra.mrb[6].mxu0 %vm230_vm2, %v689_v16  ;;  %v690_v21 = vrot.slane %v644_v13, 7  ;;  %v667_v25 = vsel %vm188_vm3, %v664_v4, %v666_v1  ;;  %v668_v27 = vrot.slane %v644_v13, 6 }
 0x1e3   :  { %v647_v26 = vmax.f32 %v639_v19, 0.0  ;;  %12202 = vmatpush3.bf16.msra.mxu0 %v12199_v58  ;;  %v677_v49 = vsel %vm188_vm3, 0.0, %v661_v54  ;;  %v12207_v51 = vpack.c.bf16 %v9501_v48, %v9500_v47  ;;  %v9514_v54 = vld [vmem:[%s15398_s3 + $0xc0] sm:$0xff]  ;;  %v9559_v58 = vld [vmem:[%s15398_s3 + $0x148] sm:$0xff] }
 0x1e4   :  { %v646_v30 = vmax.f32 %v638_v24, 0.0  ;;  %v700_v32 = vsel %vm211_vm1, 0.0, %v690_v21  ;;  %v692_v33 = vsel %vm211_vm1, %v690_v21, %v691_v18  ;;  %12204 = vmatprep.subr.bf16.mxu0 %v12203_v12  ;;  %v670_v28 = vsel %vm188_vm3, %v668_v27, %v669_v17  ;;  %v9516_v21 = vld [vmem:[%s15398_s3 + $0xd0] sm:$0xff] }
 0x1e5   :  { %v673_v35 = vrot.slane %v647_v26, 6  ;;  %v695_v36 = vrot.slane %v647_v26, 7  ;;  %11026 = vmatprep.mubr.msk.f32.mxu0 %vm230_vm2, %v700_v32  ;;  %v678_v52 = vsel %vm188_vm3, 0.0, %v668_v27 }
 0x1e6   :  { %v671_v37 = vrot.slane %v646_v30, 6  ;;  %v693_v40 = vrot.slane %v646_v30, 7  ;;  %11027 = vmatmul.mubr.msk.f32.gmra.mrb[8].mxu0 %vm230_vm2, %v692_v33 }
 0x1e8   :  { %v694_v41 = vsel %vm211_vm1, %v691_v18, %v693_v40  ;;  %v696_v43 = vsel %vm211_vm1, %v693_v40, %v695_v36  ;;  %v672_v45 = vsel %vm188_vm3, %v669_v17, %v671_v37  ;;  %v674_v46 = vsel %vm188_vm3, %v671_v37, %v673_v35 }
 0x1e9   :  { %11029 = vmatprep.mubr.msk.f32.mxu0 %vm230_vm2, %v694_v41 }
 0x1ea   :  { %11030 = vmatmul.mubr.msk.f32.gmra.mrb[10].mxu0 %vm230_vm2, %v696_v43 }
 0x1eb   :  { %11040 = vmatprep.mubr.msk.f32.mxu0 %vm230_vm2, %v677_v49 }
 0x1ee   :  { %11041 = vmatmul.mubr.msk.f32.vlgmr.msra.gmra.mrb[4].mxu0 %vm230_vm2, %v663_v8 }
 0x1ef   :  { %12206 = vmatpush3.bf16.msra.mxu0 %v12203_v12  ;;  %11043 = vmatprep.mubr.msk.f32.mxu0 %vm230_vm2, %v665_v23 }
 0x1f0   :  { %12208 = vmatprep.subr.bf16.mxu0 %v12207_v51 }
 0x1f2   :  { %11044 = vmatmul.mubr.msk.f32.gmra.mrb[6].mxu0 %vm230_vm2, %v667_v25 }
 0x1f3   :  { %11046 = vmatprep.mubr.msk.f32.mxu0 %vm230_vm2, %v678_v52  ;;  %12210 = vmatpush3.bf16.msra.mxu0 %v12207_v51 }
 0x1f6   :  { %11047 = vmatmul.mubr.msk.f32.gmra.mrb[8].mxu0 %vm230_vm2, %v670_v28 }
 0x1f7   :  { %11049 = vmatprep.mubr.msk.f32.mxu0 %vm230_vm2, %v672_v45 }
 0x1fa   :  { %11050 = vmatmul.mubr.msk.f32.gmra.mrb[10].mxu0 %vm230_vm2, %v674_v46  ;;  %v9539_v46 = vld [vmem:[%s15398_s3 + $0x108] sm:$0xff] }
 0x1fb   :  { %11060 = vmatprep.mubr.msk.f32.mxu0 %vm230_vm2, %v13208_v42  ;;  %v9520_v42 = vld [vmem:[%s15398_s3 + $0xf0] sm:$0xff] }
 0x1fe   :  { %11061 = vmatmul.mubr.msk.f32.vlgmr.msra.gmra.mrb[4].mxu0 %vm230_vm2, %v13206_v38  ;;  %v9521_v38 = vld [vmem:[%s15398_s3 + $0xf8] sm:$0xff] }
 0x1ff   :  { %11063 = vmatprep.mubr.msk.f32.mxu0 %vm230_vm2, %v13222_v59  ;;  %v12215_v53 = vpack.c.bf16 %v9521_v38, %v9520_v42  ;;  %v12235_v59 = vpack.c.bf16 %v9559_v58, %v9558_v57 }
 0x201   :  { %12216 = vmatprep.subr.bf16.mxu1 %v12215_v53  ;;  %12236 = vmatprep.subr.bf16.mxu0 %v12235_v59 }
 0x202   :  { %11064 = vmatmul.mubr.msk.f32.gmra.mrb[6].mxu0 %vm230_vm2, %v13220_v55  ;;  %12218 = vmatpush3.bf16.msra.mxu1 %v12215_v53  ;;  %v9515_v55 = vld [vmem:[%s15398_s3 + $0xc8] sm:$0xff] }
 0x203   :  { %11066 = vmatprep.mubr.msk.f32.mxu0 %vm230_vm2, %v644_v13  ;;  %v13296_v56 = vpack.c.bf16 %v9515_v55, %v9514_v54  ;;  %12238 = vmatpush3.bf16.msra.mxu0 %v12235_v59 }
 0x205   :  { %12220 = vmatprep.subr.bf16.mxu1 %v13296_v56 }
 0x206   :  { %11067 = vmatmul.mubr.msk.f32.gmra.mrb[8].mxu0 %vm230_vm2, %v645_v9 }
 0x207   :  { %11069 = vmatprep.mubr.msk.f32.mxu0 %vm230_vm2, %v646_v30 }
 0x20a   :  { %11070 = vmatmul.mubr.msk.f32.gmra.mrb[10].mxu0 %vm230_vm2, %v647_v26 }
 0x2d1   :  { %v11062_v61 = vpop.f32.mrb[4].mxu0 }
 0x2d2   :  { %v1089_v63 = vmul.f32 %v11062_v61, %v9511_v60  ;;  %v1033_v0 = vpop.f32.mrb[5].mxu0 }
 0x2d3   :  { %v1088_v1 = vmul.f32 %v9511_v60, %v1033_v0 }
 0x2d4   :  { %v1105_v2 = vadd.f32 %v9513_v62, %v1089_v63 }
 0x2d5   :  { %v1104_v3 = vadd.f32 %v9513_v62, %v1088_v1  ;;  %v11065_v4 = vpop.f32.mrb[6].mxu0 }
 0x2d6   :  { %v1113_v5 = vmax.f32 %v1105_v2, 0.0  ;;  %v1091_v6 = vmul.f32 %v11065_v4, %v9511_v60  ;;  %v1043_v7 = vpop.f32.mrb[7].mxu0 }
 0x2d7   :  { %v1112_v8 = vmax.f32 %v1104_v3, 0.0  ;;  %v1090_v9 = vmul.f32 %v9511_v60, %v1043_v7  ;;  %v9541_v7 = vld [vmem:[%s15398_s3 + $0x118] sm:$0xff] }
 0x2d8   :  { %v1121_v10 = vadd.f32 %v1113_v5, %v13078_v20  ;;  %v1107_v11 = vadd.f32 %v9513_v62, %v1091_v6  ;;  %v9517_v20 = vld [vmem:[%s15398_s3 + $0xd8] sm:$0xff]  ;;  %v9540_v6 = vld [vmem:[%s15398_s3 + $0x110] sm:$0xff] }
 0x2d9   :  { %v1120_v12 = vadd.f32 %v1112_v8, %v13080_v22  ;;  %v1106_v13 = vadd.f32 %v9513_v62, %v1090_v9  ;;  %v11068_v14 = vpop.f32.mrb[8].mxu0  ;;  %v12223_v40 = vpack.c.bf16 %v9517_v20, %v9516_v21 }
 0x2da   :  { %v13313_v15 = vmax.f32 %v1121_v10, 0.0  ;;  %v1115_v16 = vmax.f32 %v1107_v11, 0.0  ;;  %v1093_v17 = vmul.f32 %v11068_v14, %v9511_v60  ;;  %v1053_v18 = vpop.f32.mrb[9].mxu0  ;;  %v12231_v10 = vpack.c.bf16 %v9541_v7, %v9540_v6 }
 0x2db   :  { %v13315_v19 = vmax.f32 %v1120_v12, 0.0  ;;  %v1114_v23 = vmax.f32 %v1106_v13, 0.0  ;;  %v1092_v24 = vmul.f32 %v9511_v60, %v1053_v18 }
 0x2dc   :  { %v13324_v22 = vadd.f32 %v1115_v16, %v13092_v31  ;;  %v1109_v25 = vadd.f32 %v9513_v62, %v1093_v17  ;;  %v1175_v27 = vrot.slane %v13313_v15, 6  ;;  %v1153_v5 = vrot.slane %v13313_v15, 4 }
 0x2dd   :  { %v1122_v26 = vadd.f32 %v1114_v23, %v13094_v34  ;;  %v1108_v30 = vadd.f32 %v9513_v62, %v1092_v24  ;;  %v11071_v32 = vpop.f32.mrb[10].mxu0  ;;  %v1174_v33 = vrot.slane %v13315_v19, 6  ;;  %v9538_v34 = vld [vmem:[%s15398_s3 + $0x100] sm:$0xff]  ;;  %v1152_v2 = vrot.slane %v13315_v19, 4 }
 0x2de   :  { %v13330_v35 = vmax.f32 %v13324_v22, 0.0  ;;  %v1117_v36 = vmax.f32 %v1109_v25, 0.0  ;;  %v1095_v28 = vmul.f32 %v11071_v32, %v9511_v60  ;;  %v1063_v37 = vpop.f32.mrb[11].mxu0  ;;  %v9554_v32 = vld [vmem:[%s15398_s3 + $0x120] sm:$0xff] }
 0x2df   :  { %v13332_v41 = vmax.f32 %v1122_v26, 0.0  ;;  %v1116_v31 = vmax.f32 %v1108_v30, 0.0  ;;  %v1094_v43 = vmul.f32 %v9511_v60, %v1063_v37  ;;  %v1190_v45 = vsel %vm188_vm3, 0.0, %v1174_v33  ;;  %v9561_v26 = vld [vmem:[%s15398_s3 + $0x158] sm:$0xff]  ;;  %v9599_v37 = vld [vmem:[%s15398_s3 + $0x1a8] sm:$0xff] }
 0x2e0   :  { %v1125_v47 = vadd.f32 %v1117_v36, %v13099_v39  ;;  %v1111_v48 = vadd.f32 %v9513_v62, %v1095_v28  ;;  %11080 = vmatprep.mubr.msk.f32.mxu1 %vm230_vm2, %v1190_v45  ;;  %v1176_v49 = vsel %vm188_vm3, %v1174_v33, %v1175_v27  ;;  %v1179_v51 = vrot.slane %v13330_v35, 6  ;;  %v9555_v33 = vld [vmem:[%s15398_s3 + $0x128] sm:$0xff]  ;;  %v9598_v28 = vld [vmem:[%s15398_s3 + $0x1a0] sm:$0xff] }
 0x2e1   :  { %v1124_v52 = vadd.f32 %v1116_v31, %v13089_v29  ;;  %v1110_v42 = vadd.f32 %v9513_v62, %v1094_v43  ;;  %11081 = vmatmul.mubr.msk.f32.vlgmr.msra.gmra.mrb[12].mxu1 %vm230_vm2, %v1176_v49  ;;  %v1177_v38 = vrot.slane %v13332_v41, 6  ;;  %v12227_v39 = vpack.c.bf16 %v9539_v46, %v9538_v34  ;;  %v9551_v31 = vld [vmem:[%s15399_s4 + $0x2] ss:$0 sm:$0xff] }
 0x2e2   :  { %v13348_v53 = vmax.f32 %v1125_v47, 0.0  ;;  %v1119_v54 = vmax.f32 %v1111_v48, 0.0  ;;  %12222 = vmatpush3.bf16.msra.mxu1 %v13296_v56  ;;  %v1168_v8 = vsel %vm1151_vm4, 0.0, %v1152_v2  ;;  %v1155_v9 = vrot.slane %v13332_v41, 4  ;;  %v9553_v45 = vld [vmem:[%s15400_s5 + $0x2] ss:$0 sm:$0xff] }
 0x2e3   :  { %v13351_v55 = vmax.f32 %v1124_v52, 0.0  ;;  %v1118_v57 = vmax.f32 %v1110_v42, 0.0  ;;  %v1178_v58 = vsel %vm188_vm3, %v1175_v27, %v1177_v38  ;;  %v1180_v59 = vsel %vm188_vm3, %v1177_v38, %v1179_v51  ;;  %12224 = vmatprep.subr.bf16.mxu1 %v12223_v40  ;;  %v9560_v27 = vld [vmem:[%s15398_s3 + $0x150] sm:$0xff] }
 0x2e4   :  { %v13356_v29 = vadd.f32 %v1119_v54, %v13116_v50  ;;  %11083 = vmatprep.mubr.msk.f32.mxu1 %vm230_vm2, %v1178_v58  ;;  %v1182_v60 = vrot.slane %v13348_v53, 6  ;;  %v1154_v11 = vsel %vm1151_vm4, %v1152_v2, %v1153_v5  ;;  %v1157_v12 = vrot.slane %v13330_v35, 4  ;;  %v9557_v58 = vld [vmem:[%s15398_s3 + $0x138] sm:$0xff] }
 0x2e5   :  { %v1126_v61 = vadd.f32 %v1118_v57, %v13109_v44  ;;  %11084 = vmatmul.mubr.msk.f32.gmra.mrb[14].mxu1 %vm230_vm2, %v1180_v59  ;;  %v1181_v56 = vrot.slane %v13351_v55, 6  ;;  %v1156_v13 = vsel %vm1151_vm4, %v1153_v5, %v1155_v9  ;;  %v1159_v14 = vrot.slane %v13351_v55, 4  ;;  %v9556_v57 = vld [vmem:[%s15398_s3 + $0x130] sm:$0xff] }
 0x2e6   :  { %v13364_v62 = vmax.f32 %v13356_v29, 0.0  ;;  %12226 = vmatpush3.bf16.msra.mxu1 %v12223_v40  ;;  %v1158_v16 = vsel %vm1151_vm4, %v1155_v9, %v1157_v12  ;;  %v1160_v17 = vrot.slane %v13348_v53, 4  ;;  %v12239_v30 = vpack.c.bf16 %v9561_v26, %v9560_v27  ;;  %v9578_v9 = vld [vmem:[%s15398_s3 + $0x160] sm:$0xff] }
 0x2e7   :  { %v13366_v63 = vmax.f32 %v1126_v61, 0.0  ;;  %v1191_v0 = vsel %vm188_vm3, 0.0, %v1181_v56  ;;  %v1183_v50 = vsel %vm188_vm3, %v1181_v56, %v1182_v60  ;;  %12228 = vmatprep.subr.bf16.mxu1 %v12227_v39  ;;  %v1169_v18 = vsel %vm1151_vm4, 0.0, %v1159_v14 }
 0x2e8   :  { %11086 = vmatprep.mubr.msk.f32.mxu1 %vm230_vm2, %v1191_v0  ;;  %v1186_v1 = vrot.slane %v13364_v62, 6  ;;  %v1161_v24 = vsel %vm1151_vm4, %v1159_v14, %v1160_v17  ;;  %v1164_v21 = vrot.slane %v13364_v62, 4  ;;  %12240 = vmatprep.subr.bf16.mxu0 %v12239_v30  ;;  %v12243_v36 = vpack.c.bf16 %v9555_v33, %v9554_v32 }
 0x2e9   :  { %11087 = vmatmul.mubr.msk.f32.gmra.mrb[16].mxu1 %vm230_vm2, %v1183_v50  ;;  %v1184_v44 = vrot.slane %v13366_v63, 6  ;;  %v1162_v23 = vrot.slane %v13366_v63, 4  ;;  %12242 = vmatpush3.bf16.msra.mxu0 %v12239_v30  ;;  %v12259_v40 = vpack.c.bf16 %v9599_v37, %v9598_v28 }
 0x2ea   :  { %12244 = vmatprep.subr.bf16.mxu0 %v12243_v36 }
 0x2eb   :  { %v1185_v3 = vsel %vm188_vm3, %v1182_v60, %v1184_v44  ;;  %v1187_v4 = vsel %vm188_vm3, %v1184_v44, %v1186_v1  ;;  %v1163_v20 = vsel %vm1151_vm4, %v1160_v17, %v1162_v23  ;;  %v1165_v25 = vsel %vm1151_vm4, %v1162_v23, %v1164_v21 }
 0x2ec   :  { %11089 = vmatprep.mubr.msk.f32.mxu1 %vm230_vm2, %v1185_v3 }
 0x2ed   :  { %11090 = vmatmul.mubr.msk.f32.gmra.mrb[18].mxu1 %vm230_vm2, %v1187_v4  ;;  %v12247_v4 = vpack.c.bf16 %v9557_v58, %v9556_v57 }
 0x2ee   :  { %11100 = vmatprep.mubr.msk.f32.mxu1 %vm230_vm2, %v1168_v8 }
 0x2f1   :  { %11101 = vmatmul.mubr.msk.f32.vlgmr.msra.gmra.mrb[12].mxu1 %vm230_vm2, %v1154_v11 }
 0x2f2   :  { %12230 = vmatpush3.bf16.msra.mxu1 %v12227_v39  ;;  %11103 = vmatprep.mubr.msk.f32.mxu1 %vm230_vm2, %v1156_v13 }
 0x2f3   :  { %12232 = vmatprep.subr.bf16.mxu1 %v12231_v10 }
 0x2f5   :  { %11104 = vmatmul.mubr.msk.f32.gmra.mrb[14].mxu1 %vm230_vm2, %v1158_v16 }
 0x2f6   :  { %11106 = vmatprep.mubr.msk.f32.mxu1 %vm230_vm2, %v1169_v18  ;;  %12234 = vmatpush3.bf16.msra.mxu1 %v12231_v10  ;;  %v9579_v10 = vld [vmem:[%s15398_s3 + $0x168] sm:$0xff] }
 0x2f7   :  { %12260 = vmatprep.subr.bf16.mxu1 %v12259_v40 }
 0x2f9   :  { %11107 = vmatmul.mubr.msk.f32.gmra.mrb[16].mxu1 %vm230_vm2, %v1161_v24 }
 0x2fa   :  { %11109 = vmatprep.mubr.msk.f32.mxu1 %vm230_vm2, %v1163_v20 }
 0x2fd   :  { %11110 = vmatmul.mubr.msk.f32.gmra.mrb[18].mxu1 %vm230_vm2, %v1165_v25  ;;  %v12251_v25 = vpack.c.bf16 %v9579_v10, %v9578_v9  ;;  %v9593_v10 = vld [vmem:[%s15400_s5 + $0x3] ss:$0 sm:$0xff] }
 0x2fe   :  { %11120 = vmatprep.mubr.msk.f32.mxu1 %vm230_vm2, %v13315_v19 }
 0x301   :  { %11121 = vmatmul.mubr.msk.f32.vlgmr.msra.gmra.mrb[12].mxu1 %vm230_vm2, %v13313_v15 }
 0x302   :  { %11123 = vmatprep.mubr.msk.f32.mxu1 %vm230_vm2, %v13332_v41  ;;  %12262 = vmatpush3.bf16.msra.mxu1 %v12259_v40 }
 0x305   :  { %11124 = vmatmul.mubr.msk.f32.gmra.mrb[14].mxu1 %vm230_vm2, %v13330_v35 }
 0x306   :  { %11126 = vmatprep.mubr.msk.f32.mxu1 %vm230_vm2, %v13351_v55 }
 0x309   :  { %11127 = vmatmul.mubr.msk.f32.gmra.mrb[16].mxu1 %vm230_vm2, %v13348_v53 }
 0x30a   :  { %11129 = vmatprep.mubr.msk.f32.mxu1 %vm230_vm2, %v13366_v63 }
 0x30d   :  { %11130 = vmatmul.mubr.msk.f32.gmra.mrb[18].mxu1 %vm230_vm2, %v13364_v62 }
 0x3d4   :  { %v11122_v43 = vpop.f32.mrb[12].mxu1 }
 0x3d5   :  { %v1580_v34 = vmul.f32 %v11122_v43, %v9551_v31  ;;  %v1524_v46 = vpop.f32.mrb[13].mxu1 }
 0x3d6   :  { %v1579_v47 = vmul.f32 %v9551_v31, %v1524_v46 }
 0x3d7   :  { %v1596_v48 = vadd.f32 %v9553_v45, %v1580_v34 }
 0x3d8   :  { %v1595_v49 = vadd.f32 %v9553_v45, %v1579_v47  ;;  %v11125_v51 = vpop.f32.mrb[14].mxu1 }
 0x3d9   :  { %v13448_v52 = vmax.f32 %v1596_v48, 0.0  ;;  %v1582_v42 = vmul.f32 %v11125_v51, %v9551_v31  ;;  %v1534_v38 = vpop.f32.mrb[15].mxu1 }
 0x3da   :  { %v13450_v54 = vmax.f32 %v1595_v49, 0.0  ;;  %v1581_v39 = vmul.f32 %v9551_v31, %v1534_v38 }
 0x3db   :  { %v1647_v59 = vrot.slane %v13448_v52, 6  ;;  %v1598_v60 = vadd.f32 %v9553_v45, %v1582_v42  ;;  %v1625_v61 = vrot.slane %v13448_v52, 4 }
 0x3dc   :  { %v1597_v56 = vadd.f32 %v9553_v45, %v1581_v39  ;;  %v11128_v0 = vpop.f32.mrb[16].mxu1  ;;  %v1646_v50 = vrot.slane %v13450_v54, 6  ;;  %v1624_v1 = vrot.slane %v13450_v54, 4 }
 0x3dd   :  { %v13462_v44 = vmax.f32 %v1598_v60, 0.0  ;;  %v1584_v2 = vmul.f32 %v11128_v0, %v9551_v31  ;;  %v1544_v3 = vpop.f32.mrb[17].mxu1 }
 0x3de   :  { %v13464_v5 = vmax.f32 %v1597_v56, 0.0  ;;  %v1583_v6 = vmul.f32 %v9551_v31, %v1544_v3  ;;  %v1662_v7 = vsel %vm188_vm3, 0.0, %v1646_v50  ;;  %v1648_v8 = vsel %vm188_vm3, %v1646_v50, %v1647_v59  ;;  %v9581_v56 = vld [vmem:[%s15398_s3 + $0x178] sm:$0xff]  ;;  %v9595_v3 = vld [vmem:[%s15398_s3 + $0x188] sm:$0xff] }
 0x3df   :  { %v1629_v11 = vrot.slane %v13462_v44, 4  ;;  %v1651_v12 = vrot.slane %v13462_v44, 6  ;;  %v1600_v13 = vadd.f32 %v9553_v45, %v1584_v2  ;;  %11140 = vmatprep.mubr.msk.f32.mxu0 %vm230_vm2, %v1662_v7  ;;  %v1626_v23 = vsel %vm1151_vm4, %v1624_v1, %v1625_v61 }
 0x3e0   :  { %v1627_v14 = vrot.slane %v13464_v5, 4  ;;  %v1649_v16 = vrot.slane %v13464_v5, 6  ;;  %v1599_v17 = vadd.f32 %v9553_v45, %v1583_v6  ;;  %v11131_v18 = vpop.f32.mrb[18].mxu1  ;;  %11141 = vmatmul.mubr.msk.f32.vlgmr.msra.gmra.mrb[12].mxu0 %vm230_vm2, %v1648_v8  ;;  %v1640_v0 = vsel %vm1151_vm4, 0.0, %v1624_v1  ;;  %v9637_v6 = vld [vmem:[%s15398_s3 + $0x208] sm:$0xff] }
 0x3e1   :  { %v1608_v24 = vmax.f32 %v1600_v13, 0.0  ;;  %v1586_v21 = vmul.f32 %v11131_v18, %v9551_v31  ;;  %12246 = vmatpush3.bf16.msra.mxu0 %v12243_v36  ;;  %v1554_v20 = vpop.f32.mrb[19].mxu1  ;;  %v9591_v8 = vld [vmem:[%s15399_s4 + $0x3] ss:$0 sm:$0xff] }
 0x3e2   :  { %v1607_v27 = vmax.f32 %v1599_v17, 0.0  ;;  %v1585_v26 = vmul.f32 %v9551_v31, %v1554_v20  ;;  %v1650_v30 = vsel %vm188_vm3, %v1647_v59, %v1649_v16  ;;  %v1652_v32 = vsel %vm188_vm3, %v1649_v16, %v1651_v12  ;;  %12248 = vmatprep.subr.bf16.mxu0 %v12247_v4 }
 0x3e3   :  { %v1632_v33 = vrot.slane %v1608_v24, 4  ;;  %v1654_v28 = vrot.slane %v1608_v24, 6  ;;  %v1602_v37 = vadd.f32 %v9553_v45, %v1586_v21  ;;  %11143 = vmatprep.mubr.msk.f32.mxu0 %vm230_vm2, %v1650_v30  ;;  %v1628_v40 = vsel %vm1151_vm4, %v1625_v61, %v1627_v14  ;;  %v9580_v61 = vld [vmem:[%s15398_s3 + $0x170] sm:$0xff] }
 0x3e4   :  { %v1601_v43 = vadd.f32 %v9553_v45, %v1585_v26  ;;  %11144 = vmatmul.mubr.msk.f32.gmra.mrb[14].mxu0 %vm230_vm2, %v1652_v32  ;;  %v1653_v36 = vrot.slane %v1607_v27, 6  ;;  %v1630_v34 = vsel %vm1151_vm4, %v1627_v14, %v1629_v11  ;;  %v1631_v46 = vrot.slane %v1607_v27, 4 }
 0x3e5   :  { %v1610_v31 = vmax.f32 %v1602_v37, 0.0  ;;  %12250 = vmatpush3.bf16.msra.mxu0 %v12247_v4  ;;  %v12255_v50 = vpack.c.bf16 %v9581_v56, %v9580_v61  ;;  %v9617_v56 = vld [vmem:[%s15398_s3 + $0x1c8] sm:$0xff] }
 0x3e6   :  { %v1609_v47 = vmax.f32 %v1601_v43, 0.0  ;;  %v1663_v48 = vsel %vm188_vm3, 0.0, %v1653_v36  ;;  %v1655_v49 = vsel %vm188_vm3, %v1653_v36, %v1654_v28  ;;  %12252 = vmatprep.subr.bf16.mxu0 %v12251_v25  ;;  %v1633_v45 = vsel %vm1151_vm4, %v1631_v46, %v1632_v33 }
 0x3e7   :  { %v1636_v51 = vrot.slane %v1610_v31, 4  ;;  %v1658_v42 = vrot.slane %v1610_v31, 6  ;;  %11146 = vmatprep.mubr.msk.f32.mxu0 %vm230_vm2, %v1663_v48  ;;  %v1641_v2 = vsel %vm1151_vm4, 0.0, %v1631_v46  ;;  %v9596_v46 = vld [vmem:[%s15398_s3 + $0x190] sm:$0xff] }
 0x3e8   :  { %v1634_v38 = vrot.slane %v1609_v47, 4  ;;  %v1656_v39 = vrot.slane %v1609_v47, 6  ;;  %11147 = vmatmul.mubr.msk.f32.gmra.mrb[16].mxu0 %vm230_vm2, %v1655_v49 }
 0x3ea   :  { %v1657_v57 = vsel %vm188_vm3, %v1654_v28, %v1656_v39  ;;  %v1659_v58 = vsel %vm188_vm3, %v1656_v39, %v1658_v42  ;;  %v1635_v59 = vsel %vm1151_vm4, %v1632_v33, %v1634_v38  ;;  %v1637_v60 = vsel %vm1151_vm4, %v1634_v38, %v1636_v51 }
 0x3eb   :  { %11149 = vmatprep.mubr.msk.f32.mxu0 %vm230_vm2, %v1657_v57 }
 0x3ec   :  { %11150 = vmatmul.mubr.msk.f32.gmra.mrb[18].mxu0 %vm230_vm2, %v1659_v58 }
 0x3ed   :  { %11160 = vmatprep.mubr.msk.f32.mxu0 %vm230_vm2, %v1640_v0 }
 0x3f0   :  { %11161 = vmatmul.mubr.msk.f32.vlgmr.msra.gmra.mrb[12].mxu0 %vm230_vm2, %v1626_v23 }
 0x3f1   :  { %12254 = vmatpush3.bf16.msra.mxu0 %v12251_v25  ;;  %11163 = vmatprep.mubr.msk.f32.mxu0 %vm230_vm2, %v1628_v40 }
 0x3f2   :  { %12256 = vmatprep.subr.bf16.mxu0 %v12255_v50 }
 0x3f4   :  { %11164 = vmatmul.mubr.msk.f32.gmra.mrb[14].mxu0 %vm230_vm2, %v1630_v34 }
 0x3f5   :  { %11166 = vmatprep.mubr.msk.f32.mxu0 %vm230_vm2, %v1641_v2  ;;  %12258 = vmatpush3.bf16.msra.mxu0 %v12255_v50 }
 0x3f8   :  { %11167 = vmatmul.mubr.msk.f32.gmra.mrb[16].mxu0 %vm230_vm2, %v1633_v45 }
 0x3f9   :  { %11169 = vmatprep.mubr.msk.f32.mxu0 %vm230_vm2, %v1635_v59 }
 0x3fc   :  { %11170 = vmatmul.mubr.msk.f32.gmra.mrb[18].mxu0 %vm230_vm2, %v1637_v60 }
 0x3fd   :  { %11180 = vmatprep.mubr.msk.f32.mxu0 %vm230_vm2, %v13450_v54  ;;  %v9600_v54 = vld [vmem:[%s15398_s3 + $0x1b0] sm:$0xff] }
 0x400   :  { %11181 = vmatmul.mubr.msk.f32.vlgmr.msra.gmra.mrb[12].mxu0 %vm230_vm2, %v13448_v52  ;;  %v9601_v52 = vld [vmem:[%s15398_s3 + $0x1b8] sm:$0xff] }
 0x401   :  { %11183 = vmatprep.mubr.msk.f32.mxu0 %vm230_vm2, %v13464_v5  ;;  %v12263_v1 = vpack.c.bf16 %v9601_v52, %v9600_v54  ;;  %v9636_v5 = vld [vmem:[%s15398_s3 + $0x200] sm:$0xff] }
 0x402   :  { %v12283_v7 = vpack.c.bf16 %v9637_v6, %v9636_v5 }
 0x403   :  { %12264 = vmatprep.subr.bf16.mxu1 %v12263_v1 }
 0x404   :  { %11184 = vmatmul.mubr.msk.f32.gmra.mrb[14].mxu0 %vm230_vm2, %v13462_v44  ;;  %12266 = vmatpush3.bf16.msra.mxu1 %v12263_v1  ;;  %v9594_v44 = vld [vmem:[%s15398_s3 + $0x180] sm:$0xff] }
 0x405   :  { %11186 = vmatprep.mubr.msk.f32.mxu0 %vm230_vm2, %v1607_v27  ;;  %v13538_v4 = vpack.c.bf16 %v9595_v3, %v9594_v44  ;;  %12284 = vmatprep.subr.bf16.mxu0 %v12283_v7 }
 0x406   :  { %12286 = vmatpush3.bf16.msra.mxu0 %v12283_v7 }
 0x407   :  { %12268 = vmatprep.subr.bf16.mxu1 %v13538_v4 }
 0x408   :  { %11187 = vmatmul.mubr.msk.f32.gmra.mrb[16].mxu0 %vm230_vm2, %v1608_v24 }
 0x409   :  { %11189 = vmatprep.mubr.msk.f32.mxu0 %vm230_vm2, %v1609_v47 }
 0x40c   :  { %11190 = vmatmul.mubr.msk.f32.gmra.mrb[18].mxu0 %vm230_vm2, %v1610_v31 }
 0x4d3   :  { %v11182_v9 = vpop.f32.mrb[12].mxu0 }
 0x4d4   :  { %v2052_v11 = vmul.f32 %v11182_v9, %v9591_v8  ;;  %v1996_v12 = vpop.f32.mrb[13].mxu0 }
 0x4d5   :  { %v2051_v13 = vmul.f32 %v9591_v8, %v1996_v12 }
 0x4d6   :  { %v2068_v14 = vadd.f32 %v9593_v10, %v2052_v11 }
 0x4d7   :  { %v2067_v16 = vadd.f32 %v9593_v10, %v2051_v13  ;;  %v11185_v17 = vpop.f32.mrb[14].mxu0 }
 0x4d8   :  { %v2076_v18 = vmax.f32 %v2068_v14, 0.0  ;;  %v2054_v23 = vmul.f32 %v11185_v17, %v9591_v8  ;;  %v2006_v24 = vpop.f32.mrb[15].mxu0 }
 0x4d9   :  { %v2075_v21 = vmax.f32 %v2067_v16, 0.0  ;;  %v2053_v20 = vmul.f32 %v9591_v8, %v2006_v24  ;;  %v9619_v24 = vld [vmem:[%s15398_s3 + $0x1d8] sm:$0xff] }
 0x4da   :  { %v2084_v25 = vadd.f32 %v2076_v18, %v13313_v15  ;;  %v2070_v27 = vadd.f32 %v9593_v10, %v2054_v23  ;;  %v9597_v15 = vld [vmem:[%s15398_s3 + $0x198] sm:$0xff]  ;;  %v9618_v23 = vld [vmem:[%s15398_s3 + $0x1d0] sm:$0xff] }
 0x4db   :  { %v2083_v26 = vadd.f32 %v2075_v21, %v13315_v19  ;;  %v2069_v30 = vadd.f32 %v9593_v10, %v2053_v20  ;;  %v11188_v32 = vpop.f32.mrb[16].mxu0  ;;  %v12271_v58 = vpack.c.bf16 %v9597_v15, %v9596_v46  ;;  %v12970_v21 = vmov 0.0   ;;  %v9631_v15 = vld [vmem:[%s15400_s5 + $0x4] ss:$0 sm:$0xff] }
 0x4dc   :  { %v13555_v33 = vmax.f32 %v2084_v25, 0.0  ;;  %v2078_v28 = vmax.f32 %v2070_v27, 0.0  ;;  %v2056_v37 = vmul.f32 %v11188_v32, %v9591_v8  ;;  %v2016_v40 = vpop.f32.mrb[17].mxu0  ;;  %v12279_v20 = vpack.c.bf16 %v9619_v24, %v9618_v23  ;;  %v9638_v25 = vld [vmem:[%s15398_s3 + $0x210] sm:$0xff]  ;;  %v9639_v27 = vld [vmem:[%s15398_s3 + $0x218] sm:$0xff]  ;;  %v9633_v32 = vld [vmem:[%s15398_s3 + $0x1e8] sm:$0xff] }
 0x4dd   :  { %v13557_v43 = vmax.f32 %v2083_v26, 0.0  ;;  %v2077_v36 = vmax.f32 %v2069_v30, 0.0  ;;  %v2055_v34 = vmul.f32 %v9591_v8, %v2016_v40  ;;  %v12287_v26 = vpack.c.bf16 %v9639_v27, %v9638_v25  ;;  %v9632_v30 = vld [vmem:[%s15398_s3 + $0x1e0] sm:$0xff]  ;;  %v9675_v40 = vld [vmem:[%s15398_s3 + $0x268] sm:$0xff] }
 0x4de   :  { %v13566_v19 = vadd.f32 %v2078_v28, %v13330_v35  ;;  %v2072_v31 = vadd.f32 %v9593_v10, %v2056_v37  ;;  %v2119_v47 = vrot.slane %v13555_v33, 4  ;;  %v12291_v28 = vpack.c.bf16 %v9633_v32, %v9632_v30  ;;  %v9674_v37 = vld [vmem:[%s15398_s3 + $0x260] sm:$0xff] }
 0x4df   :  { %v2085_v48 = vadd.f32 %v2077_v36, %v13332_v41  ;;  %v2071_v49 = vadd.f32 %v9593_v10, %v2055_v34  ;;  %v11191_v51 = vpop.f32.mrb[18].mxu0  ;;  %v2118_v42 = vrot.slane %v13557_v43, 4  ;;  %v9616_v41 = vld [vmem:[%s15398_s3 + $0x1c0] sm:$0xff]  ;;  %12288 = vmatprep.subr.bf16.mxu0 %v12287_v26  ;;  %v12307_v36 = vpack.c.bf16 %v9675_v40, %v9674_v37 }
 0x4e0   :  { %v13572_v45 = vmax.f32 %v13566_v19, 0.0  ;;  %v2080_v38 = vmax.f32 %v2072_v31, 0.0  ;;  %v2058_v39 = vmul.f32 %v11191_v51, %v9591_v8  ;;  %v2026_v57 = vpop.f32.mrb[19].mxu0  ;;  %12290 = vmatpush3.bf16.msra.mxu0 %v12287_v26  ;;  %v9629_v34 = vld [vmem:[%s15399_s4 + $0x4] ss:$0 sm:$0xff] }
 0x4e1   :  { %v13574_v59 = vmax.f32 %v2085_v48, 0.0  ;;  %v2079_v35 = vmax.f32 %v2071_v49, 0.0  ;;  %v2057_v60 = vmul.f32 %v9591_v8, %v2026_v57  ;;  %v2134_v61 = vsel %vm1151_vm4, 0.0, %v2118_v42  ;;  %12292 = vmatprep.subr.bf16.mxu0 %v12291_v28 }
 0x4e2   :  { %v2088_v0 = vadd.f32 %v2080_v38, %v13348_v53  ;;  %v2074_v50 = vadd.f32 %v9593_v10, %v2058_v39  ;;  %11200 = vmatprep.mubr.msk.f32.mxu1 %vm230_vm2, %v2134_v61  ;;  %v2120_v2 = vsel %vm1151_vm4, %v2118_v42, %v2119_v47  ;;  %v2123_v54 = vrot.slane %v13572_v45, 4  ;;  %v9635_v61 = vld [vmem:[%s15398_s3 + $0x1f8] sm:$0xff] }
 0x4e3   :  { %v2087_v52 = vadd.f32 %v2079_v35, %v13351_v55  ;;  %v2073_v1 = vadd.f32 %v9593_v10, %v2057_v60  ;;  %11201 = vmatmul.mubr.msk.f32.vlgmr.msra.gmra.mrb[20].mxu1 %vm230_vm2, %v2120_v2  ;;  %v2121_v44 = vrot.slane %v13574_v59, 4  ;;  %v12275_v53 = vpack.c.bf16 %v9617_v56, %v9616_v41  ;;  %v9634_v60 = vld [vmem:[%s15398_s3 + $0x1f0] sm:$0xff] }
 0x4e4   :  { %v13590_v3 = vmax.f32 %v2088_v0, 0.0  ;;  %v2082_v5 = vmax.f32 %v2074_v50, 0.0  ;;  %12270 = vmatpush3.bf16.msra.mxu1 %v13538_v4 }
 0x4e5   :  { %v13593_v6 = vmax.f32 %v2087_v52, 0.0  ;;  %v2081_v7 = vmax.f32 %v2073_v1, 0.0  ;;  %v2122_v8 = vsel %vm1151_vm4, %v2119_v47, %v2121_v44  ;;  %v2124_v9 = vsel %vm1151_vm4, %v2121_v44, %v2123_v54  ;;  %12272 = vmatprep.subr.bf16.mxu1 %v12271_v58 }
 0x4e6   :  { %v13598_v55 = vadd.f32 %v2082_v5, %v13364_v62  ;;  %11203 = vmatprep.mubr.msk.f32.mxu1 %vm230_vm2, %v2122_v8  ;;  %v2126_v10 = vrot.slane %v13590_v3, 4  ;;  %v12295_v44 = vpack.c.bf16 %v9635_v61, %v9634_v60  ;;  %v9708_v60 = vld [vmem:[%s15398_s3 + $0x2c0] sm:$0xff]  ;;  %v9709_v61 = vld [vmem:[%s15398_s3 + $0x2c8] sm:$0xff] }
 0x4e7   :  { %v2089_v11 = vadd.f32 %v2081_v7, %v13366_v63  ;;  %11204 = vmatmul.mubr.msk.f32.gmra.mrb[22].mxu1 %vm230_vm2, %v2124_v9  ;;  %v2125_v4 = vrot.slane %v13593_v6, 4  ;;  %v9654_v9 = vld [vmem:[%s15398_s3 + $0x220] sm:$0xff] }
 0x4e8   :  { %v13606_v12 = vmax.f32 %v13598_v55, 0.0  ;;  %12274 = vmatpush3.bf16.msra.mxu1 %v12271_v58 }
 0x4e9   :  { %v13608_v13 = vmax.f32 %v2089_v11, 0.0  ;;  %v2135_v14 = vsel %vm1151_vm4, 0.0, %v2125_v4  ;;  %v2127_v62 = vsel %vm1151_vm4, %v2125_v4, %v2126_v10  ;;  %12276 = vmatprep.subr.bf16.mxu1 %v12275_v53 }
 0x4ea   :  { %11206 = vmatprep.mubr.msk.f32.mxu1 %vm230_vm2, %v2135_v14  ;;  %v2130_v16 = vrot.slane %v13606_v12, 4 }
 0x4eb   :  { %11207 = vmatmul.mubr.msk.f32.gmra.mrb[24].mxu1 %vm230_vm2, %v2127_v62  ;;  %v2128_v63 = vrot.slane %v13608_v13, 4 }
 0x4ed   :  { %v2129_v17 = vsel %vm1151_vm4, %v2126_v10, %v2128_v63  ;;  %v2131_v18 = vsel %vm1151_vm4, %v2128_v63, %v2130_v16  ;;  %v9655_v10 = vld [vmem:[%s15398_s3 + $0x228] sm:$0xff] }
 0x4ee   :  { %11209 = vmatprep.mubr.msk.f32.mxu1 %vm230_vm2, %v2129_v17  ;;  %v12299_v23 = vpack.c.bf16 %v9655_v10, %v9654_v9 }
 0x4ef   :  { %11210 = vmatmul.mubr.msk.f32.gmra.mrb[26].mxu1 %vm230_vm2, %v2131_v18 }
 0x4f0   :  { %11220 = vmatprep.mubr.f32.mxu1 %v12970_v21 }
 0x4f3   :  { %11221 = vmatmul.mubr.msk.f32.vlgmr.msra.gmra.mrb[20].mxu1 %vm230_vm2, %v13557_v43 }
 0x4f4   :  { %12278 = vmatpush3.bf16.msra.mxu1 %v12275_v53  ;;  %11223 = vmatprep.mubr.msk.f32.mxu1 %vm230_vm2, %v13555_v33 }
 0x4f5   :  { %12280 = vmatprep.subr.bf16.mxu1 %v12279_v20 }
 0x4f7   :  { %11224 = vmatmul.mubr.msk.f32.gmra.mrb[22].mxu1 %vm230_vm2, %v13574_v59 }
 0x4f8   :  { %11226 = vmatprep.mubr.f32.mxu1 %v12970_v21  ;;  %12282 = vmatpush3.bf16.msra.mxu1 %v12279_v20 }
 0x4f9   :  { %12308 = vmatprep.subr.bf16.mxu1 %v12307_v36 }
 0x4fb   :  { %11227 = vmatmul.mubr.msk.f32.gmra.mrb[24].mxu1 %vm230_vm2, %v13593_v6 }
 0x4fc   :  { %11229 = vmatprep.mubr.msk.f32.mxu1 %vm230_vm2, %v13590_v3 }
 0x4ff   :  { %11230 = vmatmul.mubr.msk.f32.gmra.mrb[26].mxu1 %vm230_vm2, %v13608_v13 }
 0x500   :  { %11240 = vmatprep.mubr.msk.f32.mxu1 %vm230_vm2, %v13557_v43 }
 0x503   :  { %11241 = vmatmul.mubr.msk.f32.vlgmr.msra.gmra.mrb[20].mxu1 %vm230_vm2, %v13555_v33 }
 0x504   :  { %11243 = vmatprep.mubr.msk.f32.mxu1 %vm230_vm2, %v13574_v59  ;;  %12310 = vmatpush3.bf16.msra.mxu1 %v12307_v36 }
 0x507   :  { %11244 = vmatmul.mubr.msk.f32.gmra.mrb[22].mxu1 %vm230_vm2, %v13572_v45 }
 0x508   :  { %11246 = vmatprep.mubr.msk.f32.mxu1 %vm230_vm2, %v13593_v6 }
 0x50b   :  { %11247 = vmatmul.mubr.msk.f32.gmra.mrb[24].mxu1 %vm230_vm2, %v13590_v3 }
 0x50c   :  { %11249 = vmatprep.mubr.msk.f32.mxu1 %vm230_vm2, %v13608_v13 }
 0x50f   :  { %11250 = vmatmul.mubr.msk.f32.gmra.mrb[26].mxu1 %vm230_vm2, %v13606_v12 }
 0x510   :  { %11320 = vmatprep.mubr.f32.mxu1 %v12970_v21 }
 0x5d6   :  { %v11242_v46 = vpop.f32.mrb[20].mxu1 }
 0x5d7   :  { %v2509_v31 = vmul.f32 %v11242_v46, %v9629_v34  ;;  %v2453_v47 = vpop.f32.mrb[21].mxu1 }
 0x5d8   :  { %v2508_v48 = vmul.f32 %v9629_v34, %v2453_v47 }
 0x5d9   :  { %v2525_v49 = vadd.f32 %v9631_v15, %v2509_v31 }
 0x5da   :  { %v2524_v51 = vadd.f32 %v9631_v15, %v2508_v48  ;;  %v11245_v42 = vpop.f32.mrb[22].mxu1  ;;  %v9656_v48 = vld [vmem:[%s15398_s3 + $0x230] sm:$0xff] }
 0x5db   :  { %v13681_v38 = vmax.f32 %v2525_v49, 0.0  ;;  %v2511_v39 = vmul.f32 %v11245_v42, %v9629_v34  ;;  %v2463_v57 = vpop.f32.mrb[23].mxu1  ;;  %v9657_v49 = vld [vmem:[%s15398_s3 + $0x238] sm:$0xff]  ;;  %v9676_v42 = vld [vmem:[%s15398_s3 + $0x270] sm:$0xff] }
 0x5dc   :  { %v13683_v58 = vmax.f32 %v2524_v51, 0.0  ;;  %v2510_v35 = vmul.f32 %v9629_v34, %v2463_v57  ;;  %v12303_v51 = vpack.c.bf16 %v9657_v49, %v9656_v48  ;;  %v9670_v57 = vld [vmem:[%s15398_s3 + $0x240] sm:$0xff] }
 0x5dd   :  { %v2558_v41 = vrot.slane %v13681_v38, 4  ;;  %v13692_v56 = vadd.f32 %v9631_v15, %v2511_v39 }
 0x5de   :  { %v2526_v0 = vadd.f32 %v9631_v15, %v2510_v35  ;;  %v11248_v50 = vpop.f32.mrb[24].mxu1  ;;  %v2557_v2 = vrot.slane %v13683_v58, 4 }
 0x5df   :  { %v2535_v54 = vmax.f32 %v13692_v56, 0.0  ;;  %v2513_v52 = vmul.f32 %v11248_v50, %v9629_v34  ;;  %v2473_v1 = vpop.f32.mrb[25].mxu1  ;;  %v12331_v56 = vpack.c.bf16 %v9709_v61, %v9708_v60  ;;  %v2092_v61 = vadd.f32 %v13598_v55, %v13356_v29  ;;  %v9690_v29 = vld [vmem:[%s15398_s3 + $0x290] sm:$0xff]  ;;  %v9691_v55 = vld [vmem:[%s15398_s3 + $0x298] sm:$0xff] }
 0x5e0   :  { %v2534_v5 = vmax.f32 %v2526_v0, 0.0  ;;  %v2512_v53 = vmul.f32 %v9629_v34, %v2473_v1  ;;  %v2573_v7 = vsel %vm1151_vm4, 0.0, %v2557_v2  ;;  %v2559_v8 = vsel %vm1151_vm4, %v2557_v2, %v2558_v41  ;;  %v9711_v0 = vld [vmem:[%s15398_s3 + $0x2d8] sm:$0xff]  ;;  %v9667_v2 = vld [vmem:[%s15399_s4 + $0x5] ss:$0 sm:$0xff] }
 0x5e1   :  { %v2562_v11 = vrot.slane %v2535_v54, 4  ;;  %v2529_v4 = vadd.f32 %v9631_v15, %v2513_v52  ;;  %11260 = vmatprep.mubr.msk.f32.mxu0 %vm230_vm2, %v2573_v7  ;;  %v9669_v52 = vld [vmem:[%s15400_s5 + $0x5] ss:$0 sm:$0xff] }
 0x5e2   :  { %v2560_v14 = vrot.slane %v2534_v5, 4  ;;  %v2528_v62 = vadd.f32 %v9631_v15, %v2512_v53  ;;  %v11251_v16 = vpop.f32.mrb[26].mxu1  ;;  %11261 = vmatmul.mubr.msk.f32.vlgmr.msra.gmra.mrb[20].mxu0 %vm230_vm2, %v2559_v8 }
 0x5e3   :  { %v2537_v63 = vmax.f32 %v2529_v4, 0.0  ;;  %v2515_v17 = vmul.f32 %v11251_v16, %v9629_v34  ;;  %12294 = vmatpush3.bf16.msra.mxu0 %v12291_v28  ;;  %v2483_v18 = vpop.f32.mrb[27].mxu1 }
 0x5e4   :  { %v2536_v24 = vmax.f32 %v2528_v62, 0.0  ;;  %v2514_v20 = vmul.f32 %v9629_v34, %v2483_v18  ;;  %v2561_v25 = vsel %vm1151_vm4, %v2558_v41, %v2560_v14  ;;  %v2563_v27 = vsel %vm1151_vm4, %v2560_v14, %v2562_v11  ;;  %12296 = vmatprep.subr.bf16.mxu0 %v12295_v44  ;;  %v9710_v41 = vld [vmem:[%s15398_s3 + $0x2d0] sm:$0xff] }
 0x5e5   :  { %v2565_v26 = vrot.slane %v2537_v63, 4  ;;  %v2531_v30 = vadd.f32 %v9631_v15, %v2515_v17  ;;  %11263 = vmatprep.mubr.msk.f32.mxu0 %vm230_vm2, %v2561_v25  ;;  %v12335_v50 = vpack.c.bf16 %v9711_v0, %v9710_v41  ;;  %v9673_v17 = vld [vmem:[%s15398_s3 + $0x258] sm:$0xff] }
 0x5e6   :  { %v2530_v32 = vadd.f32 %v9631_v15, %v2514_v20  ;;  %11264 = vmatmul.mubr.msk.f32.gmra.mrb[22].mxu0 %vm230_vm2, %v2563_v27  ;;  %v2564_v37 = vrot.slane %v2536_v24, 4 }
 0x5e7   :  { %v2539_v40 = vmax.f32 %v2531_v30, 0.0  ;;  %12298 = vmatpush3.bf16.msra.mxu0 %v12295_v44 }
 0x5e8   :  { %v2538_v28 = vmax.f32 %v2530_v32, 0.0  ;;  %v2574_v36 = vsel %vm1151_vm4, 0.0, %v2564_v37  ;;  %v2566_v34 = vsel %vm1151_vm4, %v2564_v37, %v2565_v26  ;;  %12300 = vmatprep.subr.bf16.mxu0 %v12299_v23  ;;  %v2091_v37 = vadd.f32 %v13566_v19, %v13324_v22 }
 0x5e9   :  { %v2569_v46 = vrot.slane %v2539_v40, 4  ;;  %11266 = vmatprep.mubr.msk.f32.mxu0 %vm230_vm2, %v2574_v36 }
 0x5ea   :  { %v2567_v31 = vrot.slane %v2538_v28, 4  ;;  %11267 = vmatmul.mubr.msk.f32.gmra.mrb[24].mxu0 %vm230_vm2, %v2566_v34  ;;  %v9689_v34 = vld [vmem:[%s15398_s3 + $0x288] sm:$0xff] }
 0x5ec   :  { %v2568_v47 = vsel %vm1151_vm4, %v2565_v26, %v2567_v31  ;;  %v2570_v15 = vsel %vm1151_vm4, %v2567_v31, %v2569_v46 }
 0x5ed   :  { %11269 = vmatprep.mubr.msk.f32.mxu0 %vm230_vm2, %v2568_v47 }
 0x5ee   :  { %11270 = vmatmul.mubr.msk.f32.gmra.mrb[26].mxu0 %vm230_vm2, %v2570_v15 }
 0x5ef   :  { %11280 = vmatprep.mubr.f32.mxu0 %v12970_v21 }
 0x5f2   :  { %11281 = vmatmul.mubr.msk.f32.vlgmr.msra.gmra.mrb[20].mxu0 %vm230_vm2, %v13683_v58 }
 0x5f3   :  { %12302 = vmatpush3.bf16.msra.mxu0 %v12299_v23  ;;  %11283 = vmatprep.mubr.msk.f32.mxu0 %vm230_vm2, %v13681_v38 }
 0x5f4   :  { %12304 = vmatprep.subr.bf16.mxu0 %v12303_v51 }
 0x5f6   :  { %11284 = vmatmul.mubr.msk.f32.gmra.mrb[22].mxu0 %vm230_vm2, %v2534_v5 }
 0x5f7   :  { %11286 = vmatprep.mubr.f32.mxu0 %v12970_v21  ;;  %12306 = vmatpush3.bf16.msra.mxu0 %v12303_v51 }
 0x5f8   :  { %12332 = vmatprep.subr.bf16.mxu0 %v12331_v56 }
 0x5fa   :  { %11287 = vmatmul.mubr.msk.f32.gmra.mrb[24].mxu0 %vm230_vm2, %v2536_v24 }
 0x5fb   :  { %11289 = vmatprep.mubr.msk.f32.mxu0 %vm230_vm2, %v2537_v63 }
 0x5fe   :  { %11290 = vmatmul.mubr.msk.f32.gmra.mrb[26].mxu0 %vm230_vm2, %v2538_v28 }
 0x5ff   :  { %11300 = vmatprep.mubr.msk.f32.mxu0 %vm230_vm2, %v13683_v58  ;;  %v9671_v58 = vld [vmem:[%s15398_s3 + $0x248] sm:$0xff] }
 0x600   :  { %v12315_v35 = vpack.c.bf16 %v9671_v58, %v9670_v57 }
 0x602   :  { %11301 = vmatmul.mubr.msk.f32.vlgmr.msra.gmra.mrb[20].mxu0 %vm230_vm2, %v13681_v38  ;;  %v9677_v38 = vld [vmem:[%s15398_s3 + $0x278] sm:$0xff] }
 0x603   :  { %11303 = vmatprep.mubr.msk.f32.mxu0 %vm230_vm2, %v2534_v5  ;;  %v12311_v39 = vpack.c.bf16 %v9677_v38, %v9676_v42  ;;  %12334 = vmatpush3.bf16.msra.mxu0 %v12331_v56 }
 0x604   :  { %12336 = vmatprep.subr.bf16.mxu0 %v12335_v50 }
 0x605   :  { %12312 = vmatprep.subr.bf16.mxu1 %v12311_v39 }
 0x606   :  { %11304 = vmatmul.mubr.msk.f32.gmra.mrb[22].mxu0 %vm230_vm2, %v2535_v54  ;;  %12314 = vmatpush3.bf16.msra.mxu1 %v12311_v39 }
 0x607   :  { %11306 = vmatprep.mubr.msk.f32.mxu0 %vm230_vm2, %v2536_v24  ;;  %12316 = vmatprep.subr.bf16.mxu1 %v12315_v35 }
 0x608   :  { %12338 = vmatpush3.bf16.msra.mxu0 %v12335_v50 }
 0x60a   :  { %11307 = vmatmul.mubr.msk.f32.gmra.mrb[24].mxu0 %vm230_vm2, %v2537_v63  ;;  %v9672_v63 = vld [vmem:[%s15398_s3 + $0x250] sm:$0xff] }
 0x60b   :  { %11309 = vmatprep.mubr.msk.f32.mxu0 %vm230_vm2, %v2538_v28  ;;  %v12319_v32 = vpack.c.bf16 %v9673_v17, %v9672_v63 }
 0x60e   :  { %11310 = vmatmul.mubr.msk.f32.gmra.mrb[26].mxu0 %vm230_vm2, %v2539_v40 }
 0x60f   :  { %11380 = vmatprep.mubr.f32.mxu0 %v12970_v21 }
 0x6d5   :  { %v11302_v54 = vpop.f32.mrb[20].mxu0 }
 0x6d6   :  { %v2945_v1 = vmul.f32 %v11302_v54, %v9667_v2  ;;  %v2889_v44 = vpop.f32.mrb[21].mxu0  ;;  %v9705_v54 = vld [vmem:[%s15398_s3 + $0x2a8] sm:$0xff] }
 0x6d7   :  { %v2944_v5 = vmul.f32 %v9667_v2, %v2889_v44  ;;  %v9743_v44 = vld [vmem:[%s15398_s3 + $0x348] sm:$0xff] }
 0x6d8   :  { %v2961_v53 = vadd.f32 %v9669_v52, %v2945_v1  ;;  %v9742_v1 = vld [vmem:[%s15398_s3 + $0x340] sm:$0xff] }
 0x6d9   :  { %v2960_v7 = vadd.f32 %v9669_v52, %v2944_v5  ;;  %v11305_v8 = vpop.f32.mrb[22].mxu0  ;;  %v12355_v5 = vpack.c.bf16 %v9743_v44, %v9742_v1  ;;  %v9766_v44 = vld [vmem:[%s15398_s3 + $0x3a0] sm:$0xff] }
 0x6da   :  { %v2969_v9 = vmax.f32 %v2961_v53, 0.0  ;;  %v2947_v10 = vmul.f32 %v11305_v8, %v9667_v2  ;;  %v2899_v11 = vpop.f32.mrb[23].mxu0  ;;  %v13891_v53 = vld [vmem:[%s15399_s4 + $0x6] ss:$0 sm:$0xff] }
 0x6db   :  { %v2968_v4 = vmax.f32 %v2960_v7, 0.0  ;;  %v2946_v14 = vmul.f32 %v9667_v2, %v2899_v11  ;;  %v13896_v8 = vld [vmem:[%s15400_s5 + $0x6] ss:$0 sm:$0xff] }
 0x6dc   :  { %v2977_v62 = vadd.f32 %v2969_v9, %v13555_v33  ;;  %v2963_v16 = vadd.f32 %v9669_v52, %v2947_v10 }
 0x6dd   :  { %v2976_v18 = vadd.f32 %v2968_v4, %v13557_v43  ;;  %v2962_v23 = vadd.f32 %v9669_v52, %v2946_v14  ;;  %v11308_v24 = vpop.f32.mrb[24].mxu0  ;;  %v9688_v43 = vld [vmem:[%s15398_s3 + $0x280] sm:$0xff]  ;;  %v9706_v14 = vld [vmem:[%s15398_s3 + $0x2b0] sm:$0xff] }
 0x6de   :  { %v2971_v20 = vmax.f32 %v2963_v16, 0.0  ;;  %v2949_v25 = vmul.f32 %v11308_v24, %v9667_v2  ;;  %v2909_v27 = vpop.f32.mrb[25].mxu0  ;;  %v13791_v40 = vmax.f32 %v2977_v62, 0.0  ;;  %v9707_v62 = vld [vmem:[%s15398_s3 + $0x2b8] sm:$0xff] }
 0x6df   :  { %v13787_v26 = vmax.f32 %v2976_v18, 0.0  ;;  %v2970_v30 = vmax.f32 %v2962_v23, 0.0  ;;  %v2948_v33 = vmul.f32 %v9667_v2, %v2909_v27  ;;  %v12343_v24 = vpack.c.bf16 %v9707_v62, %v9706_v14  ;;  %v9723_v27 = vld [vmem:[%s15398_s3 + $0x2e8] sm:$0xff] }
 0x6e0   :  { %v13794_v28 = vadd.f32 %v2971_v20, %v13572_v45  ;;  %v2965_v36 = vadd.f32 %v9669_v52, %v2949_v25  ;;  %v9722_v25 = vld [vmem:[%s15398_s3 + $0x2e0] sm:$0xff] }
 0x6e1   :  { %v2978_v46 = vadd.f32 %v2970_v30, %v13574_v59  ;;  %v2964_v31 = vadd.f32 %v9669_v52, %v2948_v33  ;;  %v11311_v47 = vpop.f32.mrb[26].mxu0  ;;  %11321 = vmatmul.mubr.msk.f32.vlgmr.msra.gmra.mrb[28].mxu1 %vm230_vm2, %v13787_v26  ;;  %v12323_v59 = vpack.c.bf16 %v9689_v34, %v9688_v43  ;;  %v12347_v34 = vpack.c.bf16 %v9723_v27, %v9722_v25 }
 0x6e2   :  { %v13806_v22 = vadd.f32 %v13794_v28, %v2091_v37  ;;  %v2973_v19 = vmax.f32 %v2965_v36, 0.0  ;;  %v2951_v45 = vmul.f32 %v11311_v47, %v9667_v2  ;;  %12318 = vmatpush3.bf16.msra.mxu1 %v12315_v35  ;;  %v2919_v15 = vpop.f32.mrb[27].mxu0  ;;  %11323 = vmatprep.mubr.msk.f32.mxu1 %vm230_vm2, %v13791_v40 }
 0x6e3   :  { %v13810_v48 = vmax.f32 %v2978_v46, 0.0  ;;  %v2972_v49 = vmax.f32 %v2964_v31, 0.0  ;;  %v2950_v51 = vmul.f32 %v9667_v2, %v2919_v15  ;;  %12320 = vmatprep.subr.bf16.mxu1 %v12319_v32  ;;  %v9704_v2 = vld [vmem:[%s15398_s3 + $0x2a0] sm:$0xff] }
 0x6e4   :  { %v2981_v42 = vadd.f32 %v2973_v19, %v13590_v3  ;;  %v2967_v38 = vadd.f32 %v9669_v52, %v2951_v45 }
 0x6e5   :  { %v2980_v39 = vadd.f32 %v2972_v49, %v13593_v6  ;;  %v2966_v57 = vadd.f32 %v9669_v52, %v2950_v51  ;;  %11324 = vmatmul.mubr.msk.f32.gmra.mrb[30].mxu1 %vm230_vm2, %v13810_v48  ;;  %v12339_v52 = vpack.c.bf16 %v9705_v54, %v9704_v2  ;;  %v9738_v54 = vld [vmem:[%s15398_s3 + $0x320] sm:$0xff] }
 0x6e6   :  { %v2975_v58 = vmax.f32 %v2967_v38, 0.0  ;;  %11326 = vmatprep.mubr.f32.mxu1 %v12970_v21  ;;  %12322 = vmatpush3.bf16.msra.mxu1 %v12319_v32  ;;  %v13821_v41 = vmax.f32 %v2981_v42, 0.0  ;;  %v9724_v42 = vld [vmem:[%s15398_s3 + $0x2f0] sm:$0xff]  ;;  %v9725_v38 = vld [vmem:[%s15398_s3 + $0x2f8] sm:$0xff] }
 0x6e7   :  { %v13817_v35 = vmax.f32 %v2980_v39, 0.0  ;;  %v2974_v60 = vmax.f32 %v2966_v57, 0.0  ;;  %12324 = vmatprep.subr.bf16.mxu1 %v12323_v59  ;;  %12340 = vmatprep.subr.bf16.mxu0 %v12339_v52  ;;  %v12351_v39 = vpack.c.bf16 %v9725_v38, %v9724_v42 }
 0x6e8   :  { %v13824_v3 = vadd.f32 %v2975_v58, %v13606_v12  ;;  %v12327_v12 = vpack.c.bf16 %v9691_v55, %v9690_v29  ;;  %v9744_v55 = vld [vmem:[%s15398_s3 + $0x350] sm:$0xff] }
 0x6e9   :  { %v2982_v6 = vadd.f32 %v2974_v60, %v13608_v13  ;;  %11327 = vmatmul.mubr.msk.f32.gmra.mrb[32].mxu1 %vm230_vm2, %v13817_v35  ;;  %v2989_v13 = vmax.f32 %v13794_v28, 0.0 }
 0x6ea   :  { %v13830_v56 = vadd.f32 %v13824_v3, %v2092_v61  ;;  %11329 = vmatprep.mubr.msk.f32.mxu1 %vm230_vm2, %v13821_v41  ;;  %v2993_v50 = vmax.f32 %v13824_v3, 0.0  ;;  %v9768_v3 = vld [vmem:[%s15398_s3 + $0x3b0] sm:$0xff] }
 0x6eb   :  { %v13834_v0 = vmax.f32 %v2982_v6, 0.0 }
 0x6ed   :  { %11330 = vmatmul.mubr.msk.f32.gmra.mrb[34].mxu1 %vm230_vm2, %v13834_v0 }
 0x6ee   :  { %11340 = vmatprep.mubr.f32.mxu1 %v12970_v21 }
 0x6f1   :  { %11341 = vmatmul.mubr.f32.vlgmr.msra.gmra.mrb[28].mxu1 %v12970_v21 }
 0x6f2   :  { %12326 = vmatpush3.bf16.msra.mxu1 %v12323_v59  ;;  %11343 = vmatprep.mubr.msk.f32.mxu1 %vm230_vm2, %v13787_v26 }
 0x6f3   :  { %12328 = vmatprep.subr.bf16.mxu1 %v12327_v12 }
 0x6f5   :  { %11344 = vmatmul.mubr.msk.f32.gmra.mrb[30].mxu1 %vm230_vm2, %v13791_v40 }
 0x6f6   :  { %11346 = vmatprep.mubr.f32.mxu1 %v12970_v21  ;;  %12330 = vmatpush3.bf16.msra.mxu1 %v12327_v12  ;;  %v9745_v12 = vld [vmem:[%s15398_s3 + $0x358] sm:$0xff] }
 0x6f7   :  { %12356 = vmatprep.subr.bf16.mxu1 %v12355_v5  ;;  %v12359_v2 = vpack.c.bf16 %v9745_v12, %v9744_v55 }
 0x6f9   :  { %11347 = vmatmul.mubr.f32.gmra.mrb[32].mxu1 %v12970_v21 }
 0x6fa   :  { %11349 = vmatprep.mubr.msk.f32.mxu1 %vm230_vm2, %v13817_v35 }
 0x6fd   :  { %11350 = vmatmul.mubr.msk.f32.gmra.mrb[34].mxu1 %vm230_vm2, %v13821_v41 }
 0x6fe   :  { %11360 = vmatprep.mubr.msk.f32.mxu1 %vm230_vm2, %v13787_v26 }
 0x701   :  { %11361 = vmatmul.mubr.msk.f32.vlgmr.msra.gmra.mrb[28].mxu1 %vm230_vm2, %v13791_v40 }
 0x702   :  { %11363 = vmatprep.mubr.msk.f32.mxu1 %vm230_vm2, %v13810_v48  ;;  %12358 = vmatpush3.bf16.msra.mxu1 %v12355_v5  ;;  %v9767_v5 = vld [vmem:[%s15398_s3 + $0x3a8] sm:$0xff] }
 0x703   :  { %12360 = vmatprep.subr.bf16.mxu1 %v12359_v2 }
 0x705   :  { %11364 = vmatmul.mubr.msk.f32.gmra.mrb[30].mxu1 %vm230_vm2, %v2989_v13 }
 0x706   :  { %11366 = vmatprep.mubr.msk.f32.mxu1 %vm230_vm2, %v13817_v35  ;;  %12362 = vmatpush3.bf16.msra.mxu1 %v12359_v2 }
 0x709   :  { %11367 = vmatmul.mubr.msk.f32.gmra.mrb[32].mxu1 %vm230_vm2, %v13821_v41 }
 0x70a   :  { %11369 = vmatprep.mubr.msk.f32.mxu1 %vm230_vm2, %v13834_v0 }
 0x70d   :  { %11370 = vmatmul.mubr.msk.f32.gmra.mrb[34].mxu1 %vm230_vm2, %v2993_v50 }
 0x7d4   :  { %v11362_v7 = vpop.f32.mrb[28].mxu1 }
 0x7d5   :  { %v3363_v9 = vmul.f32 %v11362_v7, %v13891_v53  ;;  %v3307_v10 = vpop.f32.mrb[29].mxu1  ;;  %v9735_v7 = vld [vmem:[%s15399_s4 + $0x7] ss:$0 sm:$0xff] }
 0x7d6   :  { %v3362_v11 = vmul.f32 %v13891_v53, %v3307_v10 }
 0x7d7   :  { %v3379_v4 = vadd.f32 %v13896_v8, %v3363_v9  ;;  %v9737_v9 = vld [vmem:[%s15400_s5 + $0x7] ss:$0 sm:$0xff] }
 0x7d8   :  { %v3378_v16 = vadd.f32 %v13896_v8, %v3362_v11  ;;  %v11365_v63 = vpop.f32.mrb[30].mxu1 }
 0x7d9   :  { %v3317_v17 = vpop.f32.mrb[31].mxu1  ;;  %v3387_v20 = vmax.f32 %v3379_v4, 0.0  ;;  %v3365_v57 = vmul.f32 %v11365_v63, %v13891_v53 }
 0x7da   :  { %v3386_v18 = vmax.f32 %v3378_v16, 0.0  ;;  %v3364_v23 = vmul.f32 %v13891_v53, %v3317_v17 }
 0x7db   :  { %v3381_v58 = vadd.f32 %v13896_v8, %v3365_v57 }
 0x7dc   :  { %v3380_v30 = vadd.f32 %v13896_v8, %v3364_v23  ;;  %v11368_v33 = vpop.f32.mrb[32].mxu1  ;;  %11381 = vmatmul.mubr.msk.f32.vlgmr.msra.gmra.mrb[28].mxu0 %vm230_vm2, %v3386_v18 }
 0x7dd   :  { %v3367_v32 = vmul.f32 %v11368_v33, %v13891_v53  ;;  %12342 = vmatpush3.bf16.msra.mxu0 %v12339_v52  ;;  %v3327_v37 = vpop.f32.mrb[33].mxu1  ;;  %11383 = vmatprep.mubr.msk.f32.mxu0 %vm230_vm2, %v3387_v20  ;;  %v3389_v60 = vmax.f32 %v3381_v58, 0.0  ;;  %v9739_v52 = vld [vmem:[%s15398_s3 + $0x328] sm:$0xff] }
 0x7de   :  { %v3388_v36 = vmax.f32 %v3380_v30, 0.0  ;;  %v3366_v43 = vmul.f32 %v13891_v53, %v3327_v37  ;;  %12344 = vmatprep.subr.bf16.mxu0 %v12343_v24  ;;  %v12363_v1 = vpack.c.bf16 %v9739_v52, %v9738_v54  ;;  %v9741_v37 = vld [vmem:[%s15398_s3 + $0x338] sm:$0xff] }
 0x7df   :  { %v3383_v46 = vadd.f32 %v13896_v8, %v3367_v32  ;;  %v9740_v32 = vld [vmem:[%s15398_s3 + $0x330] sm:$0xff] }
 0x7e0   :  { %v3382_v31 = vadd.f32 %v13896_v8, %v3366_v43  ;;  %v11371_v47 = vpop.f32.mrb[34].mxu1  ;;  %11384 = vmatmul.mubr.msk.f32.gmra.mrb[30].mxu0 %vm230_vm2, %v3388_v36  ;;  %12364 = vmatprep.subr.bf16.mxu1 %v12363_v1 }
 0x7e1   :  { %v3337_v19 = vpop.f32.mrb[35].mxu1  ;;  %11386 = vmatprep.mubr.f32.mxu0 %v12970_v21  ;;  %12346 = vmatpush3.bf16.msra.mxu0 %v12343_v24  ;;  %v3391_v49 = vmax.f32 %v3383_v46, 0.0  ;;  %v3369_v61 = vmul.f32 %v11371_v47, %v13891_v53 }
 0x7e2   :  { %v3390_v45 = vmax.f32 %v3382_v31, 0.0  ;;  %v3368_v15 = vmul.f32 %v13891_v53, %v3337_v19  ;;  %12348 = vmatprep.subr.bf16.mxu0 %v12347_v34  ;;  %v12371_v53 = vpack.c.bf16 %v9767_v5, %v9766_v44  ;;  %v9786_v5 = vld [vmem:[%s15398_s3 + $0x400] sm:$0xff] }
 0x7e3   :  { %v3385_v6 = vadd.f32 %v13896_v8, %v3369_v61 }
 0x7e4   :  { %v3384_v51 = vadd.f32 %v13896_v8, %v3368_v15  ;;  %11387 = vmatmul.mubr.msk.f32.gmra.mrb[32].mxu0 %vm230_vm2, %v3390_v45 }
 0x7e5   :  { %11389 = vmatprep.mubr.msk.f32.mxu0 %vm230_vm2, %v3391_v49  ;;  %v3393_v29 = vmax.f32 %v3385_v6, 0.0 }
 0x7e6   :  { %v3392_v59 = vmax.f32 %v3384_v51, 0.0 }
 0x7e8   :  { %11390 = vmatmul.mubr.msk.f32.gmra.mrb[34].mxu0 %vm230_vm2, %v3392_v59 }
 0x7e9   :  { %11400 = vmatprep.mubr.f32.mxu0 %v12970_v21 }
 0x7ec   :  { %11401 = vmatmul.mubr.f32.vlgmr.msra.gmra.mrb[28].mxu0 %v12970_v21 }
 0x7ed   :  { %12350 = vmatpush3.bf16.msra.mxu0 %v12347_v34  ;;  %11403 = vmatprep.mubr.msk.f32.mxu0 %vm230_vm2, %v3386_v18 }
 0x7ee   :  { %12352 = vmatprep.subr.bf16.mxu0 %v12351_v39 }
 0x7f0   :  { %11404 = vmatmul.mubr.msk.f32.gmra.mrb[30].mxu0 %vm230_vm2, %v3387_v20 }
 0x7f1   :  { %11406 = vmatprep.mubr.f32.mxu0 %v12970_v21  ;;  %12354 = vmatpush3.bf16.msra.mxu0 %v12351_v39 }
 0x7f2   :  { %12372 = vmatprep.subr.bf16.mxu0 %v12371_v53 }
 0x7f4   :  { %11407 = vmatmul.mubr.f32.gmra.mrb[32].mxu0 %v12970_v21 }
 0x7f5   :  { %11409 = vmatprep.mubr.msk.f32.mxu0 %vm230_vm2, %v3390_v45 }
 0x7f8   :  { %11410 = vmatmul.mubr.msk.f32.gmra.mrb[34].mxu0 %vm230_vm2, %v3391_v49 }
 0x7f9   :  { %11420 = vmatprep.mubr.msk.f32.mxu0 %vm230_vm2, %v3386_v18 }
 0x7fc   :  { %11421 = vmatmul.mubr.msk.f32.vlgmr.msra.gmra.mrb[28].mxu0 %vm230_vm2, %v3387_v20 }
 0x7fd   :  { %11423 = vmatprep.mubr.msk.f32.mxu0 %vm230_vm2, %v3388_v36  ;;  %12374 = vmatpush3.bf16.msra.mxu0 %v12371_v53  ;;  %v9787_v53 = vld [vmem:[%s15398_s3 + $0x408] sm:$0xff] }
 0x800   :  { %11424 = vmatmul.mubr.msk.f32.gmra.mrb[30].mxu0 %vm230_vm2, %v3389_v60 }
 0x801   :  { %11426 = vmatprep.mubr.msk.f32.mxu0 %vm230_vm2, %v3390_v45  ;;  %v12367_v45 = vpack.c.bf16 %v9741_v37, %v9740_v32 }
 0x804   :  { %11427 = vmatmul.mubr.msk.f32.gmra.mrb[32].mxu0 %vm230_vm2, %v3391_v49 }
 0x805   :  { %11429 = vmatprep.mubr.msk.f32.mxu0 %vm230_vm2, %v3392_v59 }
 0x808   :  { %11430 = vmatmul.mubr.msk.f32.gmra.mrb[34].mxu0 %vm230_vm2, %v3393_v29 }
 0x8cf   :  { %v11422_v8 = vpop.f32.mrb[28].mxu0 }
 0x8d0   :  { %v3763_v10 = vmul.f32 %v11422_v8, %v9735_v7  ;;  %v3707_v11 = vpop.f32.mrb[29].mxu0  ;;  %v9759_v8 = vld [vmem:[%s15399_s4 + $0x8] ss:$0 sm:$0xff] }
 0x8d1   :  { %v3762_v4 = vmul.f32 %v9735_v7, %v3707_v11 }
 0x8d2   :  { %v3779_v14 = vadd.f32 %v9737_v9, %v3763_v10  ;;  %v9761_v10 = vld [vmem:[%s15400_s5 + $0x8] ss:$0 sm:$0xff] }
 0x8d3   :  { %v3778_v62 = vadd.f32 %v9737_v9, %v3762_v4  ;;  %v11425_v16 = vpop.f32.mrb[30].mxu0 }
 0x8d4   :  { %v3787_v63 = vmax.f32 %v3779_v14, 0.0  ;;  %v3765_v17 = vmul.f32 %v11425_v16, %v9735_v7  ;;  %v3717_v18 = vpop.f32.mrb[31].mxu0 }
 0x8d5   :  { %v3786_v23 = vmax.f32 %v3778_v62, 0.0  ;;  %v3764_v24 = vmul.f32 %v9735_v7, %v3717_v18  ;;  %v9765_v18 = vld [vmem:[%s15398_s3 + $0x398] sm:$0xff] }
 0x8d6   :  { %v3795_v20 = vadd.f32 %v3787_v63, %v13791_v40  ;;  %v3781_v25 = vadd.f32 %v9737_v9, %v3765_v17  ;;  %v9764_v17 = vld [vmem:[%s15398_s3 + $0x390] sm:$0xff] }
 0x8d7   :  { %v3794_v27 = vadd.f32 %v3786_v23, %v13787_v26  ;;  %v3780_v30 = vadd.f32 %v9737_v9, %v3764_v24  ;;  %v11428_v33 = vpop.f32.mrb[32].mxu0 }
 0x8d8   :  { %v3789_v36 = vmax.f32 %v3781_v25, 0.0  ;;  %v3767_v43 = vmul.f32 %v11428_v33, %v9735_v7  ;;  %v3727_v34 = vpop.f32.mrb[33].mxu0  ;;  %v13989_v47 = vmax.f32 %v3795_v20, 0.0  ;;  %v12383_v33 = vpack.c.bf16 %v9765_v18, %v9764_v17 }
 0x8d9   :  { %v13987_v46 = vmax.f32 %v3794_v27, 0.0  ;;  %v3788_v31 = vmax.f32 %v3780_v30, 0.0  ;;  %v3766_v40 = vmul.f32 %v9735_v7, %v3727_v34 }
 0x8da   :  { %v13993_v26 = vadd.f32 %v3789_v36, %v2989_v13  ;;  %v3783_v19 = vadd.f32 %v9737_v9, %v3767_v43 }
 0x8db   :  { %v13996_v15 = vadd.f32 %v3788_v31, %v13810_v48  ;;  %v3782_v49 = vadd.f32 %v9737_v9, %v3766_v40  ;;  %v11431_v51 = vpop.f32.mrb[34].mxu0  ;;  %11440 = vmatprep.mubr.msk.f32.mxu1 %vm230_vm2, %v13987_v46 }
 0x8dc   :  { %v14002_v59 = vadd.f32 %v13993_v26, %v13806_v22  ;;  %v3791_v42 = vmax.f32 %v3783_v19, 0.0  ;;  %v3769_v38 = vmul.f32 %v11431_v51, %v9735_v7  ;;  %v3737_v39 = vpop.f32.mrb[35].mxu0  ;;  %11441 = vmatmul.mubr.msk.f32.vlgmr.msra.gmra.mrb[36].mxu1 %vm230_vm2, %v13989_v47  ;;  %v3807_v57 = vmax.f32 %v13993_v26, 0.0 }
 0x8dd   :  { %v3806_v28 = vmax.f32 %v13996_v15, 0.0  ;;  %v3790_v13 = vmax.f32 %v3782_v49, 0.0  ;;  %v3768_v48 = vmul.f32 %v9735_v7, %v3737_v39  ;;  %12366 = vmatpush3.bf16.msra.mxu1 %v12363_v1  ;;  %v9763_v1 = vld [vmem:[%s15398_s3 + $0x388] sm:$0xff]  ;;  %v12387_v7 = vpack.c.bf16 %v9787_v53, %v9786_v5 }
 0x8de   :  { %v3799_v58 = vadd.f32 %v3791_v42, %v13821_v41  ;;  %v3785_v60 = vadd.f32 %v9737_v9, %v3769_v38  ;;  %12368 = vmatprep.subr.bf16.mxu1 %v12367_v45 }
 0x8df   :  { %v3798_v22 = vadd.f32 %v3790_v13, %v13817_v35  ;;  %v3784_v61 = vadd.f32 %v9737_v9, %v3768_v48  ;;  %11443 = vmatprep.mubr.msk.f32.mxu1 %vm230_vm2, %v3806_v28 }
 0x8e0   :  { %v3793_v6 = vmax.f32 %v3785_v60, 0.0  ;;  %11444 = vmatmul.mubr.msk.f32.gmra.mrb[38].mxu1 %vm230_vm2, %v3807_v57  ;;  %v14018_v12 = vmax.f32 %v3799_v58, 0.0 }
 0x8e1   :  { %v14016_v29 = vmax.f32 %v3798_v22, 0.0  ;;  %v3792_v55 = vmax.f32 %v3784_v61, 0.0  ;;  %12370 = vmatpush3.bf16.msra.mxu1 %v12367_v45  ;;  %v9788_v61 = vld [vmem:[%s15398_s3 + $0x410] sm:$0xff] }
 0x8e2   :  { %v14022_v41 = vadd.f32 %v3793_v6, %v2993_v50  ;;  %v9762_v50 = vld [vmem:[%s15398_s3 + $0x380] sm:$0xff]  ;;  %12388 = vmatprep.subr.bf16.mxu1 %v12387_v7  ;;  %v9789_v6 = vld [vmem:[%s15398_s3 + $0x418] sm:$0xff] }
 0x8e3   :  { %v14025_v35 = vadd.f32 %v3792_v55, %v13834_v0  ;;  %11446 = vmatprep.mubr.msk.f32.mxu1 %vm230_vm2, %v14016_v29  ;;  %v12379_v44 = vpack.c.bf16 %v9763_v1, %v9762_v50  ;;  %v12391_v55 = vpack.c.bf16 %v9789_v6, %v9788_v61  ;;  %v9783_v50 = vld [vmem:[%s15399_s4 + $0x9] ss:$0 sm:$0xff]  ;;  %v9799_v6 = vld [vmem:[%s15399_s4 + $0xa] ss:$0 sm:$0xff] }
 0x8e4   :  { %v14031_v2 = vadd.f32 %v14022_v41, %v13830_v56  ;;  %11447 = vmatmul.mubr.msk.f32.gmra.mrb[40].mxu1 %vm230_vm2, %v14018_v12  ;;  %v3811_v52 = vmax.f32 %v14022_v41, 0.0  ;;  %v9769_v56 = vld [vmem:[%s15398_s3 + $0x3b8] sm:$0xff] }
 0x8e5   :  { %v3810_v54 = vmax.f32 %v14025_v35, 0.0  ;;  %v12375_v0 = vpack.c.bf16 %v9769_v56, %v9768_v3  ;;  %v9802_v3 = vld [vmem:[%s15398_s3 + $0x460] sm:$0xff]  ;;  %v9803_v56 = vld [vmem:[%s15398_s3 + $0x468] sm:$0xff]  ;;  %v9804_v35 = vld [vmem:[%s15398_s3 + $0x470] sm:$0xff] }
 0x8e7   :  { %11449 = vmatprep.mubr.msk.f32.mxu1 %vm230_vm2, %v3810_v54  ;;  %12376 = vmatprep.subr.bf16.mxu0 %v12375_v0 }
 0x8e8   :  { %11450 = vmatmul.mubr.msk.f32.gmra.mrb[42].mxu1 %vm230_vm2, %v3811_v52  ;;  %12378 = vmatpush3.bf16.msra.mxu0 %v12375_v0  ;;  %v12395_v0 = vpack.c.bf16 %v9803_v56, %v9802_v3  ;;  %v9801_v3 = vld [vmem:[%s15400_s5 + $0xa] ss:$0 sm:$0xff] }
 0x8e9   :  { %11460 = vmatprep.mubr.f32.mxu1 %v12970_v21  ;;  %12380 = vmatprep.subr.bf16.mxu0 %v12379_v44 }
 0x8ec   :  { %11461 = vmatmul.mubr.f32.vlgmr.msra.gmra.mrb[36].mxu1 %v12970_v21 }
 0x8ed   :  { %11463 = vmatprep.mubr.msk.f32.mxu1 %vm230_vm2, %v13987_v46  ;;  %12390 = vmatpush3.bf16.msra.mxu1 %v12387_v7 }
 0x8ee   :  { %12392 = vmatprep.subr.bf16.mxu1 %v12391_v55 }
 0x8f0   :  { %11464 = vmatmul.mubr.msk.f32.gmra.mrb[38].mxu1 %vm230_vm2, %v13989_v47 }
 0x8f1   :  { %11466 = vmatprep.mubr.f32.mxu1 %v12970_v21  ;;  %12394 = vmatpush3.bf16.msra.mxu1 %v12391_v55 }
 0x8f4   :  { %11467 = vmatmul.mubr.f32.gmra.mrb[40].mxu1 %v12970_v21 }
 0x8f5   :  { %11469 = vmatprep.mubr.msk.f32.mxu1 %vm230_vm2, %v14016_v29 }
 0x8f8   :  { %11470 = vmatmul.mubr.msk.f32.gmra.mrb[42].mxu1 %vm230_vm2, %v14018_v12 }
 0x9bf   :  { %v11462_v9 = vpop.f32.mrb[36].mxu1 }
 0x9c0   :  { %v4064_v11 = vmul.f32 %v11462_v9, %v9759_v8  ;;  %v4016_v4 = vpop.f32.mrb[37].mxu1 }
 0x9c1   :  { %v4063_v14 = vmul.f32 %v9759_v8, %v4016_v4 }
 0x9c2   :  { %v4080_v62 = vadd.f32 %v9761_v10, %v4064_v11 }
 0x9c3   :  { %v4079_v16 = vadd.f32 %v9761_v10, %v4063_v14  ;;  %v11465_v63 = vpop.f32.mrb[38].mxu1 }
 0x9c4   :  { %v4066_v23 = vmul.f32 %v11465_v63, %v9759_v8  ;;  %v4026_v24 = vpop.f32.mrb[39].mxu1  ;;  %v4088_v27 = vmax.f32 %v4080_v62, 0.0 }
 0x9c5   :  { %v4087_v20 = vmax.f32 %v4079_v16, 0.0  ;;  %v4065_v25 = vmul.f32 %v9759_v8, %v4026_v24 }
 0x9c6   :  { %v4082_v30 = vadd.f32 %v9761_v10, %v4066_v23 }
 0x9c7   :  { %v4081_v32 = vadd.f32 %v9761_v10, %v4065_v25  ;;  %v11468_v37 = vpop.f32.mrb[40].mxu1  ;;  %11480 = vmatprep.mubr.msk.f32.mxu0 %vm230_vm2, %v4087_v20 }
 0x9c8   :  { %v4068_v36 = vmul.f32 %v11468_v37, %v9759_v8  ;;  %v4036_v43 = vpop.f32.mrb[41].mxu1  ;;  %11481 = vmatmul.mubr.msk.f32.vlgmr.msra.gmra.mrb[36].mxu0 %vm230_vm2, %v4088_v27  ;;  %v4090_v40 = vmax.f32 %v4082_v30, 0.0 }
 0x9c9   :  { %v4089_v34 = vmax.f32 %v4081_v32, 0.0  ;;  %v4067_v31 = vmul.f32 %v9759_v8, %v4036_v43  ;;  %12382 = vmatpush3.bf16.msra.mxu0 %v12379_v44  ;;  %v9785_v44 = vld [vmem:[%s15400_s5 + $0x9] ss:$0 sm:$0xff] }
 0x9ca   :  { %v4084_v19 = vadd.f32 %v9761_v10, %v4068_v36  ;;  %12384 = vmatprep.subr.bf16.mxu0 %v12383_v33 }
 0x9cb   :  { %v4083_v45 = vadd.f32 %v9761_v10, %v4067_v31  ;;  %v11471_v49 = vpop.f32.mrb[42].mxu1  ;;  %11483 = vmatprep.mubr.msk.f32.mxu0 %vm230_vm2, %v4089_v34 }
 0x9cc   :  { %v4070_v51 = vmul.f32 %v11471_v49, %v9759_v8  ;;  %v4046_v42 = vpop.f32.mrb[43].mxu1  ;;  %11484 = vmatmul.mubr.msk.f32.gmra.mrb[38].mxu0 %vm230_vm2, %v4090_v40  ;;  %v4092_v13 = vmax.f32 %v4084_v19, 0.0 }
 0x9cd   :  { %v4091_v38 = vmax.f32 %v4083_v45, 0.0  ;;  %v4069_v39 = vmul.f32 %v9759_v8, %v4046_v42  ;;  %12386 = vmatpush3.bf16.msra.mxu0 %v12383_v33 }
 0x9ce   :  { %v4086_v48 = vadd.f32 %v9761_v10, %v4070_v51  ;;  %12396 = vmatprep.subr.bf16.mxu0 %v12395_v0 }
 0x9cf   :  { %v4085_v58 = vadd.f32 %v9761_v10, %v4069_v39  ;;  %11486 = vmatprep.mubr.msk.f32.mxu0 %vm230_vm2, %v4091_v38 }
 0x9d0   :  { %11487 = vmatmul.mubr.msk.f32.gmra.mrb[40].mxu0 %vm230_vm2, %v4092_v13  ;;  %v4094_v22 = vmax.f32 %v4086_v48, 0.0 }
 0x9d1   :  { %v4093_v60 = vmax.f32 %v4085_v58, 0.0 }
 0x9d3   :  { %11489 = vmatprep.mubr.msk.f32.mxu0 %vm230_vm2, %v4093_v60  ;;  %v9822_v60 = vld [vmem:[%s15398_s3 + $0x4a0] sm:$0xff] }
 0x9d4   :  { %11490 = vmatmul.mubr.msk.f32.gmra.mrb[42].mxu0 %vm230_vm2, %v4094_v22  ;;  %v9823_v22 = vld [vmem:[%s15398_s3 + $0x4a8] sm:$0xff] }
 0x9d5   :  { %11500 = vmatprep.mubr.f32.mxu0 %v12970_v21  ;;  %v12403_v61 = vpack.c.bf16 %v9823_v22, %v9822_v60  ;;  %v9815_v22 = vld [vmem:[%s15399_s4 + $0xb] ss:$0 sm:$0xff] }
 0x9d7   :  { %12404 = vmatprep.subr.bf16.mxu1 %v12403_v61 }
 0x9d8   :  { %11501 = vmatmul.mubr.f32.vlgmr.msra.gmra.mrb[36].mxu0 %v12970_v21 }
 0x9d9   :  { %11503 = vmatprep.mubr.msk.f32.mxu0 %vm230_vm2, %v4087_v20  ;;  %12398 = vmatpush3.bf16.msra.mxu0 %v12395_v0 }
 0x9dc   :  { %11504 = vmatmul.mubr.msk.f32.gmra.mrb[38].mxu0 %vm230_vm2, %v4088_v27 }
 0x9dd   :  { %11506 = vmatprep.mubr.f32.mxu0 %v12970_v21 }
 0x9e0   :  { %11507 = vmatmul.mubr.f32.gmra.mrb[40].mxu0 %v12970_v21 }
 0x9e1   :  { %11509 = vmatprep.mubr.msk.f32.mxu0 %vm230_vm2, %v4091_v38 }
 0x9e4   :  { %11510 = vmatmul.mubr.msk.f32.gmra.mrb[42].mxu0 %vm230_vm2, %v4092_v13 }
 0xaab   :  { %v11502_v1 = vpop.f32.mrb[36].mxu0 }
 0xaac   :  { %v4347_v5 = vmul.f32 %v11502_v1, %v9783_v50  ;;  %v4299_v53 = vpop.f32.mrb[37].mxu0 }
 0xaad   :  { %v4346_v7 = vmul.f32 %v9783_v50, %v4299_v53 }
 0xaae   :  { %v4363_v8 = vadd.f32 %v9785_v44, %v4347_v5 }
 0xaaf   :  { %v4362_v9 = vadd.f32 %v9785_v44, %v4346_v7  ;;  %v11505_v10 = vpop.f32.mrb[38].mxu0 }
 0xab0   :  { %v4371_v11 = vmax.f32 %v4363_v8, 0.0  ;;  %v4349_v4 = vmul.f32 %v11505_v10, %v9783_v50  ;;  %v4309_v14 = vpop.f32.mrb[39].mxu0 }
 0xab1   :  { %v4370_v62 = vmax.f32 %v4362_v9, 0.0  ;;  %v4348_v16 = vmul.f32 %v9783_v50, %v4309_v14 }
 0xab2   :  { %v14120_v63 = vadd.f32 %v4371_v11, %v13989_v47  ;;  %v4365_v17 = vadd.f32 %v9785_v44, %v4349_v4 }
 0xab3   :  { %v14123_v18 = vadd.f32 %v4370_v62, %v13987_v46  ;;  %v4364_v23 = vadd.f32 %v9785_v44, %v4348_v16  ;;  %v11508_v24 = vpop.f32.mrb[40].mxu0 }
 0xab4   :  { %v4373_v20 = vmax.f32 %v4365_v17, 0.0  ;;  %v4351_v25 = vmul.f32 %v11508_v24, %v9783_v50  ;;  %v4319_v27 = vpop.f32.mrb[41].mxu0  ;;  %v4389_v37 = vmax.f32 %v14120_v63, 0.0  ;;  %v9821_v63 = vld [vmem:[%s15398_s3 + $0x498] sm:$0xff] }
 0xab5   :  { %v4388_v30 = vmax.f32 %v14123_v18, 0.0  ;;  %v4372_v33 = vmax.f32 %v4364_v23, 0.0  ;;  %v4350_v32 = vmul.f32 %v9783_v50, %v4319_v27 }
 0xab6   :  { %v14129_v36 = vadd.f32 %v4373_v20, %v3807_v57  ;;  %v4367_v47 = vadd.f32 %v9785_v44, %v4351_v25 }
 0xab7   :  { %v14133_v46 = vadd.f32 %v4372_v33, %v3806_v28  ;;  %v4366_v43 = vadd.f32 %v9785_v44, %v4350_v32  ;;  %v11511_v34 = vpop.f32.mrb[42].mxu0  ;;  %11520 = vmatprep.mubr.msk.f32.mxu1 %vm230_vm2, %v4388_v30 }
 0xab8   :  { %v14140_v31 = vadd.f32 %v14129_v36, %v14002_v59  ;;  %v4375_v40 = vmax.f32 %v4367_v47, 0.0  ;;  %v4353_v19 = vmul.f32 %v11511_v34, %v9783_v50  ;;  %v4329_v26 = vpop.f32.mrb[43].mxu0  ;;  %11521 = vmatmul.mubr.msk.f32.vlgmr.msra.gmra.mrb[44].mxu1 %vm230_vm2, %v4389_v37  ;;  %v4391_v45 = vmax.f32 %v14129_v36, 0.0 }
 0xab9   :  { %v4390_v15 = vmax.f32 %v14133_v46, 0.0  ;;  %v4374_v28 = vmax.f32 %v4366_v43, 0.0  ;;  %v4352_v57 = vmul.f32 %v9783_v50, %v4329_v26  ;;  %12406 = vmatpush3.bf16.msra.mxu1 %v12403_v61 }
 0xaba   :  { %v14148_v49 = vadd.f32 %v4375_v40, %v14018_v12  ;;  %v4369_v51 = vadd.f32 %v9785_v44, %v4353_v19 }
 0xabb   :  { %v14151_v59 = vadd.f32 %v4374_v28, %v14016_v29  ;;  %v4368_v42 = vadd.f32 %v9785_v44, %v4352_v57  ;;  %11523 = vmatprep.mubr.msk.f32.mxu1 %vm230_vm2, %v4390_v15  ;;  %v9824_v57 = vld [vmem:[%s15398_s3 + $0x4b0] sm:$0xff] }
 0xabc   :  { %v4377_v38 = vmax.f32 %v4369_v51, 0.0  ;;  %11524 = vmatmul.mubr.msk.f32.gmra.mrb[46].mxu1 %vm230_vm2, %v4391_v45  ;;  %v4393_v12 = vmax.f32 %v14148_v49, 0.0  ;;  %v9825_v51 = vld [vmem:[%s15398_s3 + $0x4b8] sm:$0xff] }
 0xabd   :  { %v4392_v39 = vmax.f32 %v14151_v59, 0.0  ;;  %v4376_v13 = vmax.f32 %v4368_v42, 0.0  ;;  %v12407_v42 = vpack.c.bf16 %v9825_v51, %v9824_v57 }
 0xabe   :  { %v14163_v48 = vadd.f32 %v4377_v38, %v3811_v52  ;;  %v9818_v38 = vld [vmem:[%s15398_s3 + $0x480] sm:$0xff] }
 0xabf   :  { %v14167_v29 = vadd.f32 %v4376_v13, %v3810_v54  ;;  %11526 = vmatprep.mubr.msk.f32.mxu1 %vm230_vm2, %v4392_v39  ;;  %12408 = vmatprep.subr.bf16.mxu1 %v12407_v42  ;;  %v9819_v13 = vld [vmem:[%s15398_s3 + $0x488] sm:$0xff] }
 0xac0   :  { %v14174_v58 = vadd.f32 %v14163_v48, %v14031_v2  ;;  %11527 = vmatmul.mubr.msk.f32.gmra.mrb[48].mxu1 %vm230_vm2, %v4393_v12  ;;  %v4395_v52 = vmax.f32 %v14163_v48, 0.0  ;;  %v9805_v2 = vld [vmem:[%s15398_s3 + $0x478] sm:$0xff] }
 0xac1   :  { %v4394_v41 = vmax.f32 %v14167_v29, 0.0  ;;  %v12399_v54 = vpack.c.bf16 %v9805_v2, %v9804_v35  ;;  %12410 = vmatpush3.bf16.msra.mxu1 %v12407_v42  ;;  %v14225_v35 = vpack.c.bf16 %v9819_v13, %v9818_v38  ;;  %v9862_v2 = vld [vmem:[%s15398_s3 + $0x500] sm:$0xff] }
 0xac3   :  { %11529 = vmatprep.mubr.msk.f32.mxu1 %vm230_vm2, %v4394_v41  ;;  %12400 = vmatprep.subr.bf16.mxu0 %v12399_v54 }
 0xac4   :  { %11530 = vmatmul.mubr.msk.f32.gmra.mrb[50].mxu1 %vm230_vm2, %v4395_v52  ;;  %12402 = vmatpush3.bf16.msra.mxu0 %v12399_v54  ;;  %v9863_v54 = vld [vmem:[%s15398_s3 + $0x508] sm:$0xff] }
 0xac5   :  { %12412 = vmatprep.subr.bf16.mxu1 %v14225_v35  ;;  %v12427_v60 = vpack.c.bf16 %v9863_v54, %v9862_v2 }
 0xac7   :  { %12428 = vmatprep.subr.bf16.mxu0 %v12427_v60 }
 0xb8b   :  { %v11522_v55 = vpop.f32.mrb[44].mxu1 }
 0xb8c   :  { %v4539_v56 = vmul.f32 %v11522_v55, %v9799_v6  ;;  %v4491_v0 = vpop.f32.mrb[45].mxu1 }
 0xb8d   :  { %v4538_v50 = vmul.f32 %v9799_v6, %v4491_v0 }
 0xb8e   :  { %v4555_v1 = vadd.f32 %v9801_v3, %v4539_v56 }
 0xb8f   :  { %v4554_v44 = vadd.f32 %v9801_v3, %v4538_v50  ;;  %v11525_v5 = vpop.f32.mrb[46].mxu1 }
 0xb90   :  { %v4541_v53 = vmul.f32 %v11525_v5, %v9799_v6  ;;  %v4501_v7 = vpop.f32.mrb[47].mxu1  ;;  %v4563_v10 = vmax.f32 %v4555_v1, 0.0 }
 0xb91   :  { %v4562_v8 = vmax.f32 %v4554_v44, 0.0  ;;  %v4540_v9 = vmul.f32 %v9799_v6, %v4501_v7 }
 0xb92   :  { %v4557_v11 = vadd.f32 %v9801_v3, %v4541_v53 }
 0xb93   :  { %v4556_v4 = vadd.f32 %v9801_v3, %v4540_v9  ;;  %v11528_v14 = vpop.f32.mrb[48].mxu1  ;;  %11540 = vmatprep.mubr.msk.f32.mxu0 %vm230_vm2, %v4562_v8 }
 0xb94   :  { %v4543_v62 = vmul.f32 %v11528_v14, %v9799_v6  ;;  %v4511_v16 = vpop.f32.mrb[49].mxu1  ;;  %11541 = vmatmul.mubr.msk.f32.vlgmr.msra.gmra.mrb[44].mxu0 %vm230_vm2, %v4563_v10  ;;  %v4565_v24 = vmax.f32 %v4557_v11, 0.0 }
 0xb95   :  { %v4564_v17 = vmax.f32 %v4556_v4, 0.0  ;;  %v4542_v23 = vmul.f32 %v9799_v6, %v4511_v16  ;;  %12430 = vmatpush3.bf16.msra.mxu0 %v12427_v60 }
 0xb96   :  { %v4559_v20 = vadd.f32 %v9801_v3, %v4543_v62 }
 0xb97   :  { %v4558_v25 = vadd.f32 %v9801_v3, %v4542_v23  ;;  %v11531_v27 = vpop.f32.mrb[50].mxu1  ;;  %11543 = vmatprep.mubr.msk.f32.mxu0 %vm230_vm2, %v4564_v17 }
 0xb98   :  { %v4545_v33 = vmul.f32 %v11531_v27, %v9799_v6  ;;  %v4521_v32 = vpop.f32.mrb[51].mxu1  ;;  %11544 = vmatmul.mubr.msk.f32.gmra.mrb[46].mxu0 %vm230_vm2, %v4565_v24  ;;  %v4567_v34 = vmax.f32 %v4559_v20, 0.0  ;;  %v9820_v24 = vld [vmem:[%s15398_s3 + $0x490] sm:$0xff] }
 0xb99   :  { %v4566_v47 = vmax.f32 %v4558_v25, 0.0  ;;  %v4544_v43 = vmul.f32 %v9799_v6, %v4521_v32  ;;  %v9817_v6 = vld [vmem:[%s15400_s5 + $0xb] ss:$0 sm:$0xff] }
 0xb9a   :  { %v4561_v40 = vadd.f32 %v9801_v3, %v4545_v33 }
 0xb9b   :  { %v4560_v19 = vadd.f32 %v9801_v3, %v4544_v43  ;;  %11546 = vmatprep.mubr.msk.f32.mxu0 %vm230_vm2, %v4566_v47 }
 0xb9c   :  { %11547 = vmatmul.mubr.msk.f32.gmra.mrb[48].mxu0 %vm230_vm2, %v4567_v34  ;;  %v4569_v28 = vmax.f32 %v4561_v40, 0.0  ;;  %v12415_v34 = vpack.c.bf16 %v9821_v63, %v9820_v24 }
 0xb9d   :  { %v4568_v26 = vmax.f32 %v4560_v19, 0.0 }
 0xb9f   :  { %11549 = vmatprep.mubr.msk.f32.mxu0 %vm230_vm2, %v4568_v26 }
 0xba0   :  { %11550 = vmatmul.mubr.msk.f32.gmra.mrb[50].mxu0 %vm230_vm2, %v4569_v28 }
 0xc67   :  { %v11542_v61 = vpop.f32.mrb[44].mxu0 }
 0xc68   :  { %v4713_v55 = vmul.f32 %v11542_v61, %v9815_v22  ;;  %v4665_v3 = vpop.f32.mrb[45].mxu0 }
 0xc69   :  { %v4712_v56 = vmul.f32 %v9815_v22, %v4665_v3 }
 0xc6a   :  { %v4729_v0 = vadd.f32 %v9817_v6, %v4713_v55 }
 0xc6b   :  { %v4728_v50 = vadd.f32 %v9817_v6, %v4712_v56  ;;  %v11545_v1 = vpop.f32.mrb[46].mxu0 }
 0xc6c   :  { %v4737_v44 = vmax.f32 %v4729_v0, 0.0  ;;  %v4715_v5 = vmul.f32 %v11545_v1, %v9815_v22  ;;  %v4675_v53 = vpop.f32.mrb[47].mxu0 }
 0xc6d   :  { %v4736_v7 = vmax.f32 %v4728_v50, 0.0  ;;  %v4714_v8 = vmul.f32 %v9815_v22, %v4675_v53 }
 0xc6e   :  { %v4745_v9 = vadd.f32 %v4737_v44, %v4389_v37  ;;  %v4731_v10 = vadd.f32 %v9817_v6, %v4715_v5 }
 0xc6f   :  { %v4744_v11 = vadd.f32 %v4736_v7, %v4388_v30  ;;  %v4730_v4 = vadd.f32 %v9817_v6, %v4714_v8  ;;  %v11548_v14 = vpop.f32.mrb[48].mxu0  ;;  %v9844_v8 = vld [vmem:[%s15398_s3 + $0x4d0] sm:$0xff] }
 0xc70   :  { %v14244_v62 = vmax.f32 %v4745_v9, 0.0  ;;  %v4739_v16 = vmax.f32 %v4731_v10, 0.0  ;;  %v4717_v17 = vmul.f32 %v11548_v14, %v9815_v22  ;;  %v4685_v23 = vpop.f32.mrb[49].mxu0  ;;  %v9845_v9 = vld [vmem:[%s15398_s3 + $0x4d8] sm:$0xff] }
 0xc71   :  { %v14252_v37 = vmax.f32 %v4744_v11, 0.0  ;;  %v4738_v20 = vmax.f32 %v4730_v4, 0.0  ;;  %v4716_v18 = vmul.f32 %v9815_v22, %v4685_v23  ;;  %v12423_v4 = vpack.c.bf16 %v9845_v9, %v9844_v8 }
 0xc72   :  { %v4747_v30 = vadd.f32 %v4739_v16, %v4391_v45  ;;  %v4733_v25 = vadd.f32 %v9817_v6, %v4717_v17  ;;  %v4798_v27 = vrot.slane %v14244_v62, 7  ;;  %v4776_v7 = vrot.slane %v14244_v62, 6 }
 0xc73   :  { %v4746_v33 = vadd.f32 %v4738_v20, %v4390_v15  ;;  %v4732_v32 = vadd.f32 %v9817_v6, %v4716_v18  ;;  %v11551_v47 = vpop.f32.mrb[50].mxu0  ;;  %v4797_v43 = vrot.slane %v14252_v37, 7  ;;  %v9842_v15 = vld [vmem:[%s15398_s3 + $0x4c0] sm:$0xff] }
 0xc74   :  { %v14261_v40 = vadd.f32 %v4747_v30, %v14140_v31  ;;  %v14263_v19 = vmax.f32 %v4747_v30, 0.0  ;;  %v4741_v26 = vmax.f32 %v4733_v25, 0.0  ;;  %v4719_v28 = vmul.f32 %v11551_v47, %v9815_v22  ;;  %v4695_v36 = vpop.f32.mrb[51].mxu0  ;;  %v9843_v31 = vld [vmem:[%s15398_s3 + $0x4c8] sm:$0xff]  ;;  %v9865_v47 = vld [vmem:[%s15398_s3 + $0x518] sm:$0xff] }
 0xc75   :  { %v14265_v45 = vmax.f32 %v4746_v33, 0.0  ;;  %v4740_v57 = vmax.f32 %v4732_v32, 0.0  ;;  %v4718_v51 = vmul.f32 %v9815_v22, %v4695_v36  ;;  %v4813_v46 = vsel %vm211_vm1, 0.0, %v4797_v43  ;;  %v9864_v32 = vld [vmem:[%s15398_s3 + $0x510] sm:$0xff]  ;;  %v9902_v36 = vld [vmem:[%s15398_s3 + $0x560] sm:$0xff] }
 0xc76   :  { %v4749_v42 = vadd.f32 %v4741_v26, %v4393_v12  ;;  %v4735_v38 = vadd.f32 %v9817_v6, %v4719_v28  ;;  %11560 = vmatprep.mubr.msk.f32.mxu1 %vm230_vm2, %v4813_v46  ;;  %v4799_v13 = vsel %vm211_vm1, %v4797_v43, %v4798_v27  ;;  %v4802_v2 = vrot.slane %v14263_v19, 7  ;;  %v9859_v26 = vld [vmem:[%s15398_s3 + $0x4e8] sm:$0xff] }
 0xc77   :  { %v4748_v54 = vadd.f32 %v4740_v57, %v4392_v39  ;;  %v4734_v60 = vadd.f32 %v9817_v6, %v4718_v51  ;;  %11561 = vmatmul.mubr.msk.f32.vlgmr.msra.gmra.mrb[52].mxu1 %vm230_vm2, %v4799_v13  ;;  %v4800_v22 = vrot.slane %v14265_v45, 7  ;;  %v12419_v49 = vpack.c.bf16 %v9843_v31, %v9842_v15  ;;  %v9903_v57 = vld [vmem:[%s15398_s3 + $0x568] sm:$0xff] }
 0xc78   :  { %v14283_v61 = vmax.f32 %v4749_v42, 0.0  ;;  %v4743_v55 = vmax.f32 %v4735_v38, 0.0  ;;  %12414 = vmatpush3.bf16.msra.mxu1 %v14225_v35  ;;  %v4778_v11 = vrot.slane %v14265_v45, 6  ;;  %v4780_v16 = vrot.slane %v14263_v19, 6  ;;  %v9855_v46 = vld [vmem:[%s15399_s4 + $0xc] ss:$0 sm:$0xff] }
 0xc79   :  { %v14286_v12 = vmax.f32 %v4748_v54, 0.0  ;;  %v4742_v3 = vmax.f32 %v4734_v60, 0.0  ;;  %v4801_v56 = vsel %vm211_vm1, %v4798_v27, %v4800_v22  ;;  %v4803_v0 = vsel %vm211_vm1, %v4800_v22, %v4802_v2  ;;  %12416 = vmatprep.subr.bf16.mxu1 %v12415_v34  ;;  %v9857_v31 = vld [vmem:[%s15400_s5 + $0xc] ss:$0 sm:$0xff] }
 0xc7a   :  { %v4751_v59 = vadd.f32 %v4743_v55, %v4395_v52  ;;  %11563 = vmatprep.mubr.msk.f32.mxu1 %vm230_vm2, %v4801_v56  ;;  %v4805_v39 = vrot.slane %v14283_v61, 7  ;;  %v4779_v17 = vsel %vm188_vm3, %v4776_v7, %v4778_v11  ;;  %v4781_v24 = vsel %vm188_vm3, %v4778_v11, %v4780_v16 }
 0xc7b   :  { %v4750_v6 = vadd.f32 %v4742_v3, %v4394_v41  ;;  %11564 = vmatmul.mubr.msk.f32.gmra.mrb[54].mxu1 %vm230_vm2, %v4803_v0  ;;  %v4804_v35 = vrot.slane %v14286_v12, 7  ;;  %v4782_v23 = vrot.slane %v14286_v12, 6  ;;  %v4783_v63 = vrot.slane %v14283_v61, 6  ;;  %v9860_v0 = vld [vmem:[%s15398_s3 + $0x4f0] sm:$0xff] }
 0xc7c   :  { %v14299_v50 = vadd.f32 %v4751_v59, %v14174_v58  ;;  %v14301_v1 = vmax.f32 %v4751_v59, 0.0  ;;  %12418 = vmatpush3.bf16.msra.mxu1 %v12415_v34  ;;  %v4775_v58 = vrot.slane %v14252_v37, 6  ;;  %v12431_v43 = vpack.c.bf16 %v9865_v47, %v9864_v32  ;;  %v9858_v34 = vld [vmem:[%s15398_s3 + $0x4e0] sm:$0xff]  ;;  %v9861_v59 = vld [vmem:[%s15398_s3 + $0x4f8] sm:$0xff] }
 0xc7d   :  { %v14303_v44 = vmax.f32 %v4750_v6, 0.0  ;;  %v4814_v48 = vsel %vm211_vm1, 0.0, %v4804_v35  ;;  %v4806_v52 = vsel %vm211_vm1, %v4804_v35, %v4805_v39  ;;  %12420 = vmatprep.subr.bf16.mxu1 %v12419_v49  ;;  %v4792_v20 = vsel %vm188_vm3, 0.0, %v4782_v23 }
 0xc7e   :  { %11566 = vmatprep.mubr.msk.f32.mxu1 %vm230_vm2, %v4814_v48  ;;  %v4809_v29 = vrot.slane %v14301_v1, 7  ;;  %v4791_v10 = vsel %vm188_vm3, 0.0, %v4775_v58  ;;  %v4777_v14 = vsel %vm188_vm3, %v4775_v58, %v4776_v7  ;;  %v4784_v30 = vsel %vm188_vm3, %v4782_v23, %v4783_v63  ;;  %12432 = vmatprep.subr.bf16.mxu0 %v12431_v43 }
 0xc7f   :  { %11567 = vmatmul.mubr.msk.f32.gmra.mrb[56].mxu1 %vm230_vm2, %v4806_v52  ;;  %v4807_v41 = vrot.slane %v14303_v44, 7  ;;  %v4785_v18 = vrot.slane %v14303_v44, 6  ;;  %v4787_v25 = vrot.slane %v14301_v1, 6  ;;  %12434 = vmatpush3.bf16.msra.mxu0 %v12431_v43  ;;  %v12435_v28 = vpack.c.bf16 %v9859_v26, %v9858_v34 }
 0xc80   :  { %v12451_v51 = vpack.c.bf16 %v9903_v57, %v9902_v36  ;;  %v12439_v7 = vpack.c.bf16 %v9861_v59, %v9860_v0 }
 0xc81   :  { %v4808_v5 = vsel %vm211_vm1, %v4805_v39, %v4807_v41  ;;  %v4810_v53 = vsel %vm211_vm1, %v4807_v41, %v4809_v29  ;;  %v4786_v27 = vsel %vm188_vm3, %v4783_v63, %v4785_v18  ;;  %v4788_v33 = vsel %vm188_vm3, %v4785_v18, %v4787_v25  ;;  %12436 = vmatprep.subr.bf16.mxu0 %v12435_v28 }
 0xc82   :  { %11569 = vmatprep.mubr.msk.f32.mxu1 %vm230_vm2, %v4808_v5 }
 0xc83   :  { %11570 = vmatmul.mubr.msk.f32.gmra.mrb[58].mxu1 %vm230_vm2, %v4810_v53 }
 0xc84   :  { %11580 = vmatprep.mubr.msk.f32.mxu1 %vm230_vm2, %v4791_v10 }
 0xc87   :  { %11581 = vmatmul.mubr.msk.f32.vlgmr.msra.gmra.mrb[52].mxu1 %vm230_vm2, %v4777_v14  ;;  %v9883_v14 = vld [vmem:[%s15398_s3 + $0x528] sm:$0xff] }
 0xc88   :  { %12422 = vmatpush3.bf16.msra.mxu1 %v12419_v49  ;;  %11583 = vmatprep.mubr.msk.f32.mxu1 %vm230_vm2, %v4779_v17 }
 0xc89   :  { %12424 = vmatprep.subr.bf16.mxu1 %v12423_v4 }
 0xc8b   :  { %11584 = vmatmul.mubr.msk.f32.gmra.mrb[54].mxu1 %vm230_vm2, %v4781_v24 }
 0xc8c   :  { %11586 = vmatprep.mubr.msk.f32.mxu1 %vm230_vm2, %v4792_v20  ;;  %12426 = vmatpush3.bf16.msra.mxu1 %v12423_v4  ;;  %v9882_v4 = vld [vmem:[%s15398_s3 + $0x520] sm:$0xff] }
 0xc8d   :  { %12452 = vmatprep.subr.bf16.mxu1 %v12451_v51  ;;  %v12443_v32 = vpack.c.bf16 %v9883_v14, %v9882_v4  ;;  %v9895_v4 = vld [vmem:[%s15399_s4 + $0xd] ss:$0 sm:$0xff] }
 0xc8f   :  { %11587 = vmatmul.mubr.msk.f32.gmra.mrb[56].mxu1 %vm230_vm2, %v4784_v30 }
 0xc90   :  { %11589 = vmatprep.mubr.msk.f32.mxu1 %vm230_vm2, %v4786_v27 }
 0xc93   :  { %11590 = vmatmul.mubr.msk.f32.gmra.mrb[58].mxu1 %vm230_vm2, %v4788_v33 }
 0xc94   :  { %11600 = vmatprep.mubr.msk.f32.mxu1 %vm230_vm2, %v14252_v37 }
 0xc97   :  { %11601 = vmatmul.mubr.msk.f32.vlgmr.msra.gmra.mrb[52].mxu1 %vm230_vm2, %v14244_v62 }
 0xc98   :  { %11603 = vmatprep.mubr.msk.f32.mxu1 %vm230_vm2, %v14265_v45  ;;  %12454 = vmatpush3.bf16.msra.mxu1 %v12451_v51 }
 0xc9b   :  { %11604 = vmatmul.mubr.msk.f32.gmra.mrb[54].mxu1 %vm230_vm2, %v14263_v19 }
 0xc9c   :  { %11606 = vmatprep.mubr.msk.f32.mxu1 %vm230_vm2, %v14286_v12 }
 0xc9f   :  { %11607 = vmatmul.mubr.msk.f32.gmra.mrb[56].mxu1 %vm230_vm2, %v14283_v61 }
 0xca0   :  { %11609 = vmatprep.mubr.msk.f32.mxu1 %vm230_vm2, %v14303_v44 }
 0xca3   :  { %11610 = vmatmul.mubr.msk.f32.gmra.mrb[58].mxu1 %vm230_vm2, %v14301_v1 }
 0xd6a   :  { %v11602_v15 = vpop.f32.mrb[52].mxu1 }
 0xd6b   :  { %v5203_v42 = vmul.f32 %v11602_v15, %v9855_v46  ;;  %v5147_v38 = vpop.f32.mrb[53].mxu1 }
 0xd6c   :  { %v5202_v13 = vmul.f32 %v9855_v46, %v5147_v38 }
 0xd6d   :  { %v5219_v2 = vadd.f32 %v9857_v31, %v5203_v42 }
 0xd6e   :  { %v5218_v54 = vadd.f32 %v9857_v31, %v5202_v13  ;;  %v11605_v60 = vpop.f32.mrb[54].mxu1 }
 0xd6f   :  { %v14385_v22 = vmax.f32 %v5219_v2, 0.0  ;;  %v5205_v55 = vmul.f32 %v11605_v60, %v9855_v46  ;;  %v5157_v49 = vpop.f32.mrb[55].mxu1 }
 0xd70   :  { %v14387_v3 = vmax.f32 %v5218_v54, 0.0  ;;  %v5204_v56 = vmul.f32 %v9855_v46, %v5157_v49 }
 0xd71   :  { %v5270_v39 = vrot.slane %v14385_v22, 7  ;;  %v5221_v6 = vadd.f32 %v9857_v31, %v5205_v55  ;;  %v5248_v35 = vrot.slane %v14385_v22, 6 }
 0xd72   :  { %v5220_v48 = vadd.f32 %v9857_v31, %v5204_v56  ;;  %v11608_v52 = vpop.f32.mrb[56].mxu1  ;;  %v5269_v29 = vrot.slane %v14387_v3, 7  ;;  %v5247_v41 = vrot.slane %v14387_v3, 6 }
 0xd73   :  { %v14399_v58 = vmax.f32 %v5221_v6, 0.0  ;;  %v5207_v5 = vmul.f32 %v11608_v52, %v9855_v46  ;;  %v5167_v53 = vpop.f32.mrb[57].mxu1  ;;  %v9885_v52 = vld [vmem:[%s15398_s3 + $0x538] sm:$0xff] }
 0xd74   :  { %v14401_v8 = vmax.f32 %v5220_v48, 0.0  ;;  %v5206_v9 = vmul.f32 %v9855_v46, %v5167_v53  ;;  %v5285_v10 = vsel %vm211_vm1, 0.0, %v5269_v29  ;;  %v5271_v11 = vsel %vm211_vm1, %v5269_v29, %v5270_v39  ;;  %v9884_v48 = vld [vmem:[%s15398_s3 + $0x530] sm:$0xff] }
 0xd75   :  { %v5252_v16 = vrot.slane %v14399_v58, 6  ;;  %v5274_v17 = vrot.slane %v14399_v58, 7  ;;  %v5223_v23 = vadd.f32 %v9857_v31, %v5207_v5  ;;  %11620 = vmatprep.mubr.msk.f32.mxu0 %vm230_vm2, %v5285_v10  ;;  %v5249_v30 = vsel %vm188_vm3, %v5247_v41, %v5248_v35  ;;  %v9943_v10 = vld [vmem:[%s15398_s3 + $0x5c8] sm:$0xff] }
 0xd76   :  { %v5250_v24 = vrot.slane %v14401_v8, 6  ;;  %v5272_v63 = vrot.slane %v14401_v8, 7  ;;  %v5222_v20 = vadd.f32 %v9857_v31, %v5206_v9  ;;  %v11611_v18 = vpop.f32.mrb[58].mxu1  ;;  %11621 = vmatmul.mubr.msk.f32.vlgmr.msra.gmra.mrb[52].mxu0 %vm230_vm2, %v5271_v11  ;;  %v5263_v29 = vsel %vm188_vm3, 0.0, %v5247_v41  ;;  %v9942_v9 = vld [vmem:[%s15398_s3 + $0x5c0] sm:$0xff] }
 0xd77   :  { %v5231_v25 = vmax.f32 %v5223_v23, 0.0  ;;  %v5209_v27 = vmul.f32 %v11611_v18, %v9855_v46  ;;  %12438 = vmatpush3.bf16.msra.mxu0 %v12435_v28  ;;  %v5177_v33 = vpop.f32.mrb[59].mxu1  ;;  %v12447_v5 = vpack.c.bf16 %v9885_v52, %v9884_v48  ;;  %v12475_v11 = vpack.c.bf16 %v9943_v10, %v9942_v9 }
 0xd78   :  { %v5230_v47 = vmax.f32 %v5222_v20, 0.0  ;;  %v5208_v43 = vmul.f32 %v9855_v46, %v5177_v33  ;;  %v5273_v34 = vsel %vm211_vm1, %v5270_v39, %v5272_v63  ;;  %v5275_v26 = vsel %vm211_vm1, %v5272_v63, %v5274_v17  ;;  %12440 = vmatprep.subr.bf16.mxu0 %v12439_v7 }
 0xd79   :  { %v5255_v36 = vrot.slane %v5231_v25, 6  ;;  %v5277_v57 = vrot.slane %v5231_v25, 7  ;;  %v5225_v51 = vadd.f32 %v9857_v31, %v5209_v27  ;;  %11623 = vmatprep.mubr.msk.f32.mxu0 %vm230_vm2, %v5273_v34  ;;  %v5251_v15 = vsel %vm188_vm3, %v5248_v35, %v5250_v24 }
 0xd7a   :  { %v5224_v42 = vadd.f32 %v9857_v31, %v5208_v43  ;;  %11624 = vmatmul.mubr.msk.f32.gmra.mrb[54].mxu0 %vm230_vm2, %v5275_v26  ;;  %v5276_v28 = vrot.slane %v5230_v47, 7  ;;  %v5253_v38 = vsel %vm188_vm3, %v5250_v24, %v5252_v16  ;;  %v5254_v13 = vrot.slane %v5230_v47, 6  ;;  %v9897_v16 = vld [vmem:[%s15400_s5 + $0xd] ss:$0 sm:$0xff] }
 0xd7b   :  { %v5233_v46 = vmax.f32 %v5225_v51, 0.0  ;;  %12442 = vmatpush3.bf16.msra.mxu0 %v12439_v7  ;;  %v9899_v7 = vld [vmem:[%s15398_s3 + $0x548] sm:$0xff] }
 0xd7c   :  { %v5232_v2 = vmax.f32 %v5224_v42, 0.0  ;;  %v5286_v54 = vsel %vm211_vm1, 0.0, %v5276_v28  ;;  %v5278_v60 = vsel %vm211_vm1, %v5276_v28, %v5277_v57  ;;  %12444 = vmatprep.subr.bf16.mxu0 %v12443_v32  ;;  %v5256_v31 = vsel %vm188_vm3, %v5254_v13, %v5255_v36  ;;  %v9900_v28 = vld [vmem:[%s15398_s3 + $0x550] sm:$0xff] }
 0xd7d   :  { %v5259_v55 = vrot.slane %v5233_v46, 6  ;;  %v5281_v49 = vrot.slane %v5233_v46, 7  ;;  %11626 = vmatprep.mubr.msk.f32.mxu0 %vm230_vm2, %v5286_v54  ;;  %v5264_v53 = vsel %vm188_vm3, 0.0, %v5254_v13 }
 0xd7e   :  { %v5257_v56 = vrot.slane %v5232_v2, 6  ;;  %v5279_v0 = vrot.slane %v5232_v2, 7  ;;  %11627 = vmatmul.mubr.msk.f32.gmra.mrb[56].mxu0 %vm230_vm2, %v5278_v60 }
 0xd80   :  { %v5280_v59 = vsel %vm211_vm1, %v5277_v57, %v5279_v0  ;;  %v5282_v39 = vsel %vm211_vm1, %v5279_v0, %v5281_v49  ;;  %v5258_v6 = vsel %vm188_vm3, %v5255_v36, %v5257_v56  ;;  %v5260_v35 = vsel %vm188_vm3, %v5257_v56, %v5259_v55 }
 0xd81   :  { %11629 = vmatprep.mubr.msk.f32.mxu0 %vm230_vm2, %v5280_v59 }
 0xd82   :  { %11630 = vmatmul.mubr.msk.f32.gmra.mrb[58].mxu0 %vm230_vm2, %v5282_v39 }
 0xd83   :  { %11640 = vmatprep.mubr.msk.f32.mxu0 %vm230_vm2, %v5263_v29 }
 0xd86   :  { %11641 = vmatmul.mubr.msk.f32.vlgmr.msra.gmra.mrb[52].mxu0 %vm230_vm2, %v5249_v30 }
 0xd87   :  { %12446 = vmatpush3.bf16.msra.mxu0 %v12443_v32  ;;  %11643 = vmatprep.mubr.msk.f32.mxu0 %vm230_vm2, %v5251_v15 }
 0xd88   :  { %12448 = vmatprep.subr.bf16.mxu0 %v12447_v5 }
 0xd8a   :  { %11644 = vmatmul.mubr.msk.f32.gmra.mrb[54].mxu0 %vm230_vm2, %v5253_v38  ;;  %v9901_v38 = vld [vmem:[%s15398_s3 + $0x558] sm:$0xff] }
 0xd8b   :  { %11646 = vmatprep.mubr.msk.f32.mxu0 %vm230_vm2, %v5264_v53  ;;  %12450 = vmatpush3.bf16.msra.mxu0 %v12447_v5  ;;  %v12463_v56 = vpack.c.bf16 %v9901_v38, %v9900_v28 }
 0xd8c   :  { %12476 = vmatprep.subr.bf16.mxu0 %v12475_v11 }
 0xd8e   :  { %11647 = vmatmul.mubr.msk.f32.gmra.mrb[56].mxu0 %vm230_vm2, %v5256_v31 }
 0xd8f   :  { %11649 = vmatprep.mubr.msk.f32.mxu0 %vm230_vm2, %v5258_v6 }
 0xd92   :  { %11650 = vmatmul.mubr.msk.f32.gmra.mrb[58].mxu0 %vm230_vm2, %v5260_v35 }
 0xd93   :  { %11660 = vmatprep.mubr.msk.f32.mxu0 %vm230_vm2, %v14387_v3  ;;  %v9904_v3 = vld [vmem:[%s15398_s3 + $0x570] sm:$0xff] }
 0xd96   :  { %11661 = vmatmul.mubr.msk.f32.vlgmr.msra.gmra.mrb[52].mxu0 %vm230_vm2, %v14385_v22  ;;  %v9905_v22 = vld [vmem:[%s15398_s3 + $0x578] sm:$0xff] }
 0xd97   :  { %11663 = vmatprep.mubr.msk.f32.mxu0 %vm230_vm2, %v14401_v8  ;;  %v12455_v41 = vpack.c.bf16 %v9905_v22, %v9904_v3  ;;  %12478 = vmatpush3.bf16.msra.mxu0 %v12475_v11 }
 0xd99   :  { %12456 = vmatprep.subr.bf16.mxu1 %v12455_v41 }
 0xd9a   :  { %11664 = vmatmul.mubr.msk.f32.gmra.mrb[54].mxu0 %vm230_vm2, %v14399_v58  ;;  %12458 = vmatpush3.bf16.msra.mxu1 %v12455_v41  ;;  %v9898_v58 = vld [vmem:[%s15398_s3 + $0x540] sm:$0xff] }
 0xd9b   :  { %11666 = vmatprep.mubr.msk.f32.mxu0 %vm230_vm2, %v5230_v47  ;;  %v14475_v8 = vpack.c.bf16 %v9899_v7, %v9898_v58 }
 0xd9d   :  { %12460 = vmatprep.subr.bf16.mxu1 %v14475_v8 }
 0xd9e   :  { %11667 = vmatmul.mubr.msk.f32.gmra.mrb[56].mxu0 %vm230_vm2, %v5231_v25 }
 0xd9f   :  { %11669 = vmatprep.mubr.msk.f32.mxu0 %vm230_vm2, %v5232_v2 }
 0xda2   :  { %11670 = vmatmul.mubr.msk.f32.gmra.mrb[58].mxu0 %vm230_vm2, %v5233_v46 }
 0xe69   :  { %v11662_v14 = vpop.f32.mrb[52].mxu0 }
 0xe6a   :  { %v5675_v17 = vmul.f32 %v11662_v14, %v9895_v4  ;;  %v5619_v23 = vpop.f32.mrb[53].mxu0 }
 0xe6b   :  { %v5674_v24 = vmul.f32 %v9895_v4, %v5619_v23 }
 0xe6c   :  { %v5691_v63 = vadd.f32 %v9897_v16, %v5675_v17 }
 0xe6d   :  { %v5690_v20 = vadd.f32 %v9897_v16, %v5674_v24  ;;  %v11665_v18 = vpop.f32.mrb[54].mxu0 }
 0xe6e   :  { %v5699_v30 = vmax.f32 %v5691_v63, 0.0  ;;  %v5677_v25 = vmul.f32 %v11665_v18, %v9895_v4  ;;  %v5629_v27 = vpop.f32.mrb[55].mxu0 }
 0xe6f   :  { %v5698_v33 = vmax.f32 %v5690_v20, 0.0  ;;  %v5676_v32 = vmul.f32 %v9895_v4, %v5629_v27 }
 0xe70   :  { %v5707_v47 = vadd.f32 %v5699_v30, %v14244_v62  ;;  %v5693_v43 = vadd.f32 %v9897_v16, %v5677_v25 }
 0xe71   :  { %v5706_v34 = vadd.f32 %v5698_v33, %v14252_v37  ;;  %v5692_v26 = vadd.f32 %v9897_v16, %v5676_v32  ;;  %v11668_v36 = vpop.f32.mrb[56].mxu0  ;;  %v9924_v32 = vld [vmem:[%s15398_s3 + $0x590] sm:$0xff] }
 0xe72   :  { %v14492_v57 = vmax.f32 %v5707_v47, 0.0  ;;  %v5701_v51 = vmax.f32 %v5693_v43, 0.0  ;;  %v5679_v15 = vmul.f32 %v11668_v36, %v9895_v4  ;;  %v5639_v42 = vpop.f32.mrb[57].mxu0  ;;  %v9925_v47 = vld [vmem:[%s15398_s3 + $0x598] sm:$0xff] }
 0xe73   :  { %v14500_v13 = vmax.f32 %v5706_v34, 0.0  ;;  %v5700_v62 = vmax.f32 %v5692_v26, 0.0  ;;  %v5678_v46 = vmul.f32 %v9895_v4, %v5639_v42  ;;  %v12471_v26 = vpack.c.bf16 %v9925_v47, %v9924_v32 }
 0xe74   :  { %v5709_v37 = vadd.f32 %v5701_v51, %v14263_v19  ;;  %v5695_v2 = vadd.f32 %v9897_v16, %v5679_v15  ;;  %v5760_v54 = vrot.slane %v14492_v57, 6  ;;  %v5738_v33 = vrot.slane %v14492_v57, 4 }
 0xe75   :  { %v5708_v60 = vadd.f32 %v5700_v62, %v14265_v45  ;;  %v5694_v55 = vadd.f32 %v9897_v16, %v5678_v46  ;;  %v11671_v49 = vpop.f32.mrb[58].mxu0  ;;  %v5759_v31 = vrot.slane %v14500_v13, 6  ;;  %v9922_v45 = vld [vmem:[%s15398_s3 + $0x580] sm:$0xff] }
 0xe76   :  { %v14507_v0 = vadd.f32 %v5709_v37, %v14261_v40  ;;  %v14509_v59 = vmax.f32 %v5709_v37, 0.0  ;;  %v5703_v39 = vmax.f32 %v5695_v2, 0.0  ;;  %v5681_v6 = vmul.f32 %v11671_v49, %v9895_v4  ;;  %v5649_v35 = vpop.f32.mrb[59].mxu0  ;;  %v9923_v40 = vld [vmem:[%s15398_s3 + $0x588] sm:$0xff]  ;;  %v9945_v49 = vld [vmem:[%s15398_s3 + $0x5d8] sm:$0xff] }
 0xe77   :  { %v14511_v48 = vmax.f32 %v5708_v60, 0.0  ;;  %v5702_v19 = vmax.f32 %v5694_v55, 0.0  ;;  %v5680_v52 = vmul.f32 %v9895_v4, %v5649_v35  ;;  %v5775_v29 = vsel %vm188_vm3, 0.0, %v5759_v31  ;;  %v9944_v55 = vld [vmem:[%s15398_s3 + $0x5d0] sm:$0xff]  ;;  %v9982_v35 = vld [vmem:[%s15398_s3 + $0x620] sm:$0xff] }
 0xe78   :  { %v5711_v5 = vadd.f32 %v5703_v39, %v14283_v61  ;;  %v5697_v53 = vadd.f32 %v9897_v16, %v5681_v6  ;;  %11680 = vmatprep.mubr.msk.f32.mxu1 %vm230_vm2, %v5775_v29  ;;  %v5761_v3 = vsel %vm188_vm3, %v5759_v31, %v5760_v54  ;;  %v5764_v22 = vrot.slane %v14509_v59, 6  ;;  %v9939_v39 = vld [vmem:[%s15398_s3 + $0x5a8] sm:$0xff] }
 0xe79   :  { %v5710_v41 = vadd.f32 %v5702_v19, %v14286_v12  ;;  %v5696_v58 = vadd.f32 %v9897_v16, %v5680_v52  ;;  %11681 = vmatmul.mubr.msk.f32.vlgmr.msra.gmra.mrb[60].mxu1 %vm230_vm2, %v5761_v3  ;;  %v5762_v7 = vrot.slane %v14511_v48, 6  ;;  %v12467_v61 = vpack.c.bf16 %v9923_v40, %v9922_v45  ;;  %v9983_v19 = vld [vmem:[%s15398_s3 + $0x628] sm:$0xff] }
 0xe7a   :  { %v14527_v9 = vmax.f32 %v5711_v5, 0.0  ;;  %v5705_v10 = vmax.f32 %v5697_v53, 0.0  ;;  %12462 = vmatpush3.bf16.msra.mxu1 %v14475_v8  ;;  %v5740_v34 = vrot.slane %v14511_v48, 4  ;;  %v5742_v51 = vrot.slane %v14509_v59, 4  ;;  %v9935_v29 = vld [vmem:[%s15399_s4 + $0xe] ss:$0 sm:$0xff] }
 0xe7b   :  { %v14530_v11 = vmax.f32 %v5710_v41, 0.0  ;;  %v5704_v4 = vmax.f32 %v5696_v58, 0.0  ;;  %v5763_v14 = vsel %vm188_vm3, %v5760_v54, %v5762_v7  ;;  %v5765_v17 = vsel %vm188_vm3, %v5762_v7, %v5764_v22  ;;  %12464 = vmatprep.subr.bf16.mxu1 %v12463_v56  ;;  %v9937_v40 = vld [vmem:[%s15400_s5 + $0xe] ss:$0 sm:$0xff] }
 0xe7c   :  { %v5713_v12 = vadd.f32 %v5705_v10, %v14301_v1  ;;  %11683 = vmatprep.mubr.msk.f32.mxu1 %vm230_vm2, %v5763_v14  ;;  %v5767_v16 = vrot.slane %v14527_v9, 6  ;;  %v5741_v15 = vsel %vm1151_vm4, %v5738_v33, %v5740_v34  ;;  %v5743_v28 = vsel %vm1151_vm4, %v5740_v34, %v5742_v51 }
 0xe7d   :  { %v5712_v23 = vadd.f32 %v5704_v4, %v14303_v44  ;;  %11684 = vmatmul.mubr.msk.f32.gmra.mrb[62].mxu1 %vm230_vm2, %v5765_v17  ;;  %v5766_v8 = vrot.slane %v14530_v11, 6  ;;  %v5744_v42 = vrot.slane %v14530_v11, 4  ;;  %v5745_v38 = vrot.slane %v14527_v9, 4  ;;  %v9940_v17 = vld [vmem:[%s15398_s3 + $0x5b0] sm:$0xff] }
 0xe7e   :  { %v14541_v24 = vadd.f32 %v5713_v12, %v14299_v50  ;;  %v14543_v63 = vmax.f32 %v5713_v12, 0.0  ;;  %12466 = vmatpush3.bf16.msra.mxu1 %v12463_v56  ;;  %v5737_v50 = vrot.slane %v14500_v13, 4  ;;  %v12479_v31 = vpack.c.bf16 %v9945_v49, %v9944_v55  ;;  %v9938_v56 = vld [vmem:[%s15398_s3 + $0x5a0] sm:$0xff]  ;;  %v9941_v12 = vld [vmem:[%s15398_s3 + $0x5b8] sm:$0xff] }
 0xe7f   :  { %v14545_v20 = vmax.f32 %v5712_v23, 0.0  ;;  %v5776_v1 = vsel %vm188_vm3, 0.0, %v5766_v8  ;;  %v5768_v18 = vsel %vm188_vm3, %v5766_v8, %v5767_v16  ;;  %12468 = vmatprep.subr.bf16.mxu1 %v12467_v61  ;;  %v5754_v62 = vsel %vm1151_vm4, 0.0, %v5744_v42 }
 0xe80   :  { %11686 = vmatprep.mubr.msk.f32.mxu1 %vm230_vm2, %v5776_v1  ;;  %v5771_v44 = vrot.slane %v14543_v63, 6  ;;  %v5753_v43 = vsel %vm1151_vm4, 0.0, %v5737_v50  ;;  %v5739_v36 = vsel %vm1151_vm4, %v5737_v50, %v5738_v33  ;;  %v5746_v37 = vsel %vm1151_vm4, %v5744_v42, %v5745_v38  ;;  %12480 = vmatprep.subr.bf16.mxu0 %v12479_v31 }
 0xe81   :  { %11687 = vmatmul.mubr.msk.f32.gmra.mrb[64].mxu1 %vm230_vm2, %v5768_v18  ;;  %v5769_v30 = vrot.slane %v14545_v20, 6  ;;  %v5747_v46 = vrot.slane %v14545_v20, 4  ;;  %v5749_v2 = vrot.slane %v14543_v63, 4  ;;  %12482 = vmatpush3.bf16.msra.mxu0 %v12479_v31  ;;  %v12483_v6 = vpack.c.bf16 %v9939_v39, %v9938_v56 }
 0xe82   :  { %v12499_v52 = vpack.c.bf16 %v9983_v19, %v9982_v35  ;;  %v12487_v33 = vpack.c.bf16 %v9941_v12, %v9940_v17 }
 0xe83   :  { %v5770_v25 = vsel %vm188_vm3, %v5767_v16, %v5769_v30  ;;  %v5772_v27 = vsel %vm188_vm3, %v5769_v30, %v5771_v44  ;;  %v5748_v54 = vsel %vm1151_vm4, %v5745_v38, %v5747_v46  ;;  %v5750_v60 = vsel %vm1151_vm4, %v5747_v46, %v5749_v2  ;;  %12484 = vmatprep.subr.bf16.mxu0 %v12483_v6 }
 0xe84   :  { %11689 = vmatprep.mubr.msk.f32.mxu1 %vm230_vm2, %v5770_v25 }
 0xe85   :  { %11690 = vmatmul.mubr.msk.f32.gmra.mrb[66].mxu1 %vm230_vm2, %v5772_v27 }
 0xe86   :  { %11700 = vmatprep.mubr.msk.f32.mxu1 %vm230_vm2, %v5753_v43 }
 0xe89   :  { %11701 = vmatmul.mubr.msk.f32.vlgmr.msra.gmra.mrb[60].mxu1 %vm230_vm2, %v5739_v36  ;;  %v9963_v36 = vld [vmem:[%s15398_s3 + $0x5e8] sm:$0xff] }
 0xe8a   :  { %12470 = vmatpush3.bf16.msra.mxu1 %v12467_v61  ;;  %11703 = vmatprep.mubr.msk.f32.mxu1 %vm230_vm2, %v5741_v15 }
 0xe8b   :  { %12472 = vmatprep.subr.bf16.mxu1 %v12471_v26 }
 0xe8d   :  { %11704 = vmatmul.mubr.msk.f32.gmra.mrb[62].mxu1 %vm230_vm2, %v5743_v28 }
 0xe8e   :  { %11706 = vmatprep.mubr.msk.f32.mxu1 %vm230_vm2, %v5754_v62  ;;  %12474 = vmatpush3.bf16.msra.mxu1 %v12471_v26  ;;  %v9962_v26 = vld [vmem:[%s15398_s3 + $0x5e0] sm:$0xff] }
 0xe8f   :  { %12500 = vmatprep.subr.bf16.mxu1 %v12499_v52  ;;  %v12491_v55 = vpack.c.bf16 %v9963_v36, %v9962_v26  ;;  %v9975_v26 = vld [vmem:[%s15399_s4 + $0xf] ss:$0 sm:$0xff] }
 0xe91   :  { %11707 = vmatmul.mubr.msk.f32.gmra.mrb[64].mxu1 %vm230_vm2, %v5746_v37 }
 0xe92   :  { %11709 = vmatprep.mubr.msk.f32.mxu1 %vm230_vm2, %v5748_v54 }
 0xe95   :  { %11710 = vmatmul.mubr.msk.f32.gmra.mrb[66].mxu1 %vm230_vm2, %v5750_v60 }
 0xe96   :  { %11720 = vmatprep.mubr.msk.f32.mxu1 %vm230_vm2, %v14500_v13 }
 0xe99   :  { %11721 = vmatmul.mubr.msk.f32.vlgmr.msra.gmra.mrb[60].mxu1 %vm230_vm2, %v14492_v57 }
 0xe9a   :  { %11723 = vmatprep.mubr.msk.f32.mxu1 %vm230_vm2, %v14511_v48  ;;  %12502 = vmatpush3.bf16.msra.mxu1 %v12499_v52 }
 0xe9d   :  { %11724 = vmatmul.mubr.msk.f32.gmra.mrb[62].mxu1 %vm230_vm2, %v14509_v59 }
 0xe9e   :  { %11726 = vmatprep.mubr.msk.f32.mxu1 %vm230_vm2, %v14530_v11 }
 0xea1   :  { %11727 = vmatmul.mubr.msk.f32.gmra.mrb[64].mxu1 %vm230_vm2, %v14527_v9 }
 0xea2   :  { %11729 = vmatprep.mubr.msk.f32.mxu1 %vm230_vm2, %v14545_v20 }
 0xea5   :  { %11730 = vmatmul.mubr.msk.f32.gmra.mrb[66].mxu1 %vm230_vm2, %v14543_v63 }
 0xf6c   :  { %v11722_v45 = vpop.f32.mrb[60].mxu1 }
 0xf6d   :  { %v6165_v5 = vmul.f32 %v11722_v45, %v9935_v29  ;;  %v6109_v53 = vpop.f32.mrb[61].mxu1 }
 0xf6e   :  { %v6164_v3 = vmul.f32 %v9935_v29, %v6109_v53 }
 0xf6f   :  { %v6181_v22 = vadd.f32 %v9937_v40, %v6165_v5 }
 0xf70   :  { %v6180_v41 = vadd.f32 %v9937_v40, %v6164_v3  ;;  %v11725_v58 = vpop.f32.mrb[62].mxu1 }
 0xf71   :  { %v14627_v7 = vmax.f32 %v6181_v22, 0.0  ;;  %v6167_v10 = vmul.f32 %v11725_v58, %v9935_v29  ;;  %v6119_v61 = vpop.f32.mrb[63].mxu1 }
 0xf72   :  { %v14629_v4 = vmax.f32 %v6180_v41, 0.0  ;;  %v6166_v14 = vmul.f32 %v9935_v29, %v6119_v61 }
 0xf73   :  { %v6232_v16 = vrot.slane %v14627_v7, 6  ;;  %v6183_v23 = vadd.f32 %v9937_v40, %v6167_v10  ;;  %v6210_v8 = vrot.slane %v14627_v7, 4 }
 0xf74   :  { %v6182_v1 = vadd.f32 %v9937_v40, %v6166_v14  ;;  %v11728_v18 = vpop.f32.mrb[64].mxu1  ;;  %v6231_v44 = vrot.slane %v14629_v4, 6  ;;  %v6209_v30 = vrot.slane %v14629_v4, 4 }
 0xf75   :  { %v14641_v50 = vmax.f32 %v6183_v23, 0.0  ;;  %v6169_v25 = vmul.f32 %v11728_v18, %v9935_v29  ;;  %v6129_v27 = vpop.f32.mrb[65].mxu1  ;;  %v9965_v18 = vld [vmem:[%s15398_s3 + $0x5f8] sm:$0xff] }
 0xf76   :  { %v14643_v32 = vmax.f32 %v6182_v1, 0.0  ;;  %v6168_v47 = vmul.f32 %v9935_v29, %v6129_v27  ;;  %v6247_v43 = vsel %vm188_vm3, 0.0, %v6231_v44  ;;  %v6233_v34 = vsel %vm188_vm3, %v6231_v44, %v6232_v16  ;;  %v9964_v1 = vld [vmem:[%s15398_s3 + $0x5f0] sm:$0xff] }
 0xf77   :  { %v6214_v51 = vrot.slane %v14641_v50, 4  ;;  %v6236_v15 = vrot.slane %v14641_v50, 6  ;;  %v6185_v42 = vadd.f32 %v9937_v40, %v6169_v25  ;;  %11740 = vmatprep.mubr.msk.f32.mxu0 %vm230_vm2, %v6247_v43  ;;  %v6211_v37 = vsel %vm1151_vm4, %v6209_v30, %v6210_v8  ;;  %v10021_v43 = vld [vmem:[%s15398_s3 + $0x688] sm:$0xff] }
 0xf78   :  { %v6212_v28 = vrot.slane %v14643_v32, 4  ;;  %v6234_v38 = vrot.slane %v14643_v32, 6  ;;  %v6184_v62 = vadd.f32 %v9937_v40, %v6168_v47  ;;  %v11731_v46 = vpop.f32.mrb[66].mxu1  ;;  %11741 = vmatmul.mubr.msk.f32.vlgmr.msra.gmra.mrb[60].mxu0 %vm230_vm2, %v6233_v34  ;;  %v6225_v44 = vsel %vm1151_vm4, 0.0, %v6209_v30  ;;  %v10020_v47 = vld [vmem:[%s15398_s3 + $0x680] sm:$0xff] }
 0xf79   :  { %v6193_v2 = vmax.f32 %v6185_v42, 0.0  ;;  %v6171_v54 = vmul.f32 %v11731_v46, %v9935_v29  ;;  %12486 = vmatpush3.bf16.msra.mxu0 %v12483_v6  ;;  %v6139_v60 = vpop.f32.mrb[67].mxu1  ;;  %v12495_v25 = vpack.c.bf16 %v9965_v18, %v9964_v1  ;;  %v12523_v34 = vpack.c.bf16 %v10021_v43, %v10020_v47 }
 0xf7a   :  { %v6192_v49 = vmax.f32 %v6184_v62, 0.0  ;;  %v6170_v31 = vmul.f32 %v9935_v29, %v6139_v60  ;;  %v6235_v56 = vsel %vm188_vm3, %v6232_v16, %v6234_v38  ;;  %v6237_v39 = vsel %vm188_vm3, %v6234_v38, %v6236_v15  ;;  %12488 = vmatprep.subr.bf16.mxu0 %v12487_v33 }
 0xf7b   :  { %v6217_v35 = vrot.slane %v6193_v2, 4  ;;  %v6239_v19 = vrot.slane %v6193_v2, 6  ;;  %v6187_v52 = vadd.f32 %v9937_v40, %v6171_v54  ;;  %11743 = vmatprep.mubr.msk.f32.mxu0 %vm230_vm2, %v6235_v56  ;;  %v6213_v45 = vsel %vm1151_vm4, %v6210_v8, %v6212_v28 }
 0xf7c   :  { %v6186_v5 = vadd.f32 %v9937_v40, %v6170_v31  ;;  %11744 = vmatmul.mubr.msk.f32.gmra.mrb[62].mxu0 %vm230_vm2, %v6237_v39  ;;  %v6238_v6 = vrot.slane %v6192_v49, 6  ;;  %v6215_v53 = vsel %vm1151_vm4, %v6212_v28, %v6214_v51  ;;  %v6216_v3 = vrot.slane %v6192_v49, 4  ;;  %v9977_v51 = vld [vmem:[%s15400_s5 + $0xf] ss:$0 sm:$0xff] }
 0xf7d   :  { %v6195_v29 = vmax.f32 %v6187_v52, 0.0  ;;  %12490 = vmatpush3.bf16.msra.mxu0 %v12487_v33  ;;  %v9979_v33 = vld [vmem:[%s15398_s3 + $0x608] sm:$0xff] }
 0xf7e   :  { %v6194_v22 = vmax.f32 %v6186_v5, 0.0  ;;  %v6248_v41 = vsel %vm188_vm3, 0.0, %v6238_v6  ;;  %v6240_v58 = vsel %vm188_vm3, %v6238_v6, %v6239_v19  ;;  %12492 = vmatprep.subr.bf16.mxu0 %v12491_v55  ;;  %v6218_v40 = vsel %vm1151_vm4, %v6216_v3, %v6217_v35  ;;  %v9980_v6 = vld [vmem:[%s15398_s3 + $0x610] sm:$0xff] }
 0xf7f   :  { %v6221_v10 = vrot.slane %v6195_v29, 4  ;;  %v6243_v61 = vrot.slane %v6195_v29, 6  ;;  %11746 = vmatprep.mubr.msk.f32.mxu0 %vm230_vm2, %v6248_v41  ;;  %v6226_v27 = vsel %vm1151_vm4, 0.0, %v6216_v3 }
 0xf80   :  { %v6219_v14 = vrot.slane %v6194_v22, 4  ;;  %v6241_v17 = vrot.slane %v6194_v22, 6  ;;  %11747 = vmatmul.mubr.msk.f32.gmra.mrb[64].mxu0 %vm230_vm2, %v6240_v58 }
 0xf82   :  { %v6242_v12 = vsel %vm188_vm3, %v6239_v19, %v6241_v17  ;;  %v6244_v16 = vsel %vm188_vm3, %v6241_v17, %v6243_v61  ;;  %v6220_v23 = vsel %vm1151_vm4, %v6217_v35, %v6219_v14  ;;  %v6222_v8 = vsel %vm1151_vm4, %v6219_v14, %v6221_v10 }
 0xf83   :  { %11749 = vmatprep.mubr.msk.f32.mxu0 %vm230_vm2, %v6242_v12 }
 0xf84   :  { %11750 = vmatmul.mubr.msk.f32.gmra.mrb[66].mxu0 %vm230_vm2, %v6244_v16 }
 0xf85   :  { %11760 = vmatprep.mubr.msk.f32.mxu0 %vm230_vm2, %v6225_v44 }
 0xf88   :  { %11761 = vmatmul.mubr.msk.f32.vlgmr.msra.gmra.mrb[60].mxu0 %vm230_vm2, %v6211_v37 }
 0xf89   :  { %12494 = vmatpush3.bf16.msra.mxu0 %v12491_v55  ;;  %11763 = vmatprep.mubr.msk.f32.mxu0 %vm230_vm2, %v6213_v45 }
 0xf8a   :  { %12496 = vmatprep.subr.bf16.mxu0 %v12495_v25 }
 0xf8c   :  { %11764 = vmatmul.mubr.msk.f32.gmra.mrb[62].mxu0 %vm230_vm2, %v6215_v53  ;;  %v9981_v53 = vld [vmem:[%s15398_s3 + $0x618] sm:$0xff] }
 0xf8d   :  { %11766 = vmatprep.mubr.msk.f32.mxu0 %vm230_vm2, %v6226_v27  ;;  %12498 = vmatpush3.bf16.msra.mxu0 %v12495_v25  ;;  %v12511_v14 = vpack.c.bf16 %v9981_v53, %v9980_v6  ;;  %v10013_v53 = vld [vmem:[%s15399_s4 + $0x10] ss:$0 sm:$0xff] }
 0xf8e   :  { %12524 = vmatprep.subr.bf16.mxu0 %v12523_v34 }
 0xf90   :  { %11767 = vmatmul.mubr.msk.f32.gmra.mrb[64].mxu0 %vm230_vm2, %v6218_v40 }
 0xf91   :  { %11769 = vmatprep.mubr.msk.f32.mxu0 %vm230_vm2, %v6220_v23 }
 0xf94   :  { %11770 = vmatmul.mubr.msk.f32.gmra.mrb[66].mxu0 %vm230_vm2, %v6222_v8 }
 0xf95   :  { %11780 = vmatprep.mubr.msk.f32.mxu0 %vm230_vm2, %v14629_v4  ;;  %v9984_v4 = vld [vmem:[%s15398_s3 + $0x630] sm:$0xff] }
 0xf98   :  { %11781 = vmatmul.mubr.msk.f32.vlgmr.msra.gmra.mrb[60].mxu0 %vm230_vm2, %v14627_v7  ;;  %v9985_v7 = vld [vmem:[%s15398_s3 + $0x638] sm:$0xff] }
 0xf99   :  { %11783 = vmatprep.mubr.msk.f32.mxu0 %vm230_vm2, %v14643_v32  ;;  %v12503_v30 = vpack.c.bf16 %v9985_v7, %v9984_v4  ;;  %12526 = vmatpush3.bf16.msra.mxu0 %v12523_v34 }
 0xf9b   :  { %12504 = vmatprep.subr.bf16.mxu1 %v12503_v30 }
 0xf9c   :  { %11784 = vmatmul.mubr.msk.f32.gmra.mrb[62].mxu0 %vm230_vm2, %v14641_v50  ;;  %12506 = vmatpush3.bf16.msra.mxu1 %v12503_v30  ;;  %v9978_v50 = vld [vmem:[%s15398_s3 + $0x600] sm:$0xff] }
 0xf9d   :  { %11786 = vmatprep.mubr.msk.f32.mxu0 %vm230_vm2, %v6192_v49  ;;  %v14717_v32 = vpack.c.bf16 %v9979_v33, %v9978_v50 }
 0xf9f   :  { %12508 = vmatprep.subr.bf16.mxu1 %v14717_v32 }
 0xfa0   :  { %11787 = vmatmul.mubr.msk.f32.gmra.mrb[64].mxu0 %vm230_vm2, %v6193_v2 }
 0xfa1   :  { %11789 = vmatprep.mubr.msk.f32.mxu0 %vm230_vm2, %v6194_v22 }
 0xfa4   :  { %11790 = vmatmul.mubr.msk.f32.gmra.mrb[66].mxu0 %vm230_vm2, %v6195_v29 }
0x106b   :  { %v11782_v36 = vpop.f32.mrb[60].mxu0 }
0x106c   :  { %v6637_v15 = vmul.f32 %v11782_v36, %v9975_v26  ;;  %v6581_v42 = vpop.f32.mrb[61].mxu0 }
0x106d   :  { %v6636_v28 = vmul.f32 %v9975_v26, %v6581_v42 }
0x106e   :  { %v6653_v38 = vadd.f32 %v9977_v51, %v6637_v15 }
0x106f   :  { %v6652_v62 = vadd.f32 %v9977_v51, %v6636_v28  ;;  %v11785_v46 = vpop.f32.mrb[62].mxu0 }
0x1070   :  { %v6661_v37 = vmax.f32 %v6653_v38, 0.0  ;;  %v6639_v2 = vmul.f32 %v11785_v46, %v9975_v26  ;;  %v6591_v54 = vpop.f32.mrb[63].mxu0 }
0x1071   :  { %v6660_v60 = vmax.f32 %v6652_v62, 0.0  ;;  %v6638_v55 = vmul.f32 %v9975_v26, %v6591_v54  ;;  %v10002_v54 = vld [vmem:[%s15398_s3 + $0x650] sm:$0xff] }
0x1072   :  { %v6669_v49 = vadd.f32 %v6661_v37, %v14492_v57  ;;  %v6655_v31 = vadd.f32 %v9977_v51, %v6639_v2 }
0x1073   :  { %v6668_v56 = vadd.f32 %v6660_v60, %v14500_v13  ;;  %v6654_v39 = vadd.f32 %v9977_v51, %v6638_v55  ;;  %v11788_v35 = vpop.f32.mrb[64].mxu0  ;;  %v10003_v60 = vld [vmem:[%s15398_s3 + $0x658] sm:$0xff] }
0x1074   :  { %v14734_v19 = vmax.f32 %v6669_v49, 0.0  ;;  %v6663_v52 = vmax.f32 %v6655_v31, 0.0  ;;  %v6641_v45 = vmul.f32 %v11788_v35, %v9975_v26  ;;  %v6601_v5 = vpop.f32.mrb[65].mxu0  ;;  %v12519_v55 = vpack.c.bf16 %v10003_v60, %v10002_v54  ;;  %v10022_v49 = vld [vmem:[%s15398_s3 + $0x690] sm:$0xff]  ;;  %v10023_v31 = vld [vmem:[%s15398_s3 + $0x698] sm:$0xff]  ;;  %v10017_v35 = vld [vmem:[%s15398_s3 + $0x668] sm:$0xff] }
0x1075   :  { %v14742_v3 = vmax.f32 %v6668_v56, 0.0  ;;  %v6662_v57 = vmax.f32 %v6654_v39, 0.0  ;;  %v6640_v29 = vmul.f32 %v9975_v26, %v6601_v5  ;;  %v12527_v56 = vpack.c.bf16 %v10023_v31, %v10022_v49  ;;  %v10016_v39 = vld [vmem:[%s15398_s3 + $0x660] sm:$0xff]  ;;  %v10059_v5 = vld [vmem:[%s15398_s3 + $0x6e8] sm:$0xff] }
0x1076   :  { %v6671_v13 = vadd.f32 %v6663_v52, %v14509_v59  ;;  %v6657_v22 = vadd.f32 %v9977_v51, %v6641_v45  ;;  %v6704_v41 = vrot.slane %v14734_v19, 4  ;;  %v12531_v52 = vpack.c.bf16 %v10017_v35, %v10016_v39  ;;  %v10058_v45 = vld [vmem:[%s15398_s3 + $0x6e0] sm:$0xff] }
0x1077   :  { %v6670_v58 = vadd.f32 %v6662_v57, %v14511_v48  ;;  %v6656_v10 = vadd.f32 %v9977_v51, %v6640_v29  ;;  %v11791_v61 = vpop.f32.mrb[66].mxu0  ;;  %v6703_v40 = vrot.slane %v14742_v3, 4  ;;  %v10000_v48 = vld [vmem:[%s15398_s3 + $0x640] sm:$0xff]  ;;  %12528 = vmatprep.subr.bf16.mxu0 %v12527_v56  ;;  %v12547_v6 = vpack.c.bf16 %v10059_v5, %v10058_v45  ;;  %v10015_v29 = vld [vmem:[%s15400_s5 + $0x10] ss:$0 sm:$0xff] }
0x1078   :  { %v14749_v17 = vadd.f32 %v6671_v13, %v14507_v0  ;;  %v14751_v12 = vmax.f32 %v6671_v13, 0.0  ;;  %v6665_v16 = vmax.f32 %v6657_v22, 0.0  ;;  %v6643_v23 = vmul.f32 %v11791_v61, %v9975_v26  ;;  %v6611_v8 = vpop.f32.mrb[67].mxu0  ;;  %v10001_v0 = vld [vmem:[%s15398_s3 + $0x648] sm:$0xff]  ;;  %12530 = vmatpush3.bf16.msra.mxu0 %v12527_v56 }
0x1079   :  { %v14753_v1 = vmax.f32 %v6670_v58, 0.0  ;;  %v6664_v59 = vmax.f32 %v6656_v10, 0.0  ;;  %v6642_v18 = vmul.f32 %v9975_v26, %v6611_v8  ;;  %v6719_v44 = vsel %vm1151_vm4, 0.0, %v6703_v40  ;;  %12532 = vmatprep.subr.bf16.mxu0 %v12531_v52 }
0x107a   :  { %v6673_v25 = vadd.f32 %v6665_v16, %v14527_v9  ;;  %v6659_v27 = vadd.f32 %v9977_v51, %v6643_v23  ;;  %11800 = vmatprep.mubr.msk.f32.mxu1 %vm230_vm2, %v6719_v44  ;;  %v6705_v4 = vsel %vm1151_vm4, %v6703_v40, %v6704_v41  ;;  %v6708_v7 = vrot.slane %v14751_v12, 4 }
0x107b   :  { %v6672_v30 = vadd.f32 %v6664_v59, %v14530_v11  ;;  %v6658_v50 = vadd.f32 %v9977_v51, %v6642_v18  ;;  %11801 = vmatmul.mubr.msk.f32.vlgmr.msra.gmra.mrb[68].mxu1 %vm230_vm2, %v6705_v4  ;;  %v6706_v33 = vrot.slane %v14753_v1, 4  ;;  %v12515_v9 = vpack.c.bf16 %v10001_v0, %v10000_v48  ;;  %v10018_v59 = vld [vmem:[%s15398_s3 + $0x670] sm:$0xff]  ;;  %v10019_v18 = vld [vmem:[%s15398_s3 + $0x678] sm:$0xff] }
0x107c   :  { %v14769_v47 = vmax.f32 %v6673_v25, 0.0  ;;  %v6667_v43 = vmax.f32 %v6659_v27, 0.0  ;;  %12510 = vmatpush3.bf16.msra.mxu1 %v14717_v32 }
0x107d   :  { %v14772_v34 = vmax.f32 %v6672_v30, 0.0  ;;  %v6666_v26 = vmax.f32 %v6658_v50, 0.0  ;;  %v6707_v36 = vsel %vm1151_vm4, %v6704_v41, %v6706_v33  ;;  %v6709_v15 = vsel %vm1151_vm4, %v6706_v33, %v6708_v7  ;;  %12512 = vmatprep.subr.bf16.mxu1 %v12511_v14 }
0x107e   :  { %v6675_v11 = vadd.f32 %v6667_v43, %v14543_v63  ;;  %11803 = vmatprep.mubr.msk.f32.mxu1 %vm230_vm2, %v6707_v36  ;;  %v6711_v51 = vrot.slane %v14769_v47, 4  ;;  %v12535_v50 = vpack.c.bf16 %v10019_v18, %v10018_v59  ;;  %v10038_v36 = vld [vmem:[%s15398_s3 + $0x6a0] sm:$0xff]  ;;  %v10094_v59 = vld [vmem:[%s15398_s3 + $0x750] sm:$0xff] }
0x107f   :  { %v6674_v42 = vadd.f32 %v6666_v26, %v14545_v20  ;;  %11804 = vmatmul.mubr.msk.f32.gmra.mrb[70].mxu1 %vm230_vm2, %v6709_v15  ;;  %v6710_v32 = vrot.slane %v14772_v34, 4  ;;  %v10039_v15 = vld [vmem:[%s15398_s3 + $0x6a8] sm:$0xff] }
0x1080   :  { %v14783_v28 = vadd.f32 %v6675_v11, %v14541_v24  ;;  %v14785_v38 = vmax.f32 %v6675_v11, 0.0  ;;  %12514 = vmatpush3.bf16.msra.mxu1 %v12511_v14 }
0x1081   :  { %v14787_v62 = vmax.f32 %v6674_v42, 0.0  ;;  %v6720_v63 = vsel %vm1151_vm4, 0.0, %v6710_v32  ;;  %v6712_v46 = vsel %vm1151_vm4, %v6710_v32, %v6711_v51  ;;  %12516 = vmatprep.subr.bf16.mxu1 %v12515_v9 }
0x1082   :  { %11806 = vmatprep.mubr.msk.f32.mxu1 %vm230_vm2, %v6720_v63  ;;  %v6715_v20 = vrot.slane %v14785_v38, 4 }
0x1083   :  { %11807 = vmatmul.mubr.msk.f32.gmra.mrb[72].mxu1 %vm230_vm2, %v6712_v46  ;;  %v6713_v37 = vrot.slane %v14787_v62, 4 }
0x1085   :  { %v6714_v24 = vsel %vm1151_vm4, %v6711_v51, %v6713_v37  ;;  %v6716_v2 = vsel %vm1151_vm4, %v6713_v37, %v6715_v20 }
0x1086   :  { %11809 = vmatprep.mubr.msk.f32.mxu1 %vm230_vm2, %v6714_v24  ;;  %v12539_v24 = vpack.c.bf16 %v10039_v15, %v10038_v36 }
0x1087   :  { %11810 = vmatmul.mubr.msk.f32.gmra.mrb[74].mxu1 %vm230_vm2, %v6716_v2 }
0x1088   :  { %11820 = vmatprep.mubr.f32.mxu1 %v12970_v21 }
0x108b   :  { %11821 = vmatmul.mubr.msk.f32.vlgmr.msra.gmra.mrb[68].mxu1 %vm230_vm2, %v14742_v3 }
0x108c   :  { %12518 = vmatpush3.bf16.msra.mxu1 %v12515_v9  ;;  %11823 = vmatprep.mubr.msk.f32.mxu1 %vm230_vm2, %v14734_v19 }
0x108d   :  { %12520 = vmatprep.subr.bf16.mxu1 %v12519_v55 }
0x108f   :  { %11824 = vmatmul.mubr.msk.f32.gmra.mrb[70].mxu1 %vm230_vm2, %v14753_v1 }
0x1090   :  { %11826 = vmatprep.mubr.f32.mxu1 %v12970_v21  ;;  %12522 = vmatpush3.bf16.msra.mxu1 %v12519_v55 }
0x1091   :  { %12548 = vmatprep.subr.bf16.mxu1 %v12547_v6 }
0x1093   :  { %11827 = vmatmul.mubr.msk.f32.gmra.mrb[72].mxu1 %vm230_vm2, %v14772_v34 }
0x1094   :  { %11829 = vmatprep.mubr.msk.f32.mxu1 %vm230_vm2, %v14769_v47 }
0x1097   :  { %11830 = vmatmul.mubr.msk.f32.gmra.mrb[74].mxu1 %vm230_vm2, %v14787_v62 }
0x1098   :  { %11840 = vmatprep.mubr.msk.f32.mxu1 %vm230_vm2, %v14742_v3 }
0x109b   :  { %11841 = vmatmul.mubr.msk.f32.vlgmr.msra.gmra.mrb[68].mxu1 %vm230_vm2, %v14734_v19 }
0x109c   :  { %11843 = vmatprep.mubr.msk.f32.mxu1 %vm230_vm2, %v14753_v1  ;;  %12550 = vmatpush3.bf16.msra.mxu1 %v12547_v6 }
0x109f   :  { %11844 = vmatmul.mubr.msk.f32.gmra.mrb[70].mxu1 %vm230_vm2, %v14751_v12 }
0x10a0   :  { %11846 = vmatprep.mubr.msk.f32.mxu1 %vm230_vm2, %v14772_v34 }
0x10a3   :  { %11847 = vmatmul.mubr.msk.f32.gmra.mrb[72].mxu1 %vm230_vm2, %v14769_v47 }
0x10a4   :  { %11849 = vmatprep.mubr.msk.f32.mxu1 %vm230_vm2, %v14787_v62 }
0x10a7   :  { %11850 = vmatmul.mubr.msk.f32.gmra.mrb[74].mxu1 %vm230_vm2, %v14785_v38 }
0x10a8   :  { %11920 = vmatprep.mubr.f32.mxu1 %v12970_v21 }
0x116e   :  { %v11842_v57 = vpop.f32.mrb[68].mxu1 }
0x116f   :  { %v7091_v13 = vmul.f32 %v11842_v57, %v10013_v53  ;;  %v7035_v22 = vpop.f32.mrb[69].mxu1 }
0x1170   :  { %v7090_v41 = vmul.f32 %v10013_v53, %v7035_v22  ;;  %v10041_v22 = vld [vmem:[%s15398_s3 + $0x6b8] sm:$0xff] }
0x1171   :  { %v7107_v58 = vadd.f32 %v10015_v29, %v7091_v13  ;;  %v10040_v13 = vld [vmem:[%s15398_s3 + $0x6b0] sm:$0xff] }
0x1172   :  { %v7106_v10 = vadd.f32 %v10015_v29, %v7090_v41  ;;  %v11845_v61 = vpop.f32.mrb[70].mxu1  ;;  %v12543_v41 = vpack.c.bf16 %v10041_v22, %v10040_v13 }
0x1173   :  { %v14860_v40 = vmax.f32 %v7107_v58, 0.0  ;;  %v7093_v14 = vmul.f32 %v11845_v61, %v10013_v53  ;;  %v7045_v16 = vpop.f32.mrb[71].mxu1  ;;  %v10060_v58 = vld [vmem:[%s15398_s3 + $0x6f0] sm:$0xff] }
0x1174   :  { %v14862_v23 = vmax.f32 %v7106_v10, 0.0  ;;  %v7092_v8 = vmul.f32 %v10013_v53, %v7045_v16  ;;  %v10061_v10 = vld [vmem:[%s15398_s3 + $0x6f8] sm:$0xff] }
0x1175   :  { %v7140_v44 = vrot.slane %v14860_v40, 4  ;;  %v14871_v48 = vadd.f32 %v10015_v29, %v7093_v14  ;;  %v12551_v61 = vpack.c.bf16 %v10061_v10, %v10060_v58  ;;  %v10055_v14 = vld [vmem:[%s15398_s3 + $0x6c8] sm:$0xff] }
0x1176   :  { %v7108_v0 = vadd.f32 %v10015_v29, %v7092_v8  ;;  %v11848_v25 = vpop.f32.mrb[72].mxu1  ;;  %v7139_v27 = vrot.slane %v14862_v23, 4  ;;  %v10093_v8 = vld [vmem:[%s15398_s3 + $0x748] sm:$0xff] }
0x1177   :  { %v7117_v4 = vmax.f32 %v14871_v48, 0.0  ;;  %v7095_v7 = vmul.f32 %v11848_v25, %v10013_v53  ;;  %v7055_v30 = vpop.f32.mrb[73].mxu1  ;;  %12552 = vmatprep.subr.bf16.mxu1 %v12551_v61 }
0x1178   :  { %v7116_v33 = vmax.f32 %v7108_v0, 0.0  ;;  %v7094_v43 = vmul.f32 %v10013_v53, %v7055_v30  ;;  %v7155_v9 = vsel %vm1151_vm4, 0.0, %v7139_v27  ;;  %v7141_v26 = vsel %vm1151_vm4, %v7139_v27, %v7140_v44  ;;  %12554 = vmatpush3.bf16.msra.mxu1 %v12551_v61  ;;  %v10051_v0 = vld [vmem:[%s15399_s4 + $0x11] ss:$0 sm:$0xff] }
0x1179   :  { %v7144_v11 = vrot.slane %v7117_v4, 4  ;;  %v7111_v51 = vadd.f32 %v10015_v29, %v7095_v7  ;;  %11860 = vmatprep.mubr.msk.f32.mxu0 %vm230_vm2, %v7155_v9  ;;  %v10053_v27 = vld [vmem:[%s15400_s5 + $0x11] ss:$0 sm:$0xff] }
0x117a   :  { %v7142_v42 = vrot.slane %v7116_v33, 4  ;;  %v7110_v32 = vadd.f32 %v10015_v29, %v7094_v43  ;;  %v11851_v63 = vpop.f32.mrb[74].mxu1  ;;  %11861 = vmatmul.mubr.msk.f32.vlgmr.msra.gmra.mrb[68].mxu0 %vm230_vm2, %v7141_v26 }
0x117b   :  { %v7119_v46 = vmax.f32 %v7111_v51, 0.0  ;;  %v7097_v20 = vmul.f32 %v11851_v63, %v10013_v53  ;;  %12534 = vmatpush3.bf16.msra.mxu0 %v12531_v52  ;;  %v7065_v37 = vpop.f32.mrb[75].mxu1  ;;  %v10057_v63 = vld [vmem:[%s15398_s3 + $0x6d8] sm:$0xff] }
0x117c   :  { %v7118_v2 = vmax.f32 %v7110_v32, 0.0  ;;  %v7096_v54 = vmul.f32 %v10013_v53, %v7065_v37  ;;  %v7143_v60 = vsel %vm1151_vm4, %v7140_v44, %v7142_v42  ;;  %v7145_v55 = vsel %vm1151_vm4, %v7142_v42, %v7144_v11  ;;  %12536 = vmatprep.subr.bf16.mxu0 %v12535_v50  ;;  %v10095_v44 = vld [vmem:[%s15398_s3 + $0x758] sm:$0xff]  ;;  %v10056_v32 = vld [vmem:[%s15398_s3 + $0x6d0] sm:$0xff] }
0x117d   :  { %v7147_v49 = vrot.slane %v7119_v46, 4  ;;  %v7113_v31 = vadd.f32 %v10015_v29, %v7097_v20  ;;  %11863 = vmatprep.mubr.msk.f32.mxu0 %vm230_vm2, %v7143_v60  ;;  %v12575_v48 = vpack.c.bf16 %v10095_v44, %v10094_v59  ;;  %v10074_v59 = vld [vmem:[%s15398_s3 + $0x710] sm:$0xff]  ;;  %v10088_v44 = vld [vmem:[%s15398_s3 + $0x720] sm:$0xff] }
0x117e   :  { %v7112_v56 = vadd.f32 %v10015_v29, %v7096_v54  ;;  %11864 = vmatmul.mubr.msk.f32.gmra.mrb[70].mxu0 %vm230_vm2, %v7145_v55  ;;  %v7146_v39 = vrot.slane %v7118_v2, 4 }
0x117f   :  { %v7121_v35 = vmax.f32 %v7113_v31, 0.0  ;;  %12538 = vmatpush3.bf16.msra.mxu0 %v12535_v50 }
0x1180   :  { %v7120_v52 = vmax.f32 %v7112_v56, 0.0  ;;  %v7156_v45 = vsel %vm1151_vm4, 0.0, %v7146_v39  ;;  %v7148_v5 = vsel %vm1151_vm4, %v7146_v39, %v7147_v49  ;;  %12540 = vmatprep.subr.bf16.mxu0 %v12539_v24 }
0x1181   :  { %v7151_v6 = vrot.slane %v7121_v35, 4  ;;  %11866 = vmatprep.mubr.msk.f32.mxu0 %vm230_vm2, %v7156_v45 }
0x1182   :  { %v7149_v53 = vrot.slane %v7120_v52, 4  ;;  %11867 = vmatmul.mubr.msk.f32.gmra.mrb[72].mxu0 %vm230_vm2, %v7148_v5 }
0x1184   :  { %v7150_v57 = vsel %vm1151_vm4, %v7147_v49, %v7149_v53  ;;  %v7152_v29 = vsel %vm1151_vm4, %v7149_v53, %v7151_v6  ;;  %v12559_v49 = vpack.c.bf16 %v10057_v63, %v10056_v32 }
0x1185   :  { %11869 = vmatprep.mubr.msk.f32.mxu0 %vm230_vm2, %v7150_v57 }
0x1186   :  { %11870 = vmatmul.mubr.msk.f32.gmra.mrb[74].mxu0 %vm230_vm2, %v7152_v29 }
0x1187   :  { %11880 = vmatprep.mubr.f32.mxu0 %v12970_v21 }
0x118a   :  { %11881 = vmatmul.mubr.msk.f32.vlgmr.msra.gmra.mrb[68].mxu0 %vm230_vm2, %v14862_v23 }
0x118b   :  { %12542 = vmatpush3.bf16.msra.mxu0 %v12539_v24  ;;  %11883 = vmatprep.mubr.msk.f32.mxu0 %vm230_vm2, %v14860_v40 }
0x118c   :  { %12544 = vmatprep.subr.bf16.mxu0 %v12543_v41 }
0x118e   :  { %11884 = vmatmul.mubr.msk.f32.gmra.mrb[70].mxu0 %vm230_vm2, %v7116_v33 }
0x118f   :  { %11886 = vmatprep.mubr.f32.mxu0 %v12970_v21  ;;  %12546 = vmatpush3.bf16.msra.mxu0 %v12543_v41 }
0x1192   :  { %11887 = vmatmul.mubr.msk.f32.gmra.mrb[72].mxu0 %vm230_vm2, %v7118_v2 }
0x1193   :  { %11889 = vmatprep.mubr.msk.f32.mxu0 %vm230_vm2, %v7119_v46 }
0x1196   :  { %11890 = vmatmul.mubr.msk.f32.gmra.mrb[74].mxu0 %vm230_vm2, %v7120_v52 }
0x1197   :  { %11900 = vmatprep.mubr.msk.f32.mxu0 %vm230_vm2, %v14862_v23  ;;  %v10092_v23 = vld [vmem:[%s15398_s3 + $0x740] sm:$0xff] }
0x1198   :  { %v12571_v18 = vpack.c.bf16 %v10093_v8, %v10092_v23 }
0x119a   :  { %11901 = vmatmul.mubr.msk.f32.vlgmr.msra.gmra.mrb[68].mxu0 %vm230_vm2, %v14860_v40  ;;  %v10054_v40 = vld [vmem:[%s15398_s3 + $0x6c0] sm:$0xff]  ;;  %12572 = vmatprep.subr.bf16.mxu0 %v12571_v18 }
0x119b   :  { %11903 = vmatprep.mubr.msk.f32.mxu0 %vm230_vm2, %v7116_v33  ;;  %v12555_v16 = vpack.c.bf16 %v10055_v14, %v10054_v40  ;;  %12574 = vmatpush3.bf16.msra.mxu0 %v12571_v18 }
0x119c   :  { %12576 = vmatprep.subr.bf16.mxu0 %v12575_v48 }
0x119d   :  { %12556 = vmatprep.subr.bf16.mxu1 %v12555_v16 }
0x119e   :  { %11904 = vmatmul.mubr.msk.f32.gmra.mrb[70].mxu0 %vm230_vm2, %v7117_v4 }
0x119f   :  { %11906 = vmatprep.mubr.msk.f32.mxu0 %vm230_vm2, %v7118_v2  ;;  %12578 = vmatpush3.bf16.msra.mxu0 %v12575_v48  ;;  %v10089_v48 = vld [vmem:[%s15398_s3 + $0x728] sm:$0xff] }
0x11a2   :  { %11907 = vmatmul.mubr.msk.f32.gmra.mrb[72].mxu0 %vm230_vm2, %v7119_v46 }
0x11a3   :  { %11909 = vmatprep.mubr.msk.f32.mxu0 %vm230_vm2, %v7120_v52 }
0x11a6   :  { %11910 = vmatmul.mubr.msk.f32.gmra.mrb[74].mxu0 %vm230_vm2, %v7121_v35  ;;  %v10073_v35 = vld [vmem:[%s15398_s3 + $0x708] sm:$0xff] }
0x11a7   :  { %11980 = vmatprep.mubr.f32.mxu0 %v12970_v21 }
0x126d   :  { %v11902_v25 = vpop.f32.mrb[68].mxu0 }
0x126e   :  { %v7527_v4 = vmul.f32 %v11902_v25, %v10051_v0  ;;  %v7471_v7 = vpop.f32.mrb[69].mxu0  ;;  %v10126_v25 = vld [vmem:[%s15398_s3 + $0x7c0] sm:$0xff] }
0x126f   :  { %v7526_v30 = vmul.f32 %v10051_v0, %v7471_v7  ;;  %v15068_v7 = vld [vmem:[%s15399_s4 + $0x12] ss:$0 sm:$0xff] }
0x1270   :  { %v7543_v50 = vadd.f32 %v10053_v27, %v7527_v4 }
0x1271   :  { %v7542_v33 = vadd.f32 %v10053_v27, %v7526_v30  ;;  %v11905_v43 = vpop.f32.mrb[70].mxu0 }
0x1272   :  { %v7551_v9 = vmax.f32 %v7543_v50, 0.0  ;;  %v7529_v26 = vmul.f32 %v11905_v43, %v10051_v0  ;;  %v7481_v36 = vpop.f32.mrb[71].mxu0  ;;  %v15073_v50 = vld [vmem:[%s15400_s5 + $0x12] ss:$0 sm:$0xff] }
0x1273   :  { %v7550_v15 = vmax.f32 %v7542_v33, 0.0  ;;  %v7528_v11 = vmul.f32 %v10051_v0, %v7481_v36  ;;  %v10090_v36 = vld [vmem:[%s15398_s3 + $0x730] sm:$0xff] }
0x1274   :  { %v7559_v51 = vadd.f32 %v7551_v9, %v14734_v19  ;;  %v7545_v42 = vadd.f32 %v10053_v27, %v7529_v26 }
0x1275   :  { %v7558_v46 = vadd.f32 %v7550_v15, %v14742_v3  ;;  %v7544_v20 = vadd.f32 %v10053_v27, %v7528_v11  ;;  %v11908_v37 = vpop.f32.mrb[72].mxu0  ;;  %v10072_v3 = vld [vmem:[%s15398_s3 + $0x700] sm:$0xff]  ;;  %v10091_v15 = vld [vmem:[%s15398_s3 + $0x738] sm:$0xff] }
0x1276   :  { %v7553_v24 = vmax.f32 %v7545_v42, 0.0  ;;  %v7531_v2 = vmul.f32 %v11908_v37, %v10051_v0  ;;  %v7491_v54 = vpop.f32.mrb[73].mxu0  ;;  %v14968_v31 = vmax.f32 %v7559_v51, 0.0  ;;  %v12563_v22 = vpack.c.bf16 %v10073_v35, %v10072_v3  ;;  %v10106_v37 = vld [vmem:[%s15398_s3 + $0x760] sm:$0xff] }
0x1277   :  { %v14966_v60 = vmax.f32 %v7558_v46, 0.0  ;;  %v7552_v55 = vmax.f32 %v7544_v20, 0.0  ;;  %v7530_v19 = vmul.f32 %v10051_v0, %v7491_v54  ;;  %v12583_v46 = vpack.c.bf16 %v10091_v15, %v10090_v36 }
0x1278   :  { %v14971_v56 = vadd.f32 %v7553_v24, %v14751_v12  ;;  %v7547_v39 = vadd.f32 %v10053_v27, %v7531_v2  ;;  %v10107_v24 = vld [vmem:[%s15398_s3 + $0x768] sm:$0xff] }
0x1279   :  { %v7560_v52 = vadd.f32 %v7552_v55, %v14753_v1  ;;  %v7546_v45 = vadd.f32 %v10053_v27, %v7530_v19  ;;  %v11911_v5 = vpop.f32.mrb[74].mxu0  ;;  %11921 = vmatmul.mubr.msk.f32.vlgmr.msra.gmra.mrb[76].mxu1 %vm230_vm2, %v14966_v60  ;;  %v12587_v3 = vpack.c.bf16 %v10107_v24, %v10106_v37 }
0x127a   :  { %v14984_v12 = vadd.f32 %v14971_v56, %v14749_v17  ;;  %v7555_v6 = vmax.f32 %v7547_v39, 0.0  ;;  %v7533_v53 = vmul.f32 %v11911_v5, %v10051_v0  ;;  %12558 = vmatpush3.bf16.msra.mxu1 %v12555_v16  ;;  %v7501_v57 = vpop.f32.mrb[75].mxu0  ;;  %11923 = vmatprep.mubr.msk.f32.mxu1 %vm230_vm2, %v14968_v31 }
0x127b   :  { %v14988_v29 = vmax.f32 %v7560_v52, 0.0  ;;  %v7554_v13 = vmax.f32 %v7546_v45, 0.0  ;;  %v7532_v1 = vmul.f32 %v10051_v0, %v7501_v57  ;;  %12560 = vmatprep.subr.bf16.mxu1 %v12559_v49  ;;  %v12579_v0 = vpack.c.bf16 %v10089_v48, %v10088_v44  ;;  %v10122_v48 = vld [vmem:[%s15398_s3 + $0x7a0] sm:$0xff] }
0x127c   :  { %v7563_v41 = vadd.f32 %v7555_v6, %v14769_v47  ;;  %v7549_v58 = vadd.f32 %v10053_v27, %v7533_v53 }
0x127d   :  { %v7562_v10 = vadd.f32 %v7554_v13, %v14772_v34  ;;  %v7548_v17 = vadd.f32 %v10053_v27, %v7532_v1  ;;  %11924 = vmatmul.mubr.msk.f32.gmra.mrb[78].mxu1 %vm230_vm2, %v14988_v29  ;;  %12580 = vmatprep.subr.bf16.mxu0 %v12579_v0  ;;  %v10127_v27 = vld [vmem:[%s15398_s3 + $0x7c8] sm:$0xff] }
0x127e   :  { %v7557_v61 = vmax.f32 %v7549_v58, 0.0  ;;  %11926 = vmatprep.mubr.f32.mxu1 %v12970_v21  ;;  %12562 = vmatpush3.bf16.msra.mxu1 %v12559_v49  ;;  %v14997_v16 = vmax.f32 %v7563_v41, 0.0  ;;  %v12595_v4 = vpack.c.bf16 %v10127_v27, %v10126_v25  ;;  %v10109_v41 = vld [vmem:[%s15398_s3 + $0x778] sm:$0xff]  ;;  %v10150_v27 = vld [vmem:[%s15398_s3 + $0x820] sm:$0xff] }
0x127f   :  { %v14995_v40 = vmax.f32 %v7562_v10, 0.0  ;;  %v7556_v14 = vmax.f32 %v7548_v17, 0.0  ;;  %12564 = vmatprep.subr.bf16.mxu1 %v12563_v22 }
0x1280   :  { %v15000_v23 = vadd.f32 %v7557_v61, %v14785_v38  ;;  %v10075_v38 = vld [vmem:[%s15398_s3 + $0x718] sm:$0xff] }
0x1281   :  { %v7564_v47 = vadd.f32 %v7556_v14, %v14787_v62  ;;  %11927 = vmatmul.mubr.msk.f32.gmra.mrb[80].mxu1 %vm230_vm2, %v14995_v40  ;;  %v7571_v62 = vmax.f32 %v14971_v56, 0.0 }
0x1282   :  { %v15007_v34 = vadd.f32 %v15000_v23, %v14783_v28  ;;  %11929 = vmatprep.mubr.msk.f32.mxu1 %vm230_vm2, %v14997_v16  ;;  %v12567_v28 = vpack.c.bf16 %v10075_v38, %v10074_v59  ;;  %v7575_v18 = vmax.f32 %v15000_v23, 0.0  ;;  %v10128_v38 = vld [vmem:[%s15398_s3 + $0x7d0] sm:$0xff] }
0x1283   :  { %v15011_v8 = vmax.f32 %v7564_v47, 0.0  ;;  %v10152_v23 = vld [vmem:[%s15398_s3 + $0x830] sm:$0xff] }
0x1285   :  { %11930 = vmatmul.mubr.msk.f32.gmra.mrb[82].mxu1 %vm230_vm2, %v15011_v8 }
0x1286   :  { %11940 = vmatprep.mubr.f32.mxu1 %v12970_v21 }
0x1289   :  { %11941 = vmatmul.mubr.f32.vlgmr.msra.gmra.mrb[76].mxu1 %v12970_v21 }
0x128a   :  { %12566 = vmatpush3.bf16.msra.mxu1 %v12563_v22  ;;  %11943 = vmatprep.mubr.msk.f32.mxu1 %vm230_vm2, %v14966_v60  ;;  %v10108_v22 = vld [vmem:[%s15398_s3 + $0x770] sm:$0xff] }
0x128b   :  { %12568 = vmatprep.subr.bf16.mxu1 %v12567_v28  ;;  %v12591_v58 = vpack.c.bf16 %v10109_v41, %v10108_v22 }
0x128d   :  { %11944 = vmatmul.mubr.msk.f32.gmra.mrb[78].mxu1 %vm230_vm2, %v14968_v31 }
0x128e   :  { %11946 = vmatprep.mubr.f32.mxu1 %v12970_v21  ;;  %12570 = vmatpush3.bf16.msra.mxu1 %v12567_v28  ;;  %v10129_v28 = vld [vmem:[%s15398_s3 + $0x7d8] sm:$0xff] }
0x128f   :  { %12596 = vmatprep.subr.bf16.mxu1 %v12595_v4  ;;  %v12599_v44 = vpack.c.bf16 %v10129_v28, %v10128_v38 }
0x1291   :  { %11947 = vmatmul.mubr.f32.gmra.mrb[80].mxu1 %v12970_v21 }
0x1292   :  { %11949 = vmatprep.mubr.msk.f32.mxu1 %vm230_vm2, %v14995_v40 }
0x1295   :  { %11950 = vmatmul.mubr.msk.f32.gmra.mrb[82].mxu1 %vm230_vm2, %v14997_v16 }
0x1296   :  { %11960 = vmatprep.mubr.msk.f32.mxu1 %vm230_vm2, %v14966_v60 }
0x1299   :  { %11961 = vmatmul.mubr.msk.f32.vlgmr.msra.gmra.mrb[76].mxu1 %vm230_vm2, %v14968_v31 }
0x129a   :  { %11963 = vmatprep.mubr.msk.f32.mxu1 %vm230_vm2, %v14988_v29  ;;  %12598 = vmatpush3.bf16.msra.mxu1 %v12595_v4  ;;  %v10151_v4 = vld [vmem:[%s15398_s3 + $0x828] sm:$0xff] }
0x129b   :  { %12600 = vmatprep.subr.bf16.mxu1 %v12599_v44 }
0x129d   :  { %11964 = vmatmul.mubr.msk.f32.gmra.mrb[78].mxu1 %vm230_vm2, %v7571_v62 }
0x129e   :  { %11966 = vmatprep.mubr.msk.f32.mxu1 %vm230_vm2, %v14995_v40  ;;  %12602 = vmatpush3.bf16.msra.mxu1 %v12599_v44 }
0x12a1   :  { %11967 = vmatmul.mubr.msk.f32.gmra.mrb[80].mxu1 %vm230_vm2, %v14997_v16 }
0x12a2   :  { %11969 = vmatprep.mubr.msk.f32.mxu1 %vm230_vm2, %v15011_v8 }
0x12a5   :  { %11970 = vmatmul.mubr.msk.f32.gmra.mrb[82].mxu1 %vm230_vm2, %v7575_v18 }
0x136c   :  { %v11962_v30 = vpop.f32.mrb[76].mxu1 }
0x136d   :  { %v7945_v33 = vmul.f32 %v11962_v30, %v15068_v7  ;;  %v7889_v43 = vpop.f32.mrb[77].mxu1  ;;  %v10119_v30 = vld [vmem:[%s15399_s4 + $0x13] ss:$0 sm:$0xff] }
0x136e   :  { %v7944_v9 = vmul.f32 %v15068_v7, %v7889_v43 }
0x136f   :  { %v7961_v26 = vadd.f32 %v15073_v50, %v7945_v33  ;;  %v10121_v33 = vld [vmem:[%s15400_s5 + $0x13] ss:$0 sm:$0xff] }
0x1370   :  { %v7960_v11 = vadd.f32 %v15073_v50, %v7944_v9  ;;  %v11965_v51 = vpop.f32.mrb[78].mxu1 }
0x1371   :  { %v7899_v42 = vpop.f32.mrb[79].mxu1  ;;  %v7969_v20 = vmax.f32 %v7961_v26, 0.0  ;;  %v7947_v10 = vmul.f32 %v11965_v51, %v15068_v7 }
0x1372   :  { %v7968_v32 = vmax.f32 %v7960_v11, 0.0  ;;  %v7946_v63 = vmul.f32 %v15068_v7, %v7899_v42 }
0x1373   :  { %v7963_v17 = vadd.f32 %v15073_v50, %v7947_v10 }
0x1374   :  { %v7962_v2 = vadd.f32 %v15073_v50, %v7946_v63  ;;  %v11968_v54 = vpop.f32.mrb[80].mxu1  ;;  %11981 = vmatmul.mubr.msk.f32.vlgmr.msra.gmra.mrb[76].mxu0 %vm230_vm2, %v7968_v32 }
0x1375   :  { %v7949_v55 = vmul.f32 %v11968_v54, %v15068_v7  ;;  %12582 = vmatpush3.bf16.msra.mxu0 %v12579_v0  ;;  %v7909_v19 = vpop.f32.mrb[81].mxu1  ;;  %11983 = vmatprep.mubr.msk.f32.mxu0 %vm230_vm2, %v7969_v20  ;;  %v7971_v61 = vmax.f32 %v7963_v17, 0.0  ;;  %v10123_v0 = vld [vmem:[%s15398_s3 + $0x7a8] sm:$0xff] }
0x1376   :  { %v7970_v49 = vmax.f32 %v7962_v2, 0.0  ;;  %v7948_v39 = vmul.f32 %v15068_v7, %v7909_v19  ;;  %12584 = vmatprep.subr.bf16.mxu0 %v12583_v46  ;;  %v12603_v25 = vpack.c.bf16 %v10123_v0, %v10122_v48  ;;  %v10125_v19 = vld [vmem:[%s15398_s3 + $0x7b8] sm:$0xff] }
0x1377   :  { %v7965_v35 = vadd.f32 %v15073_v50, %v7949_v55  ;;  %v10124_v55 = vld [vmem:[%s15398_s3 + $0x7b0] sm:$0xff] }
0x1378   :  { %v7964_v52 = vadd.f32 %v15073_v50, %v7948_v39  ;;  %v11971_v45 = vpop.f32.mrb[82].mxu1  ;;  %11984 = vmatmul.mubr.msk.f32.gmra.mrb[78].mxu0 %vm230_vm2, %v7970_v49  ;;  %12604 = vmatprep.subr.bf16.mxu1 %v12603_v25 }
0x1379   :  { %v7919_v5 = vpop.f32.mrb[83].mxu1  ;;  %11986 = vmatprep.mubr.f32.mxu0 %v12970_v21  ;;  %12586 = vmatpush3.bf16.msra.mxu0 %v12583_v46  ;;  %v7973_v57 = vmax.f32 %v7965_v35, 0.0  ;;  %v7951_v14 = vmul.f32 %v11971_v45, %v15068_v7 }
0x137a   :  { %v7972_v6 = vmax.f32 %v7964_v52, 0.0  ;;  %v7950_v53 = vmul.f32 %v15068_v7, %v7919_v5  ;;  %12588 = vmatprep.subr.bf16.mxu0 %v12587_v3  ;;  %v12611_v7 = vpack.c.bf16 %v10151_v4, %v10150_v27  ;;  %v10170_v4 = vld [vmem:[%s15398_s3 + $0x880] sm:$0xff] }
0x137b   :  { %v7967_v47 = vadd.f32 %v15073_v50, %v7951_v14 }
0x137c   :  { %v7966_v13 = vadd.f32 %v15073_v50, %v7950_v53  ;;  %11987 = vmatmul.mubr.msk.f32.gmra.mrb[80].mxu0 %vm230_vm2, %v7972_v6 }
0x137d   :  { %11989 = vmatprep.mubr.msk.f32.mxu0 %vm230_vm2, %v7973_v57  ;;  %v7975_v59 = vmax.f32 %v7967_v47, 0.0 }
0x137e   :  { %v7974_v1 = vmax.f32 %v7966_v13, 0.0 }
0x1380   :  { %11990 = vmatmul.mubr.msk.f32.gmra.mrb[82].mxu0 %vm230_vm2, %v7974_v1 }
0x1381   :  { %12000 = vmatprep.mubr.f32.mxu0 %v12970_v21 }
0x1384   :  { %12001 = vmatmul.mubr.f32.vlgmr.msra.gmra.mrb[76].mxu0 %v12970_v21 }
0x1385   :  { %12590 = vmatpush3.bf16.msra.mxu0 %v12587_v3  ;;  %12003 = vmatprep.mubr.msk.f32.mxu0 %vm230_vm2, %v7968_v32 }
0x1386   :  { %12592 = vmatprep.subr.bf16.mxu0 %v12591_v58 }
0x1388   :  { %12004 = vmatmul.mubr.msk.f32.gmra.mrb[78].mxu0 %vm230_vm2, %v7969_v20 }
0x1389   :  { %12006 = vmatprep.mubr.f32.mxu0 %v12970_v21  ;;  %12594 = vmatpush3.bf16.msra.mxu0 %v12591_v58 }
0x138a   :  { %12612 = vmatprep.subr.bf16.mxu0 %v12611_v7 }
0x138c   :  { %12007 = vmatmul.mubr.f32.gmra.mrb[80].mxu0 %v12970_v21 }
0x138d   :  { %12009 = vmatprep.mubr.msk.f32.mxu0 %vm230_vm2, %v7972_v6 }
0x1390   :  { %12010 = vmatmul.mubr.msk.f32.gmra.mrb[82].mxu0 %vm230_vm2, %v7973_v57 }
0x1391   :  { %12020 = vmatprep.mubr.msk.f32.mxu0 %vm230_vm2, %v7968_v32 }
0x1394   :  { %12021 = vmatmul.mubr.msk.f32.vlgmr.msra.gmra.mrb[76].mxu0 %vm230_vm2, %v7969_v20 }
0x1395   :  { %12023 = vmatprep.mubr.msk.f32.mxu0 %vm230_vm2, %v7970_v49  ;;  %12614 = vmatpush3.bf16.msra.mxu0 %v12611_v7  ;;  %v10171_v7 = vld [vmem:[%s15398_s3 + $0x888] sm:$0xff] }
0x1398   :  { %12024 = vmatmul.mubr.msk.f32.gmra.mrb[78].mxu0 %vm230_vm2, %v7971_v61 }
0x1399   :  { %12026 = vmatprep.mubr.msk.f32.mxu0 %vm230_vm2, %v7972_v6  ;;  %v12607_v6 = vpack.c.bf16 %v10125_v19, %v10124_v55 }
0x139c   :  { %12027 = vmatmul.mubr.msk.f32.gmra.mrb[80].mxu0 %vm230_vm2, %v7973_v57 }
0x139d   :  { %12029 = vmatprep.mubr.msk.f32.mxu0 %vm230_vm2, %v7974_v1 }
0x13a0   :  { %12030 = vmatmul.mubr.msk.f32.gmra.mrb[82].mxu0 %vm230_vm2, %v7975_v59 }
0x1467   :  { %v12022_v50 = vpop.f32.mrb[76].mxu0 }
0x1468   :  { %v8345_v43 = vmul.f32 %v12022_v50, %v10119_v30  ;;  %v8289_v9 = vpop.f32.mrb[77].mxu0  ;;  %v10143_v50 = vld [vmem:[%s15399_s4 + $0x14] ss:$0 sm:$0xff] }
0x1469   :  { %v8344_v26 = vmul.f32 %v10119_v30, %v8289_v9 }
0x146a   :  { %v8361_v36 = vadd.f32 %v10121_v33, %v8345_v43  ;;  %v10145_v43 = vld [vmem:[%s15400_s5 + $0x14] ss:$0 sm:$0xff] }
0x146b   :  { %v8360_v15 = vadd.f32 %v10121_v33, %v8344_v26  ;;  %v12025_v11 = vpop.f32.mrb[78].mxu0 }
0x146c   :  { %v8369_v51 = vmax.f32 %v8361_v36, 0.0  ;;  %v8347_v42 = vmul.f32 %v12025_v11, %v10119_v30  ;;  %v8299_v32 = vpop.f32.mrb[79].mxu0 }
0x146d   :  { %v8368_v63 = vmax.f32 %v8360_v15, 0.0  ;;  %v8346_v46 = vmul.f32 %v10119_v30, %v8299_v32  ;;  %v10149_v32 = vld [vmem:[%s15398_s3 + $0x818] sm:$0xff] }
0x146e   :  { %v8377_v20 = vadd.f32 %v8369_v51, %v14968_v31  ;;  %v8363_v37 = vadd.f32 %v10121_v33, %v8347_v42  ;;  %v10148_v42 = vld [vmem:[%s15398_s3 + $0x810] sm:$0xff] }
0x146f   :  { %v8376_v24 = vadd.f32 %v8368_v63, %v14966_v60  ;;  %v8362_v2 = vadd.f32 %v10121_v33, %v8346_v46  ;;  %v12028_v54 = vpop.f32.mrb[80].mxu0 }
0x1470   :  { %v8371_v49 = vmax.f32 %v8363_v37, 0.0  ;;  %v8349_v39 = vmul.f32 %v12028_v54, %v10119_v30  ;;  %v8309_v3 = vpop.f32.mrb[81].mxu0  ;;  %v15166_v45 = vmax.f32 %v8377_v20, 0.0  ;;  %v12623_v54 = vpack.c.bf16 %v10149_v32, %v10148_v42 }
0x1471   :  { %v15164_v35 = vmax.f32 %v8376_v24, 0.0  ;;  %v8370_v52 = vmax.f32 %v8362_v2, 0.0  ;;  %v8348_v31 = vmul.f32 %v10119_v30, %v8309_v3 }
0x1472   :  { %v15170_v60 = vadd.f32 %v8371_v49, %v7571_v62  ;;  %v8365_v5 = vadd.f32 %v10121_v33, %v8349_v39 }
0x1473   :  { %v15173_v53 = vadd.f32 %v8370_v52, %v14988_v29  ;;  %v8364_v57 = vadd.f32 %v10121_v33, %v8348_v31  ;;  %v12031_v13 = vpop.f32.mrb[82].mxu0  ;;  %12040 = vmatprep.mubr.msk.f32.mxu1 %vm230_vm2, %v15164_v35 }
0x1474   :  { %v15179_v1 = vadd.f32 %v15170_v60, %v14984_v12  ;;  %v8373_v22 = vmax.f32 %v8365_v5, 0.0  ;;  %v8351_v41 = vmul.f32 %v12031_v13, %v10119_v30  ;;  %v8319_v58 = vpop.f32.mrb[83].mxu0  ;;  %12041 = vmatmul.mubr.msk.f32.vlgmr.msra.gmra.mrb[84].mxu1 %vm230_vm2, %v15166_v45  ;;  %v8389_v10 = vmax.f32 %v15170_v60, 0.0 }
0x1475   :  { %v8388_v56 = vmax.f32 %v15173_v53, 0.0  ;;  %v8372_v62 = vmax.f32 %v8364_v57, 0.0  ;;  %v8350_v29 = vmul.f32 %v10119_v30, %v8319_v58  ;;  %12606 = vmatpush3.bf16.msra.mxu1 %v12603_v25  ;;  %v10147_v25 = vld [vmem:[%s15398_s3 + $0x808] sm:$0xff]  ;;  %v12627_v30 = vpack.c.bf16 %v10171_v7, %v10170_v4 }
0x1476   :  { %v8381_v17 = vadd.f32 %v8373_v22, %v14997_v16  ;;  %v8367_v61 = vadd.f32 %v10121_v33, %v8351_v41  ;;  %12608 = vmatprep.subr.bf16.mxu1 %v12607_v6 }
0x1477   :  { %v8380_v12 = vadd.f32 %v8372_v62, %v14995_v40  ;;  %v8366_v14 = vadd.f32 %v10121_v33, %v8350_v29  ;;  %12043 = vmatprep.mubr.msk.f32.mxu1 %vm230_vm2, %v8388_v56 }
0x1478   :  { %v8375_v47 = vmax.f32 %v8367_v61, 0.0  ;;  %12044 = vmatmul.mubr.msk.f32.gmra.mrb[86].mxu1 %vm230_vm2, %v8389_v10  ;;  %v15195_v28 = vmax.f32 %v8381_v17, 0.0 }
0x1479   :  { %v15193_v59 = vmax.f32 %v8380_v12, 0.0  ;;  %v8374_v38 = vmax.f32 %v8366_v14, 0.0  ;;  %12610 = vmatpush3.bf16.msra.mxu1 %v12607_v6  ;;  %v10172_v14 = vld [vmem:[%s15398_s3 + $0x890] sm:$0xff] }
0x147a   :  { %v15199_v16 = vadd.f32 %v8375_v47, %v7575_v18  ;;  %v10146_v18 = vld [vmem:[%s15398_s3 + $0x800] sm:$0xff]  ;;  %12628 = vmatprep.subr.bf16.mxu1 %v12627_v30  ;;  %v10173_v47 = vld [vmem:[%s15398_s3 + $0x898] sm:$0xff] }
0x147b   :  { %v15202_v40 = vadd.f32 %v8374_v38, %v15011_v8  ;;  %12046 = vmatprep.mubr.msk.f32.mxu1 %vm230_vm2, %v15193_v59  ;;  %v12619_v27 = vpack.c.bf16 %v10147_v25, %v10146_v18  ;;  %v12631_v38 = vpack.c.bf16 %v10173_v47, %v10172_v14  ;;  %v10167_v18 = vld [vmem:[%s15399_s4 + $0x15] ss:$0 sm:$0xff]  ;;  %v10185_v14 = vld [vmem:[%s15400_s5 + $0x16] ss:$0 sm:$0xff] }
0x147c   :  { %v15208_v44 = vadd.f32 %v15199_v16, %v15007_v34  ;;  %12047 = vmatmul.mubr.msk.f32.gmra.mrb[88].mxu1 %vm230_vm2, %v15195_v28  ;;  %v8393_v0 = vmax.f32 %v15199_v16, 0.0  ;;  %v10153_v34 = vld [vmem:[%s15398_s3 + $0x838] sm:$0xff]  ;;  %v10188_v16 = vld [vmem:[%s15398_s3 + $0x8f0] sm:$0xff] }
0x147d   :  { %v8392_v48 = vmax.f32 %v15202_v40, 0.0  ;;  %v12615_v8 = vpack.c.bf16 %v10153_v34, %v10152_v23  ;;  %v10186_v23 = vld [vmem:[%s15398_s3 + $0x8e0] sm:$0xff]  ;;  %v10187_v34 = vld [vmem:[%s15398_s3 + $0x8e8] sm:$0xff]  ;;  %v10189_v40 = vld [vmem:[%s15398_s3 + $0x8f8] sm:$0xff] }
0x147f   :  { %12049 = vmatprep.mubr.msk.f32.mxu1 %vm230_vm2, %v8392_v48  ;;  %12616 = vmatprep.subr.bf16.mxu0 %v12615_v8 }
0x1480   :  { %12050 = vmatmul.mubr.msk.f32.gmra.mrb[90].mxu1 %vm230_vm2, %v8393_v0  ;;  %12618 = vmatpush3.bf16.msra.mxu0 %v12615_v8  ;;  %v12635_v8 = vpack.c.bf16 %v10187_v34, %v10186_v23 }
0x1481   :  { %12060 = vmatprep.mubr.f32.mxu1 %v12970_v21  ;;  %12620 = vmatprep.subr.bf16.mxu0 %v12619_v27 }
0x1484   :  { %12061 = vmatmul.mubr.f32.vlgmr.msra.gmra.mrb[84].mxu1 %v12970_v21 }
0x1485   :  { %12063 = vmatprep.mubr.msk.f32.mxu1 %vm230_vm2, %v15164_v35  ;;  %12630 = vmatpush3.bf16.msra.mxu1 %v12627_v30 }
0x1486   :  { %12632 = vmatprep.subr.bf16.mxu1 %v12631_v38 }
0x1488   :  { %12064 = vmatmul.mubr.msk.f32.gmra.mrb[86].mxu1 %vm230_vm2, %v15166_v45 }
0x1489   :  { %12066 = vmatprep.mubr.f32.mxu1 %v12970_v21  ;;  %12634 = vmatpush3.bf16.msra.mxu1 %v12631_v38 }
0x148c   :  { %12067 = vmatmul.mubr.f32.gmra.mrb[88].mxu1 %v12970_v21 }
0x148d   :  { %12069 = vmatprep.mubr.msk.f32.mxu1 %vm230_vm2, %v15193_v59 }
0x1490   :  { %12070 = vmatmul.mubr.msk.f32.gmra.mrb[90].mxu1 %vm230_vm2, %v15195_v28 }
0x1557   :  { %v12062_v33 = vpop.f32.mrb[84].mxu1 }
0x1558   :  { %v8646_v9 = vmul.f32 %v12062_v33, %v10143_v50  ;;  %v8598_v26 = vpop.f32.mrb[85].mxu1 }
0x1559   :  { %v8645_v36 = vmul.f32 %v10143_v50, %v8598_v26 }
0x155a   :  { %v8662_v15 = vadd.f32 %v10145_v43, %v8646_v9 }
0x155b   :  { %v8661_v11 = vadd.f32 %v10145_v43, %v8645_v36  ;;  %v12065_v51 = vpop.f32.mrb[86].mxu1 }
0x155c   :  { %v8648_v63 = vmul.f32 %v12065_v51, %v10143_v50  ;;  %v8608_v46 = vpop.f32.mrb[87].mxu1  ;;  %v8670_v24 = vmax.f32 %v8662_v15, 0.0 }
0x155d   :  { %v8669_v20 = vmax.f32 %v8661_v11, 0.0  ;;  %v8647_v37 = vmul.f32 %v10143_v50, %v8608_v46 }
0x155e   :  { %v8664_v2 = vadd.f32 %v10145_v43, %v8648_v63 }
0x155f   :  { %v8663_v55 = vadd.f32 %v10145_v43, %v8647_v37  ;;  %v12068_v19 = vpop.f32.mrb[88].mxu1  ;;  %12080 = vmatprep.mubr.msk.f32.mxu0 %vm230_vm2, %v8669_v20 }
0x1560   :  { %v8650_v49 = vmul.f32 %v12068_v19, %v10143_v50  ;;  %v8618_v39 = vpop.f32.mrb[89].mxu1  ;;  %12081 = vmatmul.mubr.msk.f32.vlgmr.msra.gmra.mrb[84].mxu0 %vm230_vm2, %v8670_v24  ;;  %v8672_v31 = vmax.f32 %v8664_v2, 0.0 }
0x1561   :  { %v8671_v3 = vmax.f32 %v8663_v55, 0.0  ;;  %v8649_v52 = vmul.f32 %v10143_v50, %v8618_v39  ;;  %12622 = vmatpush3.bf16.msra.mxu0 %v12619_v27  ;;  %v10169_v27 = vld [vmem:[%s15400_s5 + $0x15] ss:$0 sm:$0xff] }
0x1562   :  { %v8666_v5 = vadd.f32 %v10145_v43, %v8650_v49  ;;  %12624 = vmatprep.subr.bf16.mxu0 %v12623_v54 }
0x1563   :  { %v8665_v6 = vadd.f32 %v10145_v43, %v8649_v52  ;;  %v12071_v57 = vpop.f32.mrb[90].mxu1  ;;  %12083 = vmatprep.mubr.msk.f32.mxu0 %vm230_vm2, %v8671_v3 }
0x1564   :  { %v8652_v13 = vmul.f32 %v12071_v57, %v10143_v50  ;;  %v8628_v22 = vpop.f32.mrb[91].mxu1  ;;  %12084 = vmatmul.mubr.msk.f32.gmra.mrb[86].mxu0 %vm230_vm2, %v8672_v31  ;;  %v8674_v62 = vmax.f32 %v8666_v5, 0.0 }
0x1565   :  { %v8673_v41 = vmax.f32 %v8665_v6, 0.0  ;;  %v8651_v58 = vmul.f32 %v10143_v50, %v8628_v22  ;;  %12626 = vmatpush3.bf16.msra.mxu0 %v12623_v54 }
0x1566   :  { %v8668_v29 = vadd.f32 %v10145_v43, %v8652_v13  ;;  %12636 = vmatprep.subr.bf16.mxu0 %v12635_v8 }
0x1567   :  { %v8667_v17 = vadd.f32 %v10145_v43, %v8651_v58  ;;  %12086 = vmatprep.mubr.msk.f32.mxu0 %vm230_vm2, %v8673_v41 }
0x1568   :  { %12087 = vmatmul.mubr.msk.f32.gmra.mrb[88].mxu0 %vm230_vm2, %v8674_v62  ;;  %v8676_v12 = vmax.f32 %v8668_v29, 0.0 }
0x1569   :  { %v8675_v61 = vmax.f32 %v8667_v17, 0.0 }
0x156b   :  { %12089 = vmatprep.mubr.msk.f32.mxu0 %vm230_vm2, %v8675_v61 }
0x156c   :  { %12090 = vmatmul.mubr.msk.f32.gmra.mrb[90].mxu0 %vm230_vm2, %v8676_v12 }
0x156d   :  { %12100 = vmatprep.mubr.f32.mxu0 %v12970_v21 }
0x1570   :  { %12101 = vmatmul.mubr.f32.vlgmr.msra.gmra.mrb[84].mxu0 %v12970_v21 }
0x1571   :  { %12103 = vmatprep.mubr.msk.f32.mxu0 %vm230_vm2, %v8669_v20  ;;  %12638 = vmatpush3.bf16.msra.mxu0 %v12635_v8 }
0x1574   :  { %12104 = vmatmul.mubr.msk.f32.gmra.mrb[86].mxu0 %vm230_vm2, %v8670_v24 }
0x1575   :  { %12106 = vmatprep.mubr.f32.mxu0 %v12970_v21 }
0x1578   :  { %12107 = vmatmul.mubr.f32.gmra.mrb[88].mxu0 %v12970_v21 }
0x1579   :  { %12109 = vmatprep.mubr.msk.f32.mxu0 %vm230_vm2, %v8673_v41 }
0x157c   :  { %12110 = vmatmul.mubr.msk.f32.gmra.mrb[90].mxu0 %vm230_vm2, %v8674_v62 }
0x1643   :  { %v12102_v25 = vpop.f32.mrb[84].mxu0 }
0x1644   :  { %v8929_v4 = vmul.f32 %v12102_v25, %v10167_v18  ;;  %v8881_v7 = vpop.f32.mrb[85].mxu0 }
0x1645   :  { %v8928_v30 = vmul.f32 %v10167_v18, %v8881_v7 }
0x1646   :  { %v8945_v50 = vadd.f32 %v10169_v27, %v8929_v4 }
0x1647   :  { %v8944_v33 = vadd.f32 %v10169_v27, %v8928_v30  ;;  %v12105_v43 = vpop.f32.mrb[86].mxu0 }
0x1648   :  { %v8953_v9 = vmax.f32 %v8945_v50, 0.0  ;;  %v8931_v26 = vmul.f32 %v12105_v43, %v10167_v18  ;;  %v8891_v36 = vpop.f32.mrb[87].mxu0 }
0x1649   :  { %v8952_v15 = vmax.f32 %v8944_v33, 0.0  ;;  %v8930_v11 = vmul.f32 %v10167_v18, %v8891_v36 }
0x164a   :  { %v8961_v51 = vadd.f32 %v8953_v9, %v15166_v45  ;;  %v8947_v42 = vadd.f32 %v10169_v27, %v8931_v26 }
0x164b   :  { %v8960_v32 = vadd.f32 %v8952_v15, %v15164_v35  ;;  %v8946_v63 = vadd.f32 %v10169_v27, %v8930_v11  ;;  %v12108_v46 = vpop.f32.mrb[88].mxu0 }
0x164c   :  { %v8955_v20 = vmax.f32 %v8947_v42, 0.0  ;;  %v8933_v37 = vmul.f32 %v12108_v46, %v10167_v18  ;;  %v8901_v24 = vpop.f32.mrb[89].mxu0  ;;  %v8971_v19 = vmax.f32 %v8961_v51, 0.0 }
0x164d   :  { %v8970_v2 = vmax.f32 %v8960_v32, 0.0  ;;  %v8954_v54 = vmax.f32 %v8946_v63, 0.0  ;;  %v8932_v55 = vmul.f32 %v10167_v18, %v8901_v24 }
0x164e   :  { %v15300_v49 = vadd.f32 %v8955_v20, %v8389_v10  ;;  %v8949_v39 = vadd.f32 %v10169_v27, %v8933_v37 }
0x164f   :  { %v8962_v45 = vadd.f32 %v8954_v54, %v8388_v56  ;;  %v8948_v3 = vadd.f32 %v10169_v27, %v8932_v55  ;;  %v12111_v52 = vpop.f32.mrb[90].mxu0  ;;  %12120 = vmatprep.mubr.msk.f32.mxu1 %vm230_vm2, %v8970_v2 }
0x1650   :  { %v15307_v35 = vadd.f32 %v15300_v49, %v15179_v1  ;;  %v8957_v31 = vmax.f32 %v8949_v39, 0.0  ;;  %v8935_v5 = vmul.f32 %v12111_v52, %v10167_v18  ;;  %v8911_v6 = vpop.f32.mrb[91].mxu0  ;;  %12121 = vmatmul.mubr.msk.f32.vlgmr.msra.gmra.mrb[92].mxu1 %vm230_vm2, %v8971_v19  ;;  %v8973_v13 = vmax.f32 %v15300_v49, 0.0  ;;  %v9306_v39 = vld [vmem:[%s15401_s6] sm:$0xff] }
0x1651   :  { %v8972_v60 = vmax.f32 %v8962_v45, 0.0  ;;  %v8956_v10 = vmax.f32 %v8948_v3, 0.0  ;;  %v8934_v57 = vmul.f32 %v10167_v18, %v8911_v6  ;;  %v9307_v45 = vld [vmem:[%s15401_s6 + $0x8] sm:$0xff]  ;;  %v12971_v3 = vmov 0.0|0.0  }
0x1652   :  { %v8965_v53 = vadd.f32 %v8957_v31, %v15195_v28  ;;  %v8951_v56 = vadd.f32 %v10169_v27, %v8935_v5  ;;  %12643 = vmatprep.subr.bf16.mxu1 %v12971_v3  ;;  %v12644_v52 = vpack.c.bf16 %v9307_v45, %v9306_v39  ;;  %v9308_v31 = vld [vmem:[%s15401_s6 + $0x10] sm:$0xff]  ;;  %v9309_v5 = vld [vmem:[%s15401_s6 + $0x18] sm:$0xff]  ;;  %v12973_v49 = vmov 1966171168   ;;  %s12974_s6 = smov [#allocation2]  }
0x1653   :  { %v8964_v22 = vadd.f32 %v8956_v10, %v15193_v59  ;;  %v8950_v41 = vadd.f32 %v10169_v27, %v8934_v57  ;;  %12123 = vmatprep.mubr.msk.f32.mxu1 %vm230_vm2, %v8972_v60  ;;  %v12647_v6 = vpack.c.bf16 %v9309_v5, %v9308_v31  ;;  %v10199_v57 = vld [vmem:[%s15399_s4 + $0x17] ss:$0 sm:$0xff]  ;;  %s9428_s0 = sshll.u32 %s12974_s6, 4  ;;  %s9429_s0 = int_to_ptr.vmem [resolvable:$true] %s9428_s0 }
0x1654   :  { %v8959_v1 = vmax.f32 %v8951_v56, 0.0  ;;  %12124 = vmatmul.mubr.msk.f32.gmra.mrb[94].mxu1 %vm230_vm2, %v8973_v13  ;;  %v8975_v29 = vmax.f32 %v8965_v53, 0.0  ;;  %v10201_v56 = vld [vmem:[%s15400_s5 + $0x17] ss:$0 sm:$0xff]  ;;  %s12946_s10 = scalar_lea.vmem %s9429_s0, 32  ;;  %p12951_p1 = scmp.lt.s32.totalorder %s9429_s0, %s9429_s0 }
0x1655   :  { %v8974_v58 = vmax.f32 %v8964_v22, 0.0  ;;  %v8958_v62 = vmax.f32 %v8950_v41, 0.0  ;;  %12645 = vmatpush3.bf16.msra.mxu1 %v12644_v52  ;;  %p12947_p0 = scmp.ne.s32.totalorder %s9429_s0, %s12946_s10  ;;  %p12952_p2 = scmp.lt.s32.totalorder %s12946_s10, %s12946_s10 }
0x1656   :  { %v15319_v17 = vadd.f32 %v8959_v1, %v8393_v0  ;;  %12646 = vmatprep.subr.bf16.mxu1 %v12971_v3 }
0x1657   :  { %v8966_v28 = vadd.f32 %v8958_v62, %v8392_v48  ;;  %12126 = vmatprep.mubr.msk.f32.mxu1 %vm230_vm2, %v8974_v58  ;;  %v10183_v48 = vld [vmem:[%s15399_s4 + $0x16] ss:$0 sm:$0xff]  ;;  %p12953_p3 = por %p12952_p2, %p12951_p1 }
0x1658   :  { %v15326_v59 = vadd.f32 %v15319_v17, %v15208_v44  ;;  %12127 = vmatmul.mubr.msk.f32.gmra.mrb[96].mxu1 %vm230_vm2, %v8975_v29  ;;  %v8977_v12 = vmax.f32 %v15319_v17, 0.0  ;;  %v12639_v44 = vpack.c.bf16 %v10189_v40, %v10188_v16 }
0x1659   :  { %v8976_v61 = vmax.f32 %v8966_v28, 0.0  ;;  %12648 = vmatpush3.bf16.msra.mxu1 %v12647_v6  ;;  %p12954_p4 = pnand %p12953_p3, %p12947_p0 }
0x165a   :  { %12640 = vmatprep.subr.bf16.mxu0 %v12639_v44 }
0x165b   :  { %12129 = vmatprep.mubr.msk.f32.mxu1 %vm230_vm2, %v8976_v61  ;;  %12642 = vmatpush3.bf16.msra.mxu0 %v12639_v44 }
0x165c   :  { %12130 = vmatmul.mubr.msk.f32.gmra.mrb[98].mxu1 %vm230_vm2, %v8977_v12 }
0x165d   :  { %12160 = vmatprep.mubr.msk.f32.mxu1 %vm12972_vm5, %v12970_v21 }
0x1723   :  { %v12122_v0 = vpop.f32.mrb[92].mxu1 }
0x1724   :  { %v9121_v47 = vmul.f32 %v12122_v0, %v10183_v48  ;;  %v9073_v38 = vpop.f32.mrb[93].mxu1 }
0x1725   :  { %v9120_v23 = vmul.f32 %v10183_v48, %v9073_v38 }
0x1726   :  { %v9137_v34 = vadd.f32 %v10185_v14, %v9121_v47 }
0x1727   :  { %v9136_v8 = vadd.f32 %v10185_v14, %v9120_v23  ;;  %v12125_v18 = vpop.f32.mrb[94].mxu1 }
0x1728   :  { %v9123_v25 = vmul.f32 %v12125_v18, %v10183_v48  ;;  %v9083_v27 = vpop.f32.mrb[95].mxu1  ;;  %v9145_v30 = vmax.f32 %v9137_v34, 0.0  ;;  %v9399_v34 = vlaneseq  ;;  %v10202_v18 = vld [vmem:[%s15402_s7] ss:$0 sm:$0xff] }
0x1729   :  { %v9144_v4 = vmax.f32 %v9136_v8, 0.0  ;;  %v9122_v7 = vmul.f32 %v10183_v48, %v9083_v27 }
0x172a   :  { %v9139_v50 = vadd.f32 %v10185_v14, %v9123_v25 }
0x172b   :  { %v9138_v33 = vadd.f32 %v10185_v14, %v9122_v7  ;;  %v12128_v43 = vpop.f32.mrb[96].mxu1  ;;  %12140 = vmatprep.mubr.msk.f32.mxu0 %vm230_vm2, %v9144_v4 }
0x172c   :  { %v9125_v9 = vmul.f32 %v12128_v43, %v10183_v48  ;;  %v9093_v26 = vpop.f32.mrb[97].mxu1  ;;  %12141 = vmatmul.mubr.msk.f32.vlgmr.msra.gmra.mrb[92].mxu0 %vm230_vm2, %v9145_v30  ;;  %v9147_v11 = vmax.f32 %v9139_v50, 0.0 }
0x172d   :  { %v9146_v36 = vmax.f32 %v9138_v33, 0.0  ;;  %v9124_v15 = vmul.f32 %v10183_v48, %v9093_v26 }
0x172e   :  { %v9141_v51 = vadd.f32 %v10185_v14, %v9125_v9 }
0x172f   :  { %v9140_v42 = vadd.f32 %v10185_v14, %v9124_v15  ;;  %v12131_v32 = vpop.f32.mrb[98].mxu1  ;;  %12143 = vmatprep.mubr.msk.f32.mxu0 %vm230_vm2, %v9146_v36 }
0x1730   :  { %v9127_v63 = vmul.f32 %v12131_v32, %v10183_v48  ;;  %v9103_v46 = vpop.f32.mrb[99].mxu1  ;;  %12144 = vmatmul.mubr.msk.f32.gmra.mrb[94].mxu0 %vm230_vm2, %v9147_v11  ;;  %v9149_v24 = vmax.f32 %v9141_v51, 0.0 }
0x1731   :  { %v9148_v20 = vmax.f32 %v9140_v42, 0.0  ;;  %v9126_v37 = vmul.f32 %v10183_v48, %v9103_v46 }
0x1732   :  { %v9143_v2 = vadd.f32 %v10185_v14, %v9127_v63 }
0x1733   :  { %v9142_v54 = vadd.f32 %v10185_v14, %v9126_v37  ;;  %12146 = vmatprep.mubr.msk.f32.mxu0 %vm230_vm2, %v9148_v20 }
0x1734   :  { %12147 = vmatmul.mubr.msk.f32.gmra.mrb[96].mxu0 %vm230_vm2, %v9149_v24  ;;  %v9151_v19 = vmax.f32 %v9143_v2, 0.0 }
0x1735   :  { %v9150_v55 = vmax.f32 %v9142_v54, 0.0 }
0x1737   :  { %12149 = vmatprep.mubr.msk.f32.mxu0 %vm230_vm2, %v9150_v55 }
0x1738   :  { %12150 = vmatmul.mubr.msk.f32.gmra.mrb[98].mxu0 %vm230_vm2, %v9151_v19 }
0x17ff   :  { %v12142_v60 = vpop.f32.mrb[92].mxu0 }
0x1800   :  { %v9247_v10 = vpop.f32.mrb[93].mxu0 }
0x1803   :  { %v12145_v53 = vpop.f32.mrb[94].mxu0 }
0x1804   :  { %v9288_v22 = vmul.f32 %v12145_v53, %v10199_v57  ;;  %v9255_v41 = vpop.f32.mrb[95].mxu0 }
0x1806   :  { %v9298_v1 = vadd.f32 %v10201_v56, %v9288_v22 }
0x1807   :  { %v12148_v58 = vpop.f32.mrb[96].mxu0 }
0x1808   :  { %v9300_v62 = vmax.f32 %v9298_v1, 0.0  ;;  %v9264_v29 = vpop.f32.mrb[97].mxu0 }
0x180a   :  { %v9302_v21 = vadd.f32 %v9300_v62, %v8973_v13  ;;  %v9397_v13 = vunpack.c.l.s4 %v12973_v49 }
0x180b   :  { %v12151_v28 = vpop.f32.mrb[98].mxu0 }
0x180c   :  { %v9304_v61 = vadd.f32 %v9302_v21, %v15307_v35  ;;  %v9289_v16 = vmul.f32 %v12151_v28, %v10199_v57  ;;  %v9272_v40 = vpop.f32.mrb[99].mxu0  ;;  %v9398_v8 = vunpack.c.0.s8 %v9397_v13  ;;  %v9400_v35 = vshrl.u32 %v9399_v34, 7 }
0x180e   :  { %v9299_v44 = vadd.f32 %v10201_v56, %v9289_v16  ;;  %v9319_v47 = vrot.slane %v9304_v61, 7  ;;  %v9401_v25 = vsub.s32 %v9398_v8, %v9400_v35 }
0x1810   :  { %v9301_v48 = vmax.f32 %v9299_v44, 0.0 }
0x1812   :  { %v9303_v0 = vadd.f32 %v9301_v48, %v8977_v12 }
0x1814   :  { %v9305_v14 = vadd.f32 %v9303_v0, %v15326_v59 }
0x1816   :  { %v9320_v38 = vrot.slane %v9305_v14, 6 }
0x1818   :  { %v9322_v23 = vsel %vm9321_vm6, %v9320_v38, %v9319_v47 }
0x1819   :  { %12161 = vmatmul.mubr.msk.f32.vlgmr.msra.gmra.mrb[100].mxu1 %vm230_vm2, %v9322_v23 }
0x18ec   :  { %v9391_v17 = vpop.f32.mrb[100].mxu1 }
0x18ed   :  { %v9392_v12 = vadd.f32 %v10202_v18, %v9391_v17  ;;  %v12162_v27 = vpop.f32.mrb[101].mxu1 }
0x18ef   :  { %v9402_v59 = vrot.slane %v9392_v12, %v9401_v25 }
0x18f1   :  { %v9403_v4 = vcombine.high %v9402_v59, %v9402_v59  ;;  %v9410_v7 = vrot.slane %v9402_v59, %v9401_v25 }
0x18f3   :  { %v9417_v30 = vrot.slane %v9403_v4, %v9401_v25  ;;  %9421 = vst.msk [vmem:[#allocation2] sm:$0x1] %vm9420_vm7, %v9410_v7 }
0x18f5   :  { %9422 = vst.msk [vmem:[#allocation2 + $0x1] sm:$0x1] %vm9420_vm7, %v9417_v30 }
0x18f6   :  { %12957 = shalt.err (!%p12954_p4)
}
0x18f7   :  { %s12958_s12 = scalar_lea.hbm %s15403_s8, 32 }
0x18f8   :  { %p12959_p5 = scmp.ne.s32.totalorder %s15403_s8, %s12958_s12  ;;  %p12962_p6 = scmp.lt.u32.totalorder %s12958_s12, %s15403_s8 }
0x18fa   :  { %p12964_p7 = pnand %p12962_p6, %p12959_p5 }
0x18fc   :  { %12967 = shalt.err (!%p12964_p7)
}
0x18fd   :  { %s12975_s2 = smov 16   ;;  %s12976_s16 = smov 1  }
0x18fe   :  { %9434 = dma.vmem_to_hbm [thread:$0]  %s9429_s0, 32, %s15403_s8, [#allocation3], %s12975_s2, %s12975_s2, %s12976_s16  }
0x18ff   :  { %12968 = dma.done.wait [#allocation3], 32  }
0x1900   :  { %12969 = vsyncadd [#allocation3], 4294967264 }
0x1901   :  { %9438 = vsyncpa [#allocation3], 1 }

</bundles_post_ra>
